<compile_context>
chip_gen: v5e
topology: v5e:2x2
jax: 0.10.0
libtpu: 0.0.40
codegen_flags: <defaults>
</compile_context>

<pallas_src>
import functools

import jax
import jax.numpy as jnp
from jax.experimental import pallas as pl
from jax.experimental.pallas import tpu as pltpu


_LANES = 512            # lane-dense slab width (multiple of 128)
_MAX_BLOCK_ROWS = 2048  # (2048, 512) f32 block = 4 MiB per input per grid step
_MIN_K_STEPS = 4        # target pipeline depth on the reduction axis
_ROW_QUANTUM = 16       # block-row quantum (safe for f32 and bf16 sublane packing)
_MIN_KERNEL_ROWS = _MIN_K_STEPS * 2 * _ROW_QUANTUM  # below this, plain jnp is cheaper


@functools.lru_cache(maxsize=1)
def _num_tensorcores():
    """TensorCores per chip: 2 on v7x, 1 on v5e / v6e (best effort, capped at 2)."""
    try:
        info = pltpu.get_tpu_info()
        for attr in ("num_cores", "num_tensorcores", "tensorcore_count", "core_count"):
            val = getattr(info, attr, None)
            if val:
                return max(1, min(2, int(val)))
    except Exception:
        pass
    try:
        if "v7" in jax.devices()[0].device_kind.lower():
            return 2
    except Exception:
        pass
    return 1


def _dice_partial_kernel(x_ref, t_ref, inter_ref, union_ref):
    """Accumulate partial sums of sigmoid(x)*t and sigmoid(x)+t per partition."""
    k = pl.program_id(1)  # reduction ("arbitrary") axis

    @pl.when(k == 0)
    def _():
        inter_ref[...] = jnp.zeros_like(inter_ref)
        union_ref[...] = jnp.zeros_like(union_ref)

    br, w = x_ref.shape
    prob = jax.nn.sigmoid(x_ref[...].astype(jnp.float32))
    tgt = t_ref[...].astype(jnp.float32)

    # Fold the (br, w) block down to the (1, 8, w) vector accumulator with
    # cheap sublane-group VPU adds (no XLU cross-lane reduce); the final
    # cross-lane reduction happens exactly once in the wrapper.
    # TODO(synk): if bf16 inputs make v7x VALU/EUP-bound, offload this fold to
    # the idle MXU (ones(8, br) @ block) and/or use an approx sigmoid.
    inter_ref[...] += jnp.sum((prob * tgt).reshape(br // 8, 8, w),
                              axis=0, keepdims=True)
    union_ref[...] += jnp.sum((prob + tgt).reshape(br // 8, 8, w),
                              axis=0, keepdims=True)


def _dice_loss_jnp(x, target, smooth):
    """Plain-jnp path for tiny tensors (launch-overhead dominated in Pallas)."""
    p = jax.nn.sigmoid(x.astype(jnp.float32))
    t = target.astype(jnp.float32)
    intersect = jnp.sum(p * t)
    union = jnp.sum(p) + jnp.sum(t)
    s = jnp.float32(smooth)
    return 1.0 - (2.0 * intersect + s) / (union + s)


def dice_loss(x, target, smooth=0.01):
    """Pallas implementation of DiceLoss.forward (returns a scalar f32)."""
    w = _LANES
    n = int(x.size)

    # Tiny tensors: pure launch overhead through pallas_call -> plain jnp.
    if n < _MIN_KERNEL_ROWS * w:
        return _dice_loss_jnp(x, target, smooth)

    xf = x.reshape(-1)
    tf_ = target.reshape(-1)
    rows = n // w  # full lane-dense rows (>= 128 here)

    # ---- adaptive block / grid geometry -----------------------------------
    num_cores = _num_tensorcores()
    p_parts = num_cores if rows >= num_cores * _MIN_K_STEPS * _ROW_QUANTUM else 1

    # Largest block (multiple of _ROW_QUANTUM rows, capped at _MAX_BLOCK_ROWS)
    # that still leaves >= _MIN_K_STEPS reduction steps per partition.
    br = rows // (_MIN_K_STEPS * p_parts)
    br = max(_ROW_QUANTUM, min(_MAX_BLOCK_ROWS, (br // _ROW_QUANTUM) * _ROW_QUANTUM))
    # Prefer a nearby block size that tiles `rows` exactly (no ragged tail);
    # only look within 2x of the optimum so blocks stay large.
    for cand in range(br, max(br // 2, _ROW_QUANTUM) - 1, -_ROW_QUANTUM):
        if rows % (cand * p_parts) == 0:
            br = cand
            break

    nb = rows // br
    p_parts = min(p_parts, nb)
    k_steps = nb // p_parts
    rows_body = p_parts * k_steps * br
    body_elems = rows_body * w

    # Native-dtype lane-dense view; no astype / pad HBM copies.
    x2 = (xf if body_elems == n else xf[:body_elems]).reshape(rows_body, w)
    t2 = (tf_ if body_elems == n else tf_[:body_elems]).reshape(rows_body, w)

    part_i, part_u = pl.pallas_call(
        _dice_partial_kernel,
        out_shape=(
            jax.ShapeDtypeStruct((p_parts, 8, w), jnp.float32),
            jax.ShapeDtypeStruct((p_parts, 8, w), jnp.float32),
        ),
        grid_spec=pltpu.PrefetchScalarGridSpec(
            num_scalar_prefetch=0,
            grid=(p_parts, k_steps),
            in_specs=[
                pl.BlockSpec((br, w), lambda p, k: (p * k_steps + k, 0)),
                pl.BlockSpec((br, w), lambda p, k: (p * k_steps + k, 0)),
            ],
            out_specs=(
                pl.BlockSpec((1, 8, w), lambda p, k: (p, 0, 0)),
                pl.BlockSpec((1, 8, w), lambda p, k: (p, 0, 0)),
            ),
        ),
        compiler_params=pltpu.CompilerParams(
            dimension_semantics=("parallel", "arbitrary"),
            vmem_limit_bytes=32 * 1024 * 1024,
        ),
    )(x2, t2)

    intersect = jnp.sum(part_i)
    union = jnp.sum(part_u)

    if body_elems < n:
        # Ragged tail: fewer than one block of rows plus a < 512-element
        # remainder for odd sizes; summed with plain jnp in native dtype.
        xt = xf[body_elems:].astype(jnp.float32)
        tt = tf_[body_elems:].astype(jnp.float32)
        pt = jax.nn.sigmoid(xt)
        intersect = intersect + jnp.sum(pt * tt)
        union = union + jnp.sum(pt) + jnp.sum(tt)

    s = jnp.float32(smooth)
    dice = (2.0 * intersect + s) / (union + s)
    return 1.0 - dice


def _dice_loss_ref(x, target, smooth=0.01):
    p = jax.nn.sigmoid(x.astype(jnp.float32))
    t = target.astype(jnp.float32)
    intersect = jnp.sum(p * t)
    union = jnp.sum(p) + jnp.sum(t)
    return 1.0 - (2.0 * intersect + smooth) / (union + smooth)


if __name__ == "__main__":
    key = jax.random.PRNGKey(0)

    # NCHW inputs, consistent with the PyTorch module's usage. The cases
    # exercise: the tiny-input jnp bypass, an odd-size bypass, the no-copy
    # kernel path with tail-free adaptive grids (192^2 and 256^2 images),
    # and a bf16-logits case (native-dtype DMA, f32 math in-kernel).
    cases = [
        ((2, 4, 16, 16), jnp.float32),
        ((1, 3, 17, 19), jnp.float32),
        ((2, 4, 192, 192), jnp.float32),
        ((2, 4, 256, 256), jnp.float32),
        ((2, 4, 256, 256), jnp.bfloat16),
    ]
    for idx, (shape, dtype) in enumerate(cases):
        k1, k2 = jax.random.split(jax.random.fold_in(key, idx))
        x = jax.random.normal(k1, shape, dtype=jnp.float32).astype(dtype)
        target = (jax.random.uniform(k2, shape) > 0.5).astype(jnp.float32)

        loss = jax.block_until_ready(dice_loss(x, target, smooth=0.01))
        ref = _dice_loss_ref(x, target, smooth=0.01)
        assert jnp.allclose(loss, ref, atol=1e-4, rtol=1e-4), (shape, dtype, loss, ref)

    print("KERNEL_OK")
</pallas_src>

<mosaic_0001>
module attributes {stable_mosaic.version = 11 : i64} {
  func.func @_dice_partial_kernel(%arg0: i32, %arg1: i32, %arg2: memref<144x512xf32, #tpu.memory_space<vmem>>, %arg3: memref<144x512xf32, #tpu.memory_space<vmem>>, %arg4: memref<1x8x512xf32, #tpu.memory_space<vmem>>, %arg5: memref<1x8x512xf32, #tpu.memory_space<vmem>>) attributes {dimension_semantics = [#tpu.dimension_semantics<parallel>, #tpu.dimension_semantics<arbitrary>], iteration_bounds = array<i64: 1, 4>, scalar_prefetch = 0 : i64, scratch_operands = 0 : i64, tpu.core_type = #tpu.core_type<tc>, window_params = [{transform_indices = @transform_0, window_bounds = array<i64: 144, 512>}, {transform_indices = @transform_1, window_bounds = array<i64: 144, 512>}, {transform_indices = @transform_2, window_bounds = array<i64: 1, 8, 512>}, {transform_indices = @transform_3, window_bounds = array<i64: 1, 8, 512>}]} {
    %c0_i32 = arith.constant 0 : i32
    %0 = arith.cmpi eq, %arg1, %c0_i32 : i32
    %1 = arith.extui %0 : i1 to i32
    %c0_i32_0 = arith.constant 0 : i32
    %2 = arith.cmpi ne, %1, %c0_i32_0 : i32
    scf.if %2 {
      %cst_18 = arith.constant 0.000000e+00 : f32
      %24 = vector.broadcast %cst_18 : f32 to vector<1x8x512xf32>
      %c0_19 = arith.constant 0 : index
      %c0_20 = arith.constant 0 : index
      %c0_21 = arith.constant 0 : index
      %25 = vector.load %arg4[%c0_19, %c0_20, %c0_21] : memref<1x8x512xf32, #tpu.memory_space<vmem>>, vector<1x8x512xf32>
      tpu.vector_store %arg4[%c0_19, %c0_20, %c0_21], %24 {strides = array<i32>} : memref<1x8x512xf32, #tpu.memory_space<vmem>>, vector<1x8x512xf32>,
      %cst_22 = arith.constant 0.000000e+00 : f32
      %26 = vector.broadcast %cst_22 : f32 to vector<1x8x512xf32>
      %c0_23 = arith.constant 0 : index
      %c0_24 = arith.constant 0 : index
      %c0_25 = arith.constant 0 : index
      %27 = vector.load %arg5[%c0_23, %c0_24, %c0_25] : memref<1x8x512xf32, #tpu.memory_space<vmem>>, vector<1x8x512xf32>
      tpu.vector_store %arg5[%c0_23, %c0_24, %c0_25], %26 {strides = array<i32>} : memref<1x8x512xf32, #tpu.memory_space<vmem>>, vector<1x8x512xf32>,
    } else {
    }
    %c0 = arith.constant 0 : index
    %c0_1 = arith.constant 0 : index
    %3 = vector.load %arg2[%c0, %c0_1] : memref<144x512xf32, #tpu.memory_space<vmem>>, vector<144x512xf32>
    %4 = arith.negf %3 : vector<144x512xf32>
    %5 = math.exp %4 : vector<144x512xf32>
    %cst = arith.constant 1.000000e+00 : f32
    %6 = vector.broadcast %cst : f32 to vector<144x512xf32>
    %7 = arith.addf %6, %5 : vector<144x512xf32>
    %8 = arith.divf %6, %7 : vector<144x512xf32>
    %c0_2 = arith.constant 0 : index
    %c0_3 = arith.constant 0 : index
    %9 = vector.load %arg3[%c0_2, %c0_3] : memref<144x512xf32, #tpu.memory_space<vmem>>, vector<144x512xf32>
    %c0_4 = arith.constant 0 : index
    %c0_5 = arith.constant 0 : index
    %c0_6 = arith.constant 0 : index
    %10 = vector.load %arg4[%c0_4, %c0_5, %c0_6] : memref<1x8x512xf32, #tpu.memory_space<vmem>>, vector<1x8x512xf32>
    %11 = arith.mulf %8, %9 : vector<144x512xf32>
    %12 = vector.shape_cast %11 : vector<144x512xf32> to vector<18x8x512xf32>
    %cst_7 = arith.constant dense<0.000000e+00> : vector<8x512xf32>
    %13 = vector.multi_reduction <add>, %12, %cst_7 [0] : vector<18x8x512xf32> to vector<8x512xf32>
    %14 = vector.shape_cast %13 : vector<8x512xf32> to vector<1x8x512xf32>
    %15 = arith.addf %10, %14 : vector<1x8x512xf32>
    %c0_8 = arith.constant 0 : index
    %c0_9 = arith.constant 0 : index
    %c0_10 = arith.constant 0 : index
    %16 = vector.load %arg4[%c0_8, %c0_9, %c0_10] : memref<1x8x512xf32, #tpu.memory_space<vmem>>, vector<1x8x512xf32>
    tpu.vector_store %arg4[%c0_8, %c0_9, %c0_10], %15 {strides = array<i32>} : memref<1x8x512xf32, #tpu.memory_space<vmem>>, vector<1x8x512xf32>,
    %c0_11 = arith.constant 0 : index
    %c0_12 = arith.constant 0 : index
    %c0_13 = arith.constant 0 : index
    %17 = vector.load %arg5[%c0_11, %c0_12, %c0_13] : memref<1x8x512xf32, #tpu.memory_space<vmem>>, vector<1x8x512xf32>
    %18 = arith.addf %8, %9 : vector<144x512xf32>
    %19 = vector.shape_cast %18 : vector<144x512xf32> to vector<18x8x512xf32>
    %cst_14 = arith.constant dense<0.000000e+00> : vector<8x512xf32>
    %20 = vector.multi_reduction <add>, %19, %cst_14 [0] : vector<18x8x512xf32> to vector<8x512xf32>
    %21 = vector.shape_cast %20 : vector<8x512xf32> to vector<1x8x512xf32>
    %22 = arith.addf %17, %21 : vector<1x8x512xf32>
    %c0_15 = arith.constant 0 : index
    %c0_16 = arith.constant 0 : index
    %c0_17 = arith.constant 0 : index
    %23 = vector.load %arg5[%c0_15, %c0_16, %c0_17] : memref<1x8x512xf32, #tpu.memory_space<vmem>>, vector<1x8x512xf32>
    tpu.vector_store %arg5[%c0_15, %c0_16, %c0_17], %22 {strides = array<i32>} : memref<1x8x512xf32, #tpu.memory_space<vmem>>, vector<1x8x512xf32>,
    return
  }
  func.func @transform_0(%arg0: i32, %arg1: i32) -> (i32, i32) {
    %c4_i32 = arith.constant 4 : i32
    %0 = arith.muli %arg0, %c4_i32 : i32
    %1 = arith.addi %0, %arg1 : i32
    %c0_i32 = arith.constant 0 : i32
    %c0_i32_0 = arith.constant 0 : i32
    return %1, %c0_i32 : i32, i32
  }
  func.func @transform_1(%arg0: i32, %arg1: i32) -> (i32, i32) {
    %c4_i32 = arith.constant 4 : i32
    %0 = arith.muli %arg0, %c4_i32 : i32
    %1 = arith.addi %0, %arg1 : i32
    %c0_i32 = arith.constant 0 : i32
    %c0_i32_0 = arith.constant 0 : i32
    return %1, %c0_i32 : i32, i32
  }
  func.func @transform_2(%arg0: i32, %arg1: i32) -> (i32, i32, i32) {
    %c0_i32 = arith.constant 0 : i32
    %c0_i32_0 = arith.constant 0 : i32
    %c0_i32_1 = arith.constant 0 : i32
    return %arg0, %c0_i32, %c0_i32_0 : i32, i32, i32
  }
  func.func @transform_3(%arg0: i32, %arg1: i32) -> (i32, i32, i32) {
    %c0_i32 = arith.constant 0 : i32
    %c0_i32_0 = arith.constant 0 : i32
    %c0_i32_1 = arith.constant 0 : i32
    return %arg0, %c0_i32, %c0_i32_0 : i32, i32, i32
  }
}

</mosaic_0001>

<bundles_post_ra>
// kernel: tpu_custom_call.1
= control target key start
LH: loop header
LB: loop body
LE: loop exit
PB: predicated region body
PF: predicated region fallthrough
CT: control target
= control target key end

     0   :  { %9 = vsyncpa [#allocation3], 0  ;;  %s6059_s0 = inlined_call_operand.hbm [shape: f32[576,512], index: 0, kind: input, shape index: {}]   ;;  %s6060_s1 = inlined_call_operand.hbm [shape: f32[576,512], index: 1, kind: input, shape index: {}]   ;;  %s6061_s2 = inlined_call_operand.hbm [shape: f32[1,8,512], index: 2, kind: output, shape index: {0}]   ;;  %s6062_s3 = inlined_call_operand.hbm [shape: f32[1,8,512], index: 3, kind: output, shape index: {1}]  }
   0x1   :  { %11 = vsyncpa [#allocation3 + $0x1], 0 }
   0x2   :  { %12 = vsyncpa [#allocation6], 0 }
   0x3   :  { %14 = vsyncpa [#allocation6 + $0x1], 0 }
   0x4   :  { %15 = vsyncpa [#allocation4], 0 }
   0x5   :  { %16 = vsyncpa [#allocation9], 0  ;;  %s2885_s12 = smov 0   ;;  %s2887_s13 = smov 0  }
   0x6   :  { %s2889_s14 = smov 0   ;;  %s2891_s15 = smov 0  }
   0x7   :  { %s2893_s16 = smov 0   ;;  %s2895_s17 = smov 0  }
   0x8 LB: > { %s2219_s18 = sadd.s32 4294967295, %s2858_s17   ;;  %s31_s19 = sadd.s32 1, %s2854_s16  ;;  %s2858_s17 = sphi %s2895_s17, %s22_s17   ;;  %s2854_s16 = sphi %s2893_s16, %s6967_s16   ;;  %s2850_s15 = sphi %s2891_s15, %s6966_s15   ;;  %s2846_s14 = sphi %s2889_s14, %s6965_s14   ;;  %s2842_s13 = sphi %s2887_s13, %s6964_s13   ;;  %s2838_s12 = sphi %s2885_s12, %s6963_s12  }
   0x9   : > { %p32_p0 = scmp.ge.s32.totalorder %s31_s19, 4  ;;  %s45_s20 = sadd.s32 1, %s2846_s14 }
   0xa   : > { %p52_p1 = scmp.ne.s32.totalorder %s2846_s14, %s2842_s13  ;;  %p53_p2 = scmp.eq.s32.totalorder %s2858_s17, 0 }
   0xb   : > { %s6969_s19 = smov (%p32_p0, %s31_s19), 0  ;;  %p58_p4 = scmp.ne.s32.totalorder %s2842_s13, %s2838_s12 }
   0xc   : > { %p54_p3 = por %p53_p2, %p52_p1  ;;  %s42_s21 = ssub.s32 %s2854_s16, %s6969_s19 }
   0xd   : > { %p59_p5 = scmp.eq.s32.totalorder %s2219_s18, 0  ;;  %p43_p6 = scmp.eq.s32.totalorder %s42_s21, 0 }
   0xe   : > { %p2334_p8 = scmp.lt.s32.totalorder %s2858_s17, 4  ;;  %s2935_s24 = sand.u32 1, %s2846_s14  }
   0xf   : > { %p2926_p7 = por %p59_p5, %p58_p4  ;;  %s2310_s25 = smul.u32 576, %s2854_s16 }
  0x10   : > { %s2932_s23 = scalar_select %p43_p6, %s2846_s14, %s45_s20  }
  0x11   : > { %s2312_s26 = smul.u32 576, %s2935_s24  ;;  %s176_s29 = scalar_lea.hbm %s6059_s0, %s2310_s25 }
  0x12   : > { %p2942_p9 = pnand %p2334_p8, %p54_p3  ;;  %s177_s4 = sshll.u32 %s176_s29, 4  ;;  %s178_s4 = int_to_ptr.hbm [resolvable:$true] %s177_s4 }
  0x13   : > { %s168_s5 = scalar_lea.vmem [#allocation2], %s2312_s26  ;;  %s165_s7 = scalar_lea.sflag [#allocation3], %s2935_s24 }
  0x14   : > { %s179_s6 = sshll.u32 %s168_s5, 4  ;;  %s2860_s8 = smov 512   ;;  %s180_s6 = int_to_ptr.vmem [resolvable:$true] %s179_s6 }
  0x15   : > { %s2861_s9 = smov 32   ;;  %p2226_p10 = scmp.ge.s32.totalorder %s2858_s17, 1 }
  0x16   : > { %2330 = dma.hbm_to_vmem [thread:$0]  (!%p2942_p9), %s178_s4, 9216, %s180_s6, %s165_s7, %s2860_s8, %s2860_s8, %s2861_s9  }
  0x17   : > { %p212_p11 = scmp.lt.s32.totalorder %s2858_s17, 5  ;;  %s201_s12 = scalar_lea.hbm %s6060_s1, %s2310_s25 }
  0x18   : > { %s202_s20 = sshll.u32 %s201_s12, 4  ;;  %s193_s21 = scalar_lea.vmem [#allocation5], %s2312_s26  ;;  %s203_s20 = int_to_ptr.hbm [resolvable:$true] %s202_s20 }
  0x19   : > { %p213_p12 = pnand %p2226_p10, %p212_p11  ;;  %s204_s27 = sshll.u32 %s193_s21, 4  ;;  %s205_s27 = int_to_ptr.vmem [resolvable:$true] %s204_s27 }
  0x1a   : > { %s190_s28 = scalar_lea.sflag [#allocation6], %s2935_s24 }
  0x1b   : > { %2333 = dma.hbm_to_vmem [thread:$0]  (!%p2942_p9), %s203_s20, 9216, %s205_s27, %s190_s28, %s2860_s8, %s2860_s8, %s2861_s9  }
  0x1c   : > { %216 = sbr.rel (%p213_p12) target bundleno = 481 (0x1e1), region = 28 }
  0x21   : > { %s218_s29 = sand.u32 1, %s2842_s13  }
  0x22   : > { %s2314_s4 = smul.u32 576, %s218_s29  ;;  %s219_s5 = scalar_lea.sflag [#allocation3], %s218_s29 }
  0x24   : > { %s2958_s6 = scalar_lea.vmem [#allocation2], %s2314_s4 }
  0x25   : > { %2821 = dma.done.wait (%p2926_p7), %s219_s5, 9216  }
  0x26   : > { %2823 = vsyncadd (%p2926_p7), %s219_s5, 4294958080  ;;  %s229_s25 = scalar_lea.sflag [#allocation6], %s218_s29  ;;  %s2964_s26 = scalar_lea.vmem [#allocation5], %s2314_s4 }
  0x27   : > { %2825 = dma.done.wait (%p2926_p7), %s229_s25, 9216  }
  0x28   : > { %2827 = vsyncadd (%p2926_p7), %s229_s25, 4294958080  ;;  %p2227_p13 = scmp.ne.s32.totalorder %s2850_s15, 0 }
  0x2a   : > { %265 = sbr.rel (%p2227_p13) target bundleno = 56 (0x38), region = 40 }
  0x2f   : > { %v2862_v0 = vmov 0.0  }
  0x30   : > { %266 = vst [vmem:[#allocation7] sm:$0xff] %v2862_v0 }
  0x31   : > { %267 = vst [vmem:[#allocation7 + $0x8] sm:$0xff] %v2862_v0 }
  0x32   : > { %268 = vst [vmem:[#allocation7 + $0x10] sm:$0xff] %v2862_v0 }
  0x33   : > { %269 = vst [vmem:[#allocation7 + $0x18] sm:$0xff] %v2862_v0 }
  0x34   : > { %270 = vst [vmem:[#allocation8] sm:$0xff] %v2862_v0 }
  0x35   : > { %271 = vst [vmem:[#allocation8 + $0x8] sm:$0xff] %v2862_v0 }
  0x36   : > { %272 = vst [vmem:[#allocation8 + $0x10] sm:$0xff] %v2862_v0 }
  0x37   : > { %273 = vst [vmem:[#allocation8 + $0x18] sm:$0xff] %v2862_v0 }
  0x38 PF: > { %v274_v1 = vld [vmem:[%s2958_s6] sm:$0xff]  ;;  %v275_v2 = vld [vmem:[%s2958_s6 + $0x8] sm:$0xff]  ;;  %v276_v3 = vld [vmem:[%s2958_s6 + $0x10] sm:$0xff]  ;;  %s2863_s15 = smov [#allocation7]   ;;  %s2101_s7 = sshll.u32 %s6061_s2, 4  ;;  %s2102_s7 = int_to_ptr.hbm [resolvable:$true] %s2101_s7 }
  0x39   : > { %v277_v4 = vld [vmem:[%s2958_s6 + $0x18] sm:$0xff]  ;;  %v2228_v5 = vmul.f32 -1.442695, %v274_v1  ;;  %v278_v6 = vld [vmem:[%s2958_s6 + $0x20] sm:$0xff]  ;;  %v2229_v7 = vmul.f32 -1.442695, %v275_v2 }
  0x3a   : > { %v279_v8 = vld [vmem:[%s2958_s6 + $0x28] sm:$0xff]  ;;  %v2230_v9 = vmul.f32 -1.442695, %v276_v3  ;;  %v280_v10 = vld [vmem:[%s2958_s6 + $0x30] sm:$0xff]  ;;  %v2231_v11 = vmul.f32 -1.442695, %v277_v4 }
  0x3b   : > { %v281_v12 = vld [vmem:[%s2958_s6 + $0x38] sm:$0xff]  ;;  %2392 = vpow2.f32 %v2228_v5  ;;  %v2232_v13 = vmul.f32 -1.442695, %v278_v6  ;;  %v282_v14 = vld [vmem:[%s2958_s6 + $0x40] sm:$0xff]  ;;  %v2233_v15 = vmul.f32 -1.442695, %v279_v8 }
  0x3c   : > { %2394 = vpow2.f32 %v2229_v7  ;;  %v283_v16 = vld [vmem:[%s2958_s6 + $0x48] sm:$0xff]  ;;  %v2234_v17 = vmul.f32 -1.442695, %v280_v10  ;;  %v284_v18 = vld [vmem:[%s2958_s6 + $0x50] sm:$0xff]  ;;  %v2235_v19 = vmul.f32 -1.442695, %v281_v12 }
  0x3d   : > { %2396 = vpow2.f32 %v2230_v9  ;;  %v285_v20 = vld [vmem:[%s2958_s6 + $0x58] sm:$0xff]  ;;  %v2236_v21 = vmul.f32 -1.442695, %v282_v14  ;;  %v286_v22 = vld [vmem:[%s2958_s6 + $0x60] sm:$0xff]  ;;  %v2237_v23 = vmul.f32 -1.442695, %v283_v16 }
  0x3e   : > { %2398 = vpow2.f32 %v2231_v11  ;;  %v287_v25 = vld [vmem:[%s2958_s6 + $0x68] sm:$0xff]  ;;  %v2238_v26 = vmul.f32 -1.442695, %v284_v18  ;;  %v288_v28 = vld [vmem:[%s2958_s6 + $0x70] sm:$0xff]  ;;  %v2239_v29 = vmul.f32 -1.442695, %v285_v20 }
  0x3f   : > { %2400 = vpow2.f32 %v2232_v13  ;;  %v289_v31 = vld [vmem:[%s2958_s6 + $0x78] sm:$0xff]  ;;  %v2240_v32 = vmul.f32 -1.442695, %v286_v22  ;;  %v290_v34 = vld [vmem:[%s2958_s6 + $0x80] sm:$0xff]  ;;  %v2241_v35 = vmul.f32 -1.442695, %v287_v25 }
  0x40   : > { %2402 = vpow2.f32 %v2233_v15  ;;  %v291_v37 = vld [vmem:[%s2958_s6 + $0x88] sm:$0xff]  ;;  %v2242_v38 = vmul.f32 -1.442695, %v288_v28  ;;  %v292_v40 = vld [vmem:[%s2958_s6 + $0x90] sm:$0xff]  ;;  %v2243_v41 = vmul.f32 -1.442695, %v289_v31 }
  0x41   : > { %v2984_v24 = vpop.eup %2392  ;;  %2404 = vpow2.f32 %v2234_v17  ;;  %v293_v43 = vld [vmem:[%s2958_s6 + $0x98] sm:$0xff]  ;;  %v2244_v44 = vmul.f32 -1.442695, %v290_v34  ;;  %v294_v46 = vld [vmem:[%s2958_s6 + $0xa0] sm:$0xff]  ;;  %v2245_v47 = vmul.f32 -1.442695, %v291_v37 }
  0x42   : > { %v2987_v27 = vpop.eup %2394  ;;  %2406 = vpow2.f32 %v2235_v19  ;;  %v295_v49 = vld [vmem:[%s2958_s6 + $0xa8] sm:$0xff]  ;;  %v2246_v50 = vmul.f32 -1.442695, %v292_v40  ;;  %v296_v52 = vld [vmem:[%s2958_s6 + $0xb0] sm:$0xff]  ;;  %v2247_v53 = vmul.f32 -1.442695, %v293_v43 }
  0x43   : > { %v2990_v30 = vpop.eup %2396  ;;  %2408 = vpow2.f32 %v2236_v21  ;;  %v297_v55 = vld [vmem:[%s2958_s6 + $0xb8] sm:$0xff]  ;;  %v2248_v56 = vmul.f32 -1.442695, %v294_v46  ;;  %v298_v58 = vld [vmem:[%s2958_s6 + $0xc0] sm:$0xff]  ;;  %v2249_v59 = vmul.f32 -1.442695, %v295_v49 }
  0x44   : > { %v2993_v33 = vpop.eup %2398  ;;  %2410 = vpow2.f32 %v2237_v23  ;;  %v299_v61 = vld [vmem:[%s2958_s6 + $0xc8] sm:$0xff]  ;;  %v2250_v62 = vmul.f32 -1.442695, %v296_v52  ;;  %v300_v0 = vld [vmem:[%s2958_s6 + $0xd0] sm:$0xff]  ;;  %v2251_v1 = vmul.f32 -1.442695, %v297_v55 }
  0x45   : > { %v2996_v36 = vpop.eup %2400  ;;  %2412 = vpow2.f32 %v2238_v26  ;;  %v301_v3 = vld [vmem:[%s2958_s6 + $0xd8] sm:$0xff]  ;;  %v2252_v4 = vmul.f32 -1.442695, %v298_v58  ;;  %v302_v6 = vld [vmem:[%s2958_s6 + $0xe0] sm:$0xff]  ;;  %v2253_v7 = vmul.f32 -1.442695, %v299_v61 }
  0x46   : > { %v2999_v39 = vpop.eup %2402  ;;  %2414 = vpow2.f32 %v2239_v29  ;;  %v303_v9 = vld [vmem:[%s2958_s6 + $0xe8] sm:$0xff]  ;;  %v2254_v10 = vmul.f32 -1.442695, %v300_v0  ;;  %v304_v12 = vld [vmem:[%s2958_s6 + $0xf0] sm:$0xff]  ;;  %v2255_v13 = vmul.f32 -1.442695, %v301_v3 }
  0x47   : > { %v3002_v42 = vpop.eup %2404  ;;  %2416 = vpow2.f32 %v2240_v32  ;;  %v305_v15 = vld [vmem:[%s2958_s6 + $0xf8] sm:$0xff]  ;;  %v2256_v16 = vmul.f32 -1.442695, %v302_v6  ;;  %v306_v18 = vld [vmem:[%s2958_s6 + $0x100] sm:$0xff]  ;;  %v2257_v19 = vmul.f32 -1.442695, %v303_v9 }
  0x48   : > { %v3005_v45 = vpop.eup %2406  ;;  %2418 = vpow2.f32 %v2241_v35  ;;  %v307_v21 = vld [vmem:[%s2958_s6 + $0x108] sm:$0xff]  ;;  %v2258_v22 = vmul.f32 -1.442695, %v304_v12  ;;  %v308_v25 = vld [vmem:[%s2958_s6 + $0x110] sm:$0xff]  ;;  %v2259_v26 = vmul.f32 -1.442695, %v305_v15 }
  0x49   : > { %v3008_v48 = vpop.eup %2408  ;;  %2420 = vpow2.f32 %v2242_v38  ;;  %v309_v29 = vld [vmem:[%s2958_s6 + $0x118] sm:$0xff]  ;;  %v2260_v31 = vmul.f32 -1.442695, %v306_v18  ;;  %v310_v34 = vld [vmem:[%s2958_s6 + $0x120] sm:$0xff]  ;;  %v2261_v35 = vmul.f32 -1.442695, %v307_v21 }
  0x4a   : > { %v3011_v51 = vpop.eup %2410  ;;  %2422 = vpow2.f32 %v2243_v41  ;;  %v311_v38 = vld [vmem:[%s2958_s6 + $0x128] sm:$0xff]  ;;  %v2262_v40 = vmul.f32 -1.442695, %v308_v25  ;;  %v312_v43 = vld [vmem:[%s2958_s6 + $0x130] sm:$0xff]  ;;  %v2264_v49 = vmul.f32 -1.442695, %v310_v34 }
  0x4b   : > { %v3014_v54 = vpop.eup %2412  ;;  %2424 = vpow2.f32 %v2244_v44  ;;  %v2263_v44 = vmul.f32 -1.442695, %v309_v29  ;;  %v314_v52 = vld [vmem:[%s2958_s6 + $0x140] sm:$0xff]  ;;  %v2266_v58 = vmul.f32 -1.442695, %v312_v43  ;;  %v316_v61 = vld [vmem:[%s2958_s6 + $0x150] sm:$0xff] }
  0x4c   : > { %v3017_v57 = vpop.eup %2414  ;;  %2426 = vpow2.f32 %v2245_v47  ;;  %v313_v47 = vld [vmem:[%s2958_s6 + $0x138] sm:$0xff]  ;;  %v2268_v3 = vmul.f32 -1.442695, %v314_v52  ;;  %v318_v6 = vld [vmem:[%s2958_s6 + $0x160] sm:$0xff]  ;;  %v2270_v12 = vmul.f32 -1.442695, %v316_v61 }
  0x4d   : > { %v3020_v60 = vpop.eup %2416  ;;  %2428 = vpow2.f32 %v2246_v50  ;;  %v320_v15 = vld [vmem:[%s2958_s6 + $0x170] sm:$0xff]  ;;  %v322_v21 = vld [vmem:[%s2958_s6 + $0x180] sm:$0xff]  ;;  %v2272_v25 = vmul.f32 -1.442695, %v318_v6  ;;  %s5896_s22 = sshll.u32 %s2863_s15, 4  ;;  %p5909_p0 = scmp.eq.s32.totalorder %s2219_s18, 3  ;;  %s2100_s22 = int_to_ptr.vmem [resolvable:$true] %s5896_s22 }
  0x4e   : > { %v3023_v63 = vpop.eup %2418  ;;  %2430 = vpow2.f32 %v2247_v53  ;;  %v2265_v53 = vmul.f32 -1.442695, %v311_v38  ;;  %v324_v29 = vld [vmem:[%s2958_s6 + $0x190] sm:$0xff]  ;;  %v326_v34 = vld [vmem:[%s2958_s6 + $0x1a0] sm:$0xff]  ;;  %s2864_s18 = smov [#allocation8]   ;;  %s2116_s12 = sshll.u32 %s6062_s3, 4  ;;  %s2117_s12 = int_to_ptr.hbm [resolvable:$true] %s2116_s12 }
  0x4f   : > { %v3026_v2 = vpop.eup %2420  ;;  %2432 = vpow2.f32 %v2248_v56  ;;  %v315_v56 = vld [vmem:[%s2958_s6 + $0x148] sm:$0xff]  ;;  %v328_v43 = vld [vmem:[%s2958_s6 + $0x1b0] sm:$0xff]  ;;  %v334_v6 = vld [vmem:[%s2958_s6 + $0x1e0] sm:$0xff]  ;;  %s2114_s9 = sshll.u32 %s2864_s18, 4  ;;  %s2115_s9 = int_to_ptr.vmem [resolvable:$true] %s2114_s9 }
  0x50   : > { %v3029_v5 = vpop.eup %2422  ;;  %2434 = vpow2.f32 %v2249_v59 }
  0x51   : > { %v3032_v8 = vpop.eup %2424  ;;  %2436 = vpow2.f32 %v2250_v62  ;;  %v2267_v62 = vmul.f32 -1.442695, %v313_v47  ;;  %v2274_v47 = vmul.f32 -1.442695, %v320_v15  ;;  %v3124_v15 = vadd.f32 1.0, %v2996_v36  ;;  %v339_v36 = vld [vmem:[%s2958_s6 + $0x208] sm:$0xff] }
  0x52   : > { %v3035_v11 = vpop.eup %2426  ;;  %2438 = vpow2.f32 %v2251_v1  ;;  %v317_v1 = vld [vmem:[%s2958_s6 + $0x158] sm:$0xff] }
  0x53   : > { %v3038_v14 = vpop.eup %2428  ;;  %2440 = vpow2.f32 %v2252_v4  ;;  %6254 = vst [vmem:[#allocation23_spill] sm:$0xff] %v3124_v15  ;;  %v341_v15 = vld [vmem:[%s2958_s6 + $0x218] sm:$0xff] }
  0x54   : > { %v3041_v17 = vpop.eup %2430  ;;  %2442 = vpow2.f32 %v2253_v7  ;;  %v2269_v7 = vmul.f32 -1.442695, %v315_v56  ;;  %v331_v56 = vld [vmem:[%s2958_s6 + $0x1c8] sm:$0xff] }
  0x55   : > { %v3044_v20 = vpop.eup %2432  ;;  %2444 = vpow2.f32 %v2254_v10  ;;  %v319_v10 = vld [vmem:[%s2958_s6 + $0x168] sm:$0xff] }
  0x56   : > { %v3047_v23 = vpop.eup %2434  ;;  %2446 = vpow2.f32 %v2255_v13 }
  0x57   : > { %v3050_v28 = vpop.eup %2436  ;;  %2448 = vpow2.f32 %v2256_v16  ;;  %v2271_v16 = vmul.f32 -1.442695, %v317_v1  ;;  %v3113_v1 = vadd.f32 1.0, %v2990_v30  ;;  %v336_v30 = vld [vmem:[%s2958_s6 + $0x1f0] sm:$0xff] }
  0x58   : > { %v3053_v32 = vpop.eup %2438  ;;  %2450 = vpow2.f32 %v2257_v19  ;;  %v321_v19 = vld [vmem:[%s2958_s6 + $0x178] sm:$0xff] }
  0x59   : > { %v3056_v37 = vpop.eup %2440  ;;  %2452 = vpow2.f32 %v2258_v22  ;;  %v323_v22 = vld [vmem:[%s2958_s6 + $0x188] sm:$0xff]  ;;  %v2275_v61 = vmul.f32 -1.442695, %v321_v19  ;;  %6251 = vst [vmem:[#allocation20_spill] sm:$0xff] %v3113_v1  ;;  %v338_v19 = vld [vmem:[%s2958_s6 + $0x200] sm:$0xff] }
  0x5a   : > { %v3059_v41 = vpop.eup %2442  ;;  %2454 = vpow2.f32 %v2259_v26  ;;  %v2277_v1 = vmul.f32 -1.442695, %v323_v22  ;;  %v343_v22 = vld [vmem:[%s2958_s6 + $0x228] sm:$0xff] }
  0x5b   : > { %v3062_v46 = vpop.eup %2444  ;;  %2456 = vpow2.f32 %v2260_v31  ;;  %v325_v31 = vld [vmem:[%s2958_s6 + $0x198] sm:$0xff] }
  0x5c   : > { %v3065_v50 = vpop.eup %2446  ;;  %2458 = vpow2.f32 %v2261_v35  ;;  %v2273_v35 = vmul.f32 -1.442695, %v319_v10  ;;  %v2276_v10 = vmul.f32 -1.442695, %v322_v21  ;;  %v3135_v21 = vadd.f32 1.0, %v3002_v42 }
  0x5d   : > { %v3068_v55 = vpop.eup %2448  ;;  %2460 = vpow2.f32 %v2262_v40  ;;  %v327_v40 = vld [vmem:[%s2958_s6 + $0x1a8] sm:$0xff] }
  0x5e   : > { %v3071_v59 = vpop.eup %2450  ;;  %2462 = vpow2.f32 %v2263_v44  ;;  %v329_v44 = vld [vmem:[%s2958_s6 + $0x1b8] sm:$0xff]  ;;  %6257 = vst [vmem:[#allocation26_spill] sm:$0xff] %v3135_v21 }
  0x5f   : > { %v3074_v0 = vpop.eup %2452  ;;  %2464 = vpow2.f32 %v2264_v49  ;;  %v3102_v49 = vadd.f32 1.0, %v2984_v24  ;;  %v333_v24 = vld [vmem:[%s2958_s6 + $0x1d8] sm:$0xff]  ;;  %v2283_v42 = vmul.f32 -1.442695, %v329_v44 }
  0x60   : > { %v3077_v4 = vpop.eup %2454  ;;  %2466 = vpow2.f32 %v2265_v53  ;;  %v330_v53 = vld [vmem:[%s2958_s6 + $0x1c0] sm:$0xff] }
  0x61   : > { %v3080_v9 = vpop.eup %2456  ;;  %2468 = vpow2.f32 %v2266_v58  ;;  %6248 = vst [vmem:[#allocation17_spill] sm:$0xff] %v3102_v49  ;;  %v332_v58 = vld [vmem:[%s2958_s6 + $0x1d0] sm:$0xff]  ;;  %v2279_v49 = vmul.f32 -1.442695, %v325_v31  ;;  %v2288_v31 = vmul.f32 -1.442695, %v334_v6 }
  0x62   : > { %v3083_v13 = vpop.eup %2458  ;;  %2470 = vpow2.f32 %v2267_v62  ;;  %v3110_v62 = vadd.f32 1.0, %v2987_v27 }
  0x63   : > { %v3086_v18 = vpop.eup %2460  ;;  %2472 = vpow2.f32 %v2268_v3 }
  0x64   : > { %6245 = vst [vmem:[#allocation14_spill] sm:$0xff] %v3086_v18  ;;  %v3091_v26 = vpop.eup %2462  ;;  %2474 = vpow2.f32 %v2269_v7  ;;  %v335_v7 = vld [vmem:[%s2958_s6 + $0x1e8] sm:$0xff]  ;;  %v2286_v18 = vmul.f32 -1.442695, %v332_v58 }
  0x65   : > { %6246 = vst [vmem:[#allocation15_spill] sm:$0xff] %v3091_v26  ;;  %v3096_v38 = vpop.eup %2464  ;;  %2476 = vpow2.f32 %v2270_v12  ;;  %v3121_v12 = vadd.f32 1.0, %v2993_v33  ;;  %v2285_v26 = vmul.f32 -1.442695, %v331_v56  ;;  %v3162_v56 = vmul.f32 -1.442695, %v341_v15 }
  0x66   : > { %6247 = vst [vmem:[#allocation16_spill] sm:$0xff] %v3096_v38  ;;  %v3104_v52 = vpop.eup %2466  ;;  %2478 = vpow2.f32 %v2271_v16  ;;  %v337_v16 = vld [vmem:[%s2958_s6 + $0x1f8] sm:$0xff]  ;;  %v2284_v38 = vmul.f32 -1.442695, %v330_v53  ;;  %v3180_v15 = vadd.f32 1.0, %v3008_v48  ;;  %v3199_v48 = vadd.f32 1.0, %v3023_v63 }
  0x67   : > { %6249 = vst [vmem:[#allocation18_spill] sm:$0xff] %v3104_v52  ;;  %v3115_v3 = vpop.eup %2468  ;;  %2480 = vpow2.f32 %v2272_v25  ;;  %v340_v25 = vld [vmem:[%s2958_s6 + $0x210] sm:$0xff]  ;;  %v3218_v63 = vadd.f32 1.0, %v3038_v14 }
  0x68   : > { %6250 = vst [vmem:[#allocation19_spill] sm:$0xff] %v3110_v62  ;;  %v3126_v27 = vpop.eup %2470  ;;  %2482 = vpow2.f32 %v2273_v35  ;;  %v3132_v62 = vadd.f32 1.0, %v2999_v39  ;;  %v342_v35 = vld [vmem:[%s2958_s6 + $0x220] sm:$0xff]  ;;  %v344_v52 = vld [vmem:[%s2958_s6 + $0x230] sm:$0xff]  ;;  %v2281_v39 = vmul.f32 -1.442695, %v327_v40 }
  0x69   : > { %6252 = vst [vmem:[#allocation21_spill] sm:$0xff] %v3115_v3  ;;  %v3137_v33 = vpop.eup %2472  ;;  %2484 = vpow2.f32 %v2274_v47  ;;  %v2291_v40 = vmul.f32 -1.442695, %v337_v16  ;;  %v3160_v53 = vmul.f32 -1.442695, %v340_v25  ;;  %v3191_v16 = vadd.f32 1.0, %v3017_v57 }
  0x6a   : > { %6253 = vst [vmem:[#allocation22_spill] sm:$0xff] %v3121_v12  ;;  %v2278_v12 = vmul.f32 -1.442695, %v324_v29  ;;  %v3142_v3 = vpop.eup %2474  ;;  %2486 = vpow2.f32 %v2275_v61  ;;  %v2287_v29 = vmul.f32 -1.442695, %v333_v24  ;;  %v3210_v57 = vadd.f32 1.0, %v3032_v8 }
  0x6b   : > { %6255 = vst [vmem:[#allocation24_spill] sm:$0xff] %v3126_v27  ;;  %v2280_v27 = vmul.f32 -1.442695, %v326_v34  ;;  %v3147_v21 = vpop.eup %2476  ;;  %2488 = vpow2.f32 %v2276_v10  ;;  %v2289_v34 = vmul.f32 -1.442695, %v335_v7  ;;  %v3229_v8 = vadd.f32 1.0, %v3047_v23 }
  0x6c   : > { %6256 = vst [vmem:[#allocation25_spill] sm:$0xff] %v3132_v62  ;;  %v2282_v62 = vmul.f32 -1.442695, %v328_v43  ;;  %v3150_v47 = vpop.eup %2478  ;;  %2490 = vpow2.f32 %v2277_v1  ;;  %v2290_v61 = vmul.f32 -1.442695, %v336_v30  ;;  %v3266_v25 = vadd.f32 1.0, %v3080_v9 }
  0x6d   : > { %6258 = vst [vmem:[#allocation27_spill] sm:$0xff] %v3137_v33  ;;  %v345_v33 = vld [vmem:[%s2958_s6 + $0x238] sm:$0xff]  ;;  %2492 = vpow2.f32 %v2278_v12  ;;  %v3154_v43 = vmul.f32 -1.442695, %v338_v19  ;;  %v3158_v10 = vmul.f32 -1.442695, %v339_v36 }
  0x6e   : > { %6259 = vst [vmem:[#allocation28_spill] sm:$0xff] %v3142_v3  ;;  %v3152_v3 = vpop.eup %2480  ;;  %2494 = vpow2.f32 %v2279_v49  ;;  %v3166_v1 = vmul.f32 -1.442695, %v342_v35  ;;  %v3168_v24 = vmul.f32 -1.442695, %v343_v22  ;;  %v3177_v49 = vadd.f32 1.0, %v3005_v45 }
  0x6f   : > { %v3156_v44 = vpop.eup %2482  ;;  %2496 = vpow2.f32 %v2280_v27  ;;  %v3170_v6 = vmul.f32 -1.442695, %v344_v52  ;;  %v3174_v12 = vmul.f32 -1.442695, %v345_v33  ;;  %v3185_v27 = vadd.f32 1.0, %v3011_v51  ;;  %6260 = vst [vmem:[#allocation29_spill] sm:$0xff] %v3218_v63 }
  0x70   : > { %v3164_v58 = vpop.eup %2484  ;;  %2498 = vpow2.f32 %v2281_v39  ;;  %v3188_v52 = vadd.f32 1.0, %v3014_v54  ;;  %v3196_v45 = vadd.f32 1.0, %v3020_v60  ;;  %v3207_v54 = vadd.f32 1.0, %v3029_v5  ;;  %6263 = vst [vmem:[#allocation32_spill] sm:$0xff] %v3229_v8  ;;  %v6284_v9 = vld [vmem:[#allocation21_spill] sm:$0xff] }
  0x71   : > { %v3172_v7 = vpop.eup %2486  ;;  %2500 = vpow2.f32 %v2282_v62  ;;  %v3202_v62 = vadd.f32 1.0, %v3026_v2  ;;  %v3213_v33 = vadd.f32 1.0, %v3035_v11  ;;  %v3221_v2 = vadd.f32 1.0, %v3041_v17  ;;  %6274 = vst [vmem:[#allocation43_spill] sm:$0xff] %v3266_v25 }
  0x72   : > { %v3182_v30 = vpop.eup %2488  ;;  %2502 = vpow2.f32 %v2283_v42  ;;  %v3232_v11 = vadd.f32 1.0, %v3050_v28  ;;  %v3240_v17 = vadd.f32 1.0, %v3056_v37  ;;  %v3251_v28 = vadd.f32 1.0, %v3065_v50 }
  0x73   : > { %v3193_v19 = vpop.eup %2490  ;;  %2504 = vpow2.f32 %v2284_v38  ;;  %6261 = vst [vmem:[#allocation30_spill] sm:$0xff] %v3221_v2  ;;  %v3224_v38 = vadd.f32 1.0, %v3044_v20  ;;  %v3243_v20 = vadd.f32 1.0, %v3059_v41  ;;  %v3257_v36 = vadd.f32 1.0, %v3071_v59  ;;  %v6278_v59 = vld [vmem:[#allocation15_spill] sm:$0xff] }
  0x74   : > { %v3204_v51 = vpop.eup %2492  ;;  %2506 = vpow2.f32 %v2285_v26  ;;  %6264 = vst [vmem:[#allocation33_spill] sm:$0xff] %v3232_v11  ;;  %v3235_v26 = vadd.f32 1.0, %v3053_v32  ;;  %v3254_v32 = vadd.f32 1.0, %v3068_v55  ;;  %v3260_v41 = vadd.f32 1.0, %v3074_v0  ;;  %v6276_v55 = vld [vmem:[#allocation14_spill] sm:$0xff]  ;;  %v6280_v0 = vld [vmem:[#allocation16_spill] sm:$0xff] }
  0x75   : > { %v3215_v60 = vpop.eup %2494  ;;  %6262 = vst [vmem:[#allocation31_spill] sm:$0xff] %v3224_v38  ;;  %2508 = vpow2.f32 %v2286_v18  ;;  %v3246_v18 = vadd.f32 1.0, %v3062_v46  ;;  %v3263_v46 = vadd.f32 1.0, %v3077_v4  ;;  %v3269_v50 = vadd.f32 1.0, %v3083_v13  ;;  %v6282_v4 = vld [vmem:[#allocation18_spill] sm:$0xff]  ;;  %v6286_v13 = vld [vmem:[#allocation24_spill] sm:$0xff] }
  0x76   : > { %v3226_v5 = vpop.eup %2496  ;;  %6265 = vst [vmem:[#allocation34_spill] sm:$0xff] %v3235_v26  ;;  %2510 = vpow2.f32 %v2287_v29  ;;  %v3272_v22 = vadd.f32 1.0, %v6276_v55  ;;  %v3275_v39 = vadd.f32 1.0, %v6278_v59  ;;  %v3278_v29 = vadd.f32 1.0, %v6280_v0  ;;  %v6291_v0 = vld [vmem:[#allocation28_spill] sm:$0xff] }
  0x77   : > { %v3237_v14 = vpop.eup %2498  ;;  %6266 = vst [vmem:[#allocation35_spill] sm:$0xff] %v3240_v17  ;;  %2512 = vpow2.f32 %v2288_v31  ;;  %v3281_v31 = vadd.f32 1.0, %v6282_v4  ;;  %v3288_v55 = vadd.f32 1.0, %v6286_v13  ;;  %v3296_v4 = vadd.f32 1.0, %v6291_v0 }
  0x78   : > { %6267 = vst [vmem:[#allocation36_spill] sm:$0xff] %v3243_v20  ;;  %v3248_v23 = vpop.eup %2500  ;;  %2514 = vpow2.f32 %v2289_v34  ;;  %v3284_v34 = vadd.f32 1.0, %v6284_v9  ;;  %v3299_v9 = vadd.f32 1.0, %v3147_v21  ;;  %v3309_v13 = vadd.f32 1.0, %v3156_v44 }
  0x79   : > { %6268 = vst [vmem:[#allocation37_spill] sm:$0xff] %v3246_v18  ;;  %v2503_v37 = vpop.eup %2502  ;;  %2516 = vpow2.f32 %v2290_v61  ;;  %v3316_v21 = vadd.f32 1.0, %v3172_v7  ;;  %v3331_v7 = vadd.f32 1.0, %v3204_v51  ;;  %v795_v17 = vand.u32 2147483648, %v3188_v52 }
  0x7a   : > { %6269 = vst [vmem:[#allocation38_spill] sm:$0xff] %v3251_v28  ;;  %v2505_v35 = vpop.eup %2504  ;;  %2518 = vpow2.f32 %v2291_v40 }
  0x7b   : > { %6270 = vst [vmem:[#allocation39_spill] sm:$0xff] %v3254_v32  ;;  %v2507_v42 = vpop.eup %2506  ;;  %2520 = vpow2.f32 %v3154_v43 }
  0x7c   : > { %6271 = vst [vmem:[#allocation40_spill] sm:$0xff] %v3257_v36  ;;  %v2509_v61 = vpop.eup %2508  ;;  %2522 = vpow2.f32 %v3158_v10  ;;  %v3312_v10 = vadd.f32 1.0, %v3164_v58  ;;  %v6301_v58 = vld [vmem:[#allocation20_spill] sm:$0xff] }
  0x7d   : > { %6272 = vst [vmem:[#allocation41_spill] sm:$0xff] %v3260_v41  ;;  %2524 = vpow2.f32 %v3160_v53  ;;  %vm669_vm2 = vweird.f32 %v6301_v58 }
  0x7e   : > { %6273 = vst [vmem:[#allocation42_spill] sm:$0xff] %v3263_v46  ;;  %2526 = vpow2.f32 %v3162_v56  ;;  %v3328_v56 = vadd.f32 1.0, %v3193_v19 }
  0x7f   : > { %6275 = vst [vmem:[#allocation44_spill] sm:$0xff] %v3269_v50  ;;  %v2511_v50 = vpop.eup %2510 }
  0x80   : > { %6277 = vst [vmem:[#allocation14_spill] sm:$0xff] %v3272_v22  ;;  %v6288_v22 = vld [vmem:[#allocation27_spill] sm:$0xff]  ;;  %v2513_v43 = vpop.eup %2512 }
  0x81   : > { %6279 = vst [vmem:[#allocation15_spill] sm:$0xff] %v3275_v39  ;;  %v3291_v59 = vadd.f32 1.0, %v6288_v22  ;;  %v6290_v39 = vld [vmem:[#allocation17_spill] sm:$0xff]  ;;  %v3306_v22 = vadd.f32 1.0, %v3152_v3  ;;  %v2515_v0 = vpop.eup %2514  ;;  %v3321_v3 = vadd.f32 1.0, %v3182_v30  ;;  %v3338_v30 = vadd.f32 1.0, %v3215_v60 }
  0x82   : > { %6281 = vst [vmem:[#allocation16_spill] sm:$0xff] %v3278_v29  ;;  %v645_v40 = vand.u32 2147483648, %v6290_v39  ;;  %v2517_v53 = vpop.eup %2516  ;;  %2528 = vrcp.f32 %v6290_v39  ;;  %v3351_v60 = vadd.f32 1.0, %v3237_v14  ;;  %v3367_v14 = vadd.f32 1.0, %v2505_v35 }
  0x83   : > { %6283 = vst [vmem:[#allocation18_spill] sm:$0xff] %v3281_v31  ;;  %vm639_vm0 = vweird.f32 %v6290_v39 }
  0x84   : > { %6285 = vst [vmem:[#allocation21_spill] sm:$0xff] %v3284_v34  ;;  %v3302_v34 = vadd.f32 1.0, %v3150_v47  ;;  %v3324_v44 = vor.u32 1.1754944e-38, %v645_v40  ;;  %v6307_v47 = vld [vmem:[#allocation23_spill] sm:$0xff]  ;;  %v6312_v40 = vld [vmem:[#allocation25_spill] sm:$0xff] }
  0x85   : > { %6287 = vst [vmem:[#allocation24_spill] sm:$0xff] %v3288_v55 }
  0x86   : > { %6289 = vst [vmem:[#allocation27_spill] sm:$0xff] %v3291_v59 }
  0x87   : > { %6292 = vst [vmem:[#allocation17_spill] sm:$0xff] %v3296_v4 }
  0x88   : > { %6293 = vst [vmem:[#allocation28_spill] sm:$0xff] %v3299_v9 }
  0x89   : > { %6294 = vst [vmem:[#allocation45_spill] sm:$0xff] %v3302_v34  ;;  %v6299_v34 = vld [vmem:[#allocation19_spill] sm:$0xff] }
  0x8a   : > { %6295 = vst [vmem:[#allocation46_spill] sm:$0xff] %v3306_v22  ;;  %v660_v9 = vand.u32 2147483648, %v6299_v34  ;;  %2530 = vrcp.f32 %v6299_v34  ;;  %vm654_vm1 = vweird.f32 %v6299_v34 }
  0x8b   : > { %6296 = vst [vmem:[#allocation47_spill] sm:$0xff] %v3309_v13  ;;  %v2519_v13 = vpop.eup %2518  ;;  %2532 = vrcp.f32 %v6301_v58 }
  0x8c   : > { %6297 = vst [vmem:[#allocation48_spill] sm:$0xff] %v3312_v10  ;;  %v675_v10 = vand.u32 2147483648, %v6301_v58  ;;  %v3346_v51 = vor.u32 1.1754944e-38, %v660_v9  ;;  %v3361_v9 = vadd.f32 1.0, %v2503_v37 }
  0x8d   : > { %6298 = vst [vmem:[#allocation49_spill] sm:$0xff] %v3316_v21  ;;  %v3335_v21 = vpop.eup %2520 }
  0x8e   : > { %6300 = vst [vmem:[#allocation19_spill] sm:$0xff] %v3321_v3  ;;  %v6305_v3 = vld [vmem:[#allocation22_spill] sm:$0xff]  ;;  %v2523_v19 = vpop.eup %2522 }
  0x8f   : > { %6302 = vst [vmem:[#allocation20_spill] sm:$0xff] %v3328_v56  ;;  %v690_v22 = vand.u32 2147483648, %v6305_v3  ;;  %v3344_v56 = vadd.f32 1.0, %v3226_v5  ;;  %2534 = vrcp.f32 %v6305_v3  ;;  %v2525_v4 = vpop.eup %2524  ;;  %v3359_v5 = vadd.f32 1.0, %v3248_v23 }
  0x90   : > { %6303 = vst [vmem:[#allocation50_spill] sm:$0xff] %v3331_v7  ;;  %v705_v7 = vand.u32 2147483648, %v6307_v47  ;;  %2536 = vrcp.f32 %v6307_v47  ;;  %v2527_v59 = vpop.eup %2526  ;;  %v3376_v23 = vadd.f32 1.0, %v2509_v61  ;;  %v765_v61 = vand.u32 2147483648, %v3180_v15 }
  0x91   : > { %6304 = vst [vmem:[#allocation51_spill] sm:$0xff] %v3338_v30  ;;  %v3353_v30 = vor.u32 1.1754944e-38, %v675_v10  ;;  %2538 = vpow2.f32 %v3166_v1  ;;  %v3364_v55 = vpop.eup %2528  ;;  %v3369_v10 = vor.u32 1.1754944e-38, %v690_v22  ;;  %v3374_v1 = vadd.f32 1.0, %v2507_v42  ;;  %v6317_v22 = vld [vmem:[#allocation26_spill] sm:$0xff] }
  0x92   : > { %6306 = vst [vmem:[#allocation22_spill] sm:$0xff] %v3344_v56  ;;  %2540 = vpow2.f32 %v3168_v24  ;;  %v3372_v31 = vpop.eup %2530  ;;  %v3378_v37 = vor.u32 1.1754944e-38, %v705_v7  ;;  %v3385_v24 = vadd.f32 1.0, %v2513_v43  ;;  %v3392_v42 = vadd.f32 1.0, %v2515_v0 }
  0x93   : > { %6308 = vst [vmem:[#allocation23_spill] sm:$0xff] %v3351_v60  ;;  %v720_v60 = vand.u32 2147483648, %v6312_v40  ;;  %2542 = vrcp.f32 %v6312_v40  ;;  %v3381_v56 = vpop.eup %2532  ;;  %v735_v7 = vand.u32 2147483648, %v6317_v22  ;;  %v3401_v43 = vadd.f32 1.0, %v2519_v13 }
  0x94   : > { %6309 = vst [vmem:[#allocation52_spill] sm:$0xff] %v3359_v5  ;;  %2544 = vrcp.f32 %v6317_v22  ;;  %v750_v0 = vand.u32 2147483648, %v3177_v49  ;;  %v665_v13 = vmul.f32 %v3381_v56, %v6301_v58  ;;  %v3431_v5 = vadd.f32 1.0, %v3335_v21 }
  0x95   : > { %6310 = vst [vmem:[#allocation53_spill] sm:$0xff] %v3361_v9  ;;  %v3383_v9 = vadd.f32 1.0, %v2511_v50  ;;  %2546 = vpow2.f32 %v3170_v6  ;;  %v3399_v50 = vadd.f32 1.0, %v2517_v53  ;;  %v3403_v35 = vor.u32 1.1754944e-38, %v720_v60 }
  0x96   : > { %6311 = vst [vmem:[#allocation54_spill] sm:$0xff] %v3367_v14  ;;  %v3389_v14 = vpop.eup %2534  ;;  %2548 = vpow2.f32 %v3174_v12  ;;  %v635_v6 = vmul.f32 %v3364_v55, %v6290_v39  ;;  %v650_v12 = vmul.f32 %v3372_v31, %v6299_v34  ;;  %v3433_v29 = vadd.f32 1.0, %v2523_v19 }
  0x97   : > { %6313 = vst [vmem:[#allocation25_spill] sm:$0xff] %v3374_v1  ;;  %2550 = vrcp.f32 %v3177_v49  ;;  %v680_v53 = vmul.f32 %v3389_v14, %v6305_v3  ;;  %v3435_v25 = vadd.f32 1.0, %v2525_v4  ;;  %vm684_vm3 = vweird.f32 %v6305_v3 }
  0x98   : > { %6314 = vst [vmem:[#allocation55_spill] sm:$0xff] %v3376_v23  ;;  %v3396_v23 = vpop.eup %2536  ;;  %2552 = vrcp.f32 %v3180_v15  ;;  %v3444_v32 = vor.u32 1.1754944e-38, %v750_v0  ;;  %v651_v19 = vsub.f32 1.0, %v650_v12  ;;  %vm640_vm6 = vweird.f32 %v3364_v55 }
  0x99   : > { %6315 = vst [vmem:[#allocation56_spill] sm:$0xff] %v3383_v9  ;;  %2554 = vrcp.f32 %v3185_v27  ;;  %v636_v9 = vsub.f32 1.0, %v635_v6  ;;  %v681_v4 = vsub.f32 1.0, %v680_v53  ;;  %vm655_vm7 = vweird.f32 %v3372_v31  ;;  %vm3502_vm13 = vmor %vm639_vm0, %vm640_vm6 }
  0x9a   : > { %6316 = vst [vmem:[#allocation57_spill] sm:$0xff] %v3385_v24  ;;  %v2539_v24 = vpop.eup %2538  ;;  %2556 = vrcp.f32 %v3188_v52  ;;  %vm670_vm11 = vweird.f32 %v3381_v56  ;;  %vm685_vm14 = vweird.f32 %v3389_v14  ;;  %v6340_v18 = vand.u32 2147483647, %v6305_v3  ;;  %vm3532_vm0 = vmor %vm654_vm1, %vm655_vm7 }
  0x9b   : > { %6318 = vst [vmem:[#allocation26_spill] sm:$0xff] %v3392_v42  ;;  %v2541_v42 = vpop.eup %2540  ;;  %v3441_v36 = vadd.f32 1.0, %v2539_v24  ;;  %v637_v53 = vmul.f32 %v3364_v55, %v636_v9  ;;  %v682_v9 = vmul.f32 %v3389_v14, %v681_v4  ;;  %2558 = vrcp.f32 %v3191_v16  ;;  %vm3546_vm1 = vmor %vm669_vm2, %vm670_vm11 }
  0x9c   : > { %6319 = vst [vmem:[#allocation58_spill] sm:$0xff] %v3399_v50  ;;  %v3419_v60 = vpop.eup %2542  ;;  %v3424_v50 = vor.u32 1.1754944e-38, %v735_v7  ;;  %v3439_v7 = vadd.f32 1.0, %v2527_v59  ;;  %v3459_v0 = vadd.f32 1.0, %v2541_v42  ;;  %vm3509_vm15 = vcmp.eq.f32.partialorder %v6340_v18, 8.507059e+37  ;;  %vm3556_vm4 = vmor %vm684_vm3, %vm685_vm14 }
  0x9d   : > { %6320 = vst [vmem:[#allocation59_spill] sm:$0xff] %v3401_v43  ;;  %v695_v43 = vmul.f32 %v3396_v23, %v6307_v47  ;;  %v3428_v1 = vpop.eup %2544  ;;  %v710_v59 = vmul.f32 %v3419_v60, %v6312_v40  ;;  %v638_v20 = vadd.f32 %v3364_v55, %v637_v53  ;;  %vm700_vm6 = vweird.f32 %v3396_v23 }
  0x9e   : > { %6321 = vst [vmem:[#allocation60_spill] sm:$0xff] %v3431_v5  ;;  %v2547_v41 = vpop.eup %2546  ;;  %v725_v24 = vmul.f32 %v3428_v1, %v6317_v22  ;;  %vm715_vm5 = vweird.f32 %v3419_v60  ;;  %v683_v11 = vadd.f32 %v3389_v14, %v682_v9  ;;  %2560 = vrcp.f32 %v3196_v45 }
  0x9f   : > { %6322 = vst [vmem:[#allocation61_spill] sm:$0xff] %v3433_v29  ;;  %v3446_v21 = vpop.eup %2548  ;;  %v666_v29 = vsub.f32 1.0, %v665_v13  ;;  %v696_v46 = vsub.f32 1.0, %v695_v43  ;;  %v3461_v12 = vadd.f32 1.0, %v2547_v41  ;;  %v780_v43 = vand.u32 2147483648, %v3185_v27 }
  0xa0   : > { %6323 = vst [vmem:[#allocation62_spill] sm:$0xff] %v3435_v25  ;;  %v3448_v25 = vor.u32 1.1754944e-38, %v765_v61  ;;  %v3450_v5 = vpop.eup %2550  ;;  %v6329_v41 = vand.u32 2147483647, %v6290_v39  ;;  %v652_v61 = vmul.f32 %v3372_v31, %v651_v19  ;;  %v711_v19 = vsub.f32 1.0, %v710_v59 }
  0xa1   : > { %6324 = vst [vmem:[#allocation63_spill] sm:$0xff] %v3439_v7  ;;  %v3457_v6 = vpop.eup %2552  ;;  %v6332_v7 = vand.u32 2147483647, %v6299_v34  ;;  %v726_v4 = vsub.f32 1.0, %v725_v24  ;;  %vm6352_vm2 = vweird.f32 %v6307_v47  ;;  %v6355_v3 = vand.u32 2147483647, %v6312_v40 }
  0xa2   : > { %6325 = vst [vmem:[#allocation64_spill] sm:$0xff] %v3441_v36  ;;  %v3466_v13 = vpop.eup %2554  ;;  %vm3475_vm9 = vcmp.eq.f32.partialorder %v6329_v41, 8.507059e+37  ;;  %v740_v36 = vmul.f32 %v3450_v5, %v3177_v49  ;;  %v6335_v41 = vand.u32 2147483647, %v6301_v58  ;;  %v755_v39 = vmul.f32 %v3457_v6, %v3180_v15  ;;  %vm3568_vm11 = vmor %vm6352_vm2, %vm700_vm6 }
  0xa3   : > { %6326 = vst [vmem:[#allocation65_spill] sm:$0xff] %v3448_v25  ;;  %vm3486_vm10 = vcmp.eq.f32.partialorder %v6332_v7, 8.507059e+37  ;;  %v770_v24 = vmul.f32 %v3466_v13, %v3185_v27  ;;  %v3525_v18 = vpop.eup %2556  ;;  %v653_v26 = vadd.f32 %v3372_v31, %v652_v61  ;;  %v712_v58 = vmul.f32 %v3419_v60, %v711_v19 }
  0xa4   : > { %6327 = vst [vmem:[#allocation66_spill] sm:$0xff] %v3459_v0  ;;  %v667_v0 = vmul.f32 %v3381_v56, %v666_v29  ;;  %vm3493_vm12 = vcmp.eq.f32.partialorder %v6335_v41, 8.507059e+37  ;;  %v697_v29 = vmul.f32 %v3396_v23, %v696_v46  ;;  %v6343_v46 = vand.u32 2147483647, %v6307_v47 }
  0xa5   : > { %6328 = vst [vmem:[#allocation67_spill] sm:$0xff] %v3461_v12  ;;  %v741_v8 = vsub.f32 1.0, %v740_v36  ;;  %v727_v38 = vmul.f32 %v3428_v1, %v726_v4  ;;  %vm3574_vm3 = vcmp.eq.f32.partialorder %v6355_v3, 8.507059e+37  ;;  %v756_v4 = vsub.f32 1.0, %v755_v39 }
  0xa6   : > { %vm3515_vm8 = vcmp.eq.f32.partialorder %v6343_v46, 8.507059e+37  ;;  %v668_v53 = vadd.f32 %v3381_v56, %v667_v0  ;;  %v698_v0 = vadd.f32 %v3396_v23, %v697_v29  ;;  %v6358_v29 = vand.u32 2147483647, %v6317_v22 }
  0xa7   : > { %v771_v2 = vsub.f32 1.0, %v770_v24  ;;  %v785_v47 = vmul.f32 %v3525_v18, %v3188_v52  ;;  %2562 = vrcp.f32 %v3199_v48  ;;  %v3588_v63 = vadd.f32 1.0, %v3446_v21 }
  0xa8   : > { %vm3580_vm14 = vcmp.eq.f32.partialorder %v6358_v29, 8.507059e+37  ;;  %vm730_vm6 = vweird.f32 %v3428_v1  ;;  %v3591_v3 = vor.u32 1.1754944e-38, %v780_v43  ;;  %v3593_v25 = vor.u32 1.1754944e-38, %v795_v17  ;;  %v3595_v29 = vpop.eup %2558 }
  0xa9   : > { %6361 = vst [vmem:[#allocation68_spill] sm:$0xff] %v3588_v63  ;;  %v642_v39 = vsel %vm3502_vm13, %v3364_v55, %v638_v20  ;;  %v657_v24 = vsel %vm3532_vm0, %v3372_v31, %v653_v26  ;;  %v672_v21 = vsel %vm3546_vm1, %v3381_v56, %v668_v53  ;;  %v742_v63 = vmul.f32 %v3450_v5, %v741_v8  ;;  %v3653_v46 = vpop.eup %2560 }
  0xaa   : > { %v6362_v43 = vand.u32 2147483647, %v3177_v49  ;;  %vm789_vm7 = vweird.f32 %v3188_v52  ;;  %v687_v20 = vsel %vm3556_vm4, %v3389_v14, %v683_v11  ;;  %v702_v26 = vsel %vm3568_vm11, %v3396_v23, %v698_v0  ;;  %v6397_v8 = vld [vmem:[#allocation65_spill] sm:$0xff] }
  0xab   : > { %v713_v31 = vadd.f32 %v3419_v60, %v712_v58  ;;  %vm6365_vm13 = vweird.f32 %v6312_v40  ;;  %v728_v55 = vadd.f32 %v3428_v1, %v727_v38  ;;  %vm6368_vm4 = vweird.f32 %v6317_v22  ;;  %v6398_v22 = vld [vmem:[#allocation29_spill] sm:$0xff] }
  0xac   : > { %vm3609_vm2 = vcmp.eq.f32.partialorder %v6362_v43, 8.507059e+37  ;;  %vm3625_vm0 = vmor %vm6365_vm13, %vm715_vm5  ;;  %vm745_vm11 = vweird.f32 %v3450_v5  ;;  %v757_v56 = vmul.f32 %v3457_v6, %v756_v4  ;;  %v6371_v40 = vand.u32 2147483647, %v3180_v15 }
  0xad   : > { %vm3634_vm1 = vmor %vm6368_vm4, %vm730_vm6  ;;  %v772_v38 = vmul.f32 %v3466_v13, %v771_v2  ;;  %v6374_v23 = vand.u32 2147483647, %v3185_v27  ;;  %v786_v7 = vsub.f32 1.0, %v785_v47  ;;  %v3658_v53 = vsel %vm3475_vm9, %v3324_v44, %v642_v39  ;;  %v3664_v2 = vpop.eup %2562 }
  0xae   : > { %vm3642_vm5 = vcmp.eq.f32.partialorder %v6371_v40, 8.507059e+37  ;;  %vm760_vm6 = vweird.f32 %v3457_v6  ;;  %v800_v34 = vmul.f32 %v3595_v29, %v3191_v16  ;;  %2564 = vrcp.f32 %v3202_v62 }
  0xaf   : > { %vm3649_vm13 = vcmp.eq.f32.partialorder %v6374_v23, 8.507059e+37  ;;  %v3669_v61 = vsel %vm3486_vm10, %v3346_v51, %v657_v24  ;;  %v3674_v12 = vsel %vm3493_vm12, %v3353_v30, %v672_v21  ;;  %v743_v44 = vadd.f32 %v3450_v5, %v742_v63  ;;  %v6403_v30 = vld [vmem:[#allocation30_spill] sm:$0xff] }
  0xb0   : > { %6377 = vst [vmem:[#allocation69_spill] sm:$0xff] %v3674_v12  ;;  %vm775_vm9 = vweird.f32 %v3466_v13  ;;  %v3681_v0 = vsel %vm3509_vm15, %v3369_v10, %v687_v20  ;;  %v3686_v28 = vsel %vm3515_vm8, %v3378_v37, %v702_v26  ;;  %v717_v51 = vsel %vm3625_vm0, %v3419_v60, %v713_v31 }
  0xb1   : > { %6378 = vst [vmem:[#allocation70_spill] sm:$0xff] %v3681_v0  ;;  %v732_v63 = vsel %vm3634_vm1, %v3428_v1, %v728_v55  ;;  %vm6380_vm10 = vweird.f32 %v3177_v49  ;;  %v758_v10 = vadd.f32 %v3457_v6, %v757_v56  ;;  %vm6383_vm8 = vweird.f32 %v3180_v15 }
  0xb2   : > { %6379 = vst [vmem:[#allocation71_spill] sm:$0xff] %v3686_v28  ;;  %vm3698_vm12 = vmor %vm6380_vm10, %vm745_vm11  ;;  %v773_v60 = vadd.f32 %v3466_v13, %v772_v38  ;;  %v787_v1 = vmul.f32 %v3525_v18, %v786_v7  ;;  %v6386_v42 = vand.u32 2147483647, %v3188_v52  ;;  %2566 = vrcp.f32 %v3207_v54 }
  0xb3   : > { %vm3705_vm15 = vmor %vm6383_vm8, %vm760_vm6  ;;  %vm6389_vm4 = vweird.f32 %v3185_v27  ;;  %v801_v41 = vsub.f32 1.0, %v800_v34  ;;  %v815_v59 = vmul.f32 %v3653_v46, %v3196_v45  ;;  %v830_v58 = vmul.f32 %v3664_v2, %v3199_v48 }
  0xb4   : > { %vm3713_vm0 = vcmp.eq.f32.partialorder %v6386_v42, 8.507059e+37  ;;  %vm3720_vm1 = vmor %vm6389_vm4, %vm775_vm9  ;;  %2568 = vrcp.f32 %v3210_v57  ;;  %v747_v36 = vsel %vm3698_vm12, %v3450_v5, %v743_v44  ;;  %vm790_vm11 = vweird.f32 %v3525_v18  ;;  %v3735_v47 = vpop.eup %2564 }
  0xb5   : > { %v808_v27 = vand.u32 2147483647, %v3191_v16  ;;  %v810_v4 = vand.u32 2147483648, %v3191_v16  ;;  %v3740_v39 = vsel %vm3574_vm3, %v3403_v35, %v717_v51  ;;  %v3745_v24 = vsel %vm3580_vm14, %v3424_v50, %v732_v63  ;;  %vm3764_vm3 = vmor %vm789_vm7, %vm790_vm11 }
  0xb6   : > { %6392 = vst [vmem:[#allocation72_spill] sm:$0xff] %v3740_v39  ;;  %vm804_vm6 = vweird.f32 %v3191_v16  ;;  %vm819_vm9 = vweird.f32 %v3196_v45  ;;  %v762_v5 = vsel %vm3705_vm15, %v3457_v6, %v758_v10  ;;  %v777_v21 = vsel %vm3720_vm1, %v3466_v13, %v773_v60 }
  0xb7   : > { %v788_v35 = vadd.f32 %v3525_v18, %v787_v1  ;;  %v825_v9 = vand.u32 2147483648, %v3196_v45  ;;  %v3760_v50 = vsel %vm3609_vm2, %v3444_v32, %v747_v36  ;;  %v802_v6 = vmul.f32 %v3595_v29, %v801_v41 }
  0xb8   : > { %v816_v43 = vsub.f32 1.0, %v815_v59  ;;  %v831_v20 = vsub.f32 1.0, %v830_v58  ;;  %v3769_v13 = vpop.eup %2566  ;;  %vm3771_vm14 = vcmp.eq.f32.partialorder %v808_v27, 8.507059e+37  ;;  %v811_v31 = vor.u32 1.1754944e-38, %v810_v4 }
  0xb9   : > { %v823_v32 = vand.u32 2147483647, %v3196_v45  ;;  %v845_v52 = vmul.f32 %v3735_v47, %v3202_v62  ;;  %2570 = vrcp.f32 %v3213_v33  ;;  %v3784_v55 = vsel %vm3642_vm5, %v6397_v8, %v762_v5 }
  0xba   : > { %v3779_v17 = vpop.eup %2568  ;;  %v3789_v11 = vsel %vm3649_vm13, %v3591_v3, %v777_v21  ;;  %vm805_vm7 = vweird.f32 %v3595_v29  ;;  %vm834_vm2 = vweird.f32 %v3199_v48  ;;  %v792_v56 = vsel %vm3764_vm3, %v3525_v18, %v788_v35  ;;  %v6412_v35 = vld [vmem:[#allocation31_spill] sm:$0xff] }
  0xbb   : > { %v826_v40 = vor.u32 1.1754944e-38, %v825_v9  ;;  %v838_v38 = vand.u32 2147483647, %v3199_v48  ;;  %v840_v14 = vand.u32 2147483648, %v3199_v48  ;;  %v803_v23 = vadd.f32 %v3595_v29, %v802_v6  ;;  %vm3804_vm5 = vmor %vm804_vm6, %vm805_vm7 }
  0xbc   : > { %v817_v7 = vmul.f32 %v3653_v46, %v816_v43  ;;  %v832_v3 = vmul.f32 %v3664_v2, %v831_v20  ;;  %2572 = vrcp.f32 %v6398_v22  ;;  %vm3808_vm13 = vcmp.eq.f32.partialorder %v823_v32, 8.507059e+37 }
  0xbd   : > { %v846_v44 = vsub.f32 1.0, %v845_v52  ;;  %v860_v51 = vmul.f32 %v3769_v13, %v3207_v54  ;;  %v875_v63 = vmul.f32 %v3779_v17, %v3210_v57  ;;  %2574 = vrcp.f32 %v6403_v30 }
  0xbe   : > { %v3820_v16 = vsel %vm3713_vm0, %v3593_v25, %v792_v56  ;;  %vm820_vm10 = vweird.f32 %v3653_v46  ;;  %v853_v10 = vand.u32 2147483647, %v3202_v62  ;;  %v855_v37 = vand.u32 2147483648, %v3202_v62 }
  0xbf   : > { %v3825_v60 = vpop.eup %2570  ;;  %vm835_vm12 = vweird.f32 %v3664_v2  ;;  %vm3828_vm8 = vcmp.eq.f32.partialorder %v838_v38, 8.507059e+37  ;;  %v841_v42 = vor.u32 1.1754944e-38, %v840_v14  ;;  %vm849_vm15 = vweird.f32 %v3202_v62  ;;  %vm3841_vm4 = vmor %vm819_vm9, %vm820_vm10  ;;  %v6417_v14 = vld [vmem:[#allocation32_spill] sm:$0xff] }
  0xc0   : > { %v807_v25 = vsel %vm3804_vm5, %v3595_v29, %v803_v23  ;;  %v818_v49 = vadd.f32 %v3653_v46, %v817_v7  ;;  %vm864_vm0 = vweird.f32 %v3207_v54  ;;  %v868_v15 = vand.u32 2147483647, %v3207_v54  ;;  %vm3851_vm1 = vmor %vm834_vm2, %vm835_vm12 }
  0xc1   : > { %v833_v59 = vadd.f32 %v3664_v2, %v832_v3  ;;  %v847_v58 = vmul.f32 %v3735_v47, %v846_v44  ;;  %v861_v36 = vsub.f32 1.0, %v860_v51  ;;  %v876_v27 = vsub.f32 1.0, %v875_v63 }
  0xc2   : > { %v3847_v4 = vpop.eup %2572  ;;  %vm3855_vm11 = vcmp.eq.f32.partialorder %v853_v10, 8.507059e+37  ;;  %v856_v5 = vor.u32 1.1754944e-38, %v855_v37  ;;  %v890_v21 = vmul.f32 %v3825_v60, %v3213_v33  ;;  %2576 = vrcp.f32 %v6412_v35 }
  0xc3   : > { %v3862_v9 = vpop.eup %2574  ;;  %vm850_vm6 = vweird.f32 %v3735_v47  ;;  %v870_v48 = vand.u32 2147483648, %v3207_v54  ;;  %vm879_vm9 = vweird.f32 %v3210_v57  ;;  %v883_v19 = vand.u32 2147483647, %v3210_v57 }
  0xc4   : > { %v3870_v6 = vsel %vm3771_vm14, %v811_v31, %v807_v25  ;;  %v822_v43 = vsel %vm3841_vm4, %v3653_v46, %v818_v49  ;;  %vm865_vm3 = vweird.f32 %v3769_v13  ;;  %v885_v20 = vand.u32 2147483648, %v3210_v57  ;;  %vm3889_vm14 = vmor %vm849_vm15, %vm850_vm6  ;;  %v6425_v49 = vld [vmem:[#allocation33_spill] sm:$0xff] }
  0xc5   : > { %v837_v32 = vsel %vm3851_vm1, %v3664_v2, %v833_v59  ;;  %v848_v52 = vadd.f32 %v3735_v47, %v847_v58  ;;  %v862_v8 = vmul.f32 %v3769_v13, %v861_v36  ;;  %vm3882_vm7 = vcmp.eq.f32.partialorder %v868_v15, 8.507059e+37 }
  0xc6   : > { %v877_v31 = vmul.f32 %v3779_v17, %v876_v27  ;;  %v891_v56 = vsub.f32 1.0, %v890_v21  ;;  %v905_v2 = vmul.f32 %v3847_v4, %v6398_v22  ;;  %v920_v38 = vmul.f32 %v3862_v9, %v6403_v30 }
  0xc7   : > { %2578 = vrcp.f32 %v6417_v14  ;;  %v871_v23 = vor.u32 1.1754944e-38, %v870_v48  ;;  %vm880_vm2 = vweird.f32 %v3779_v17  ;;  %vm3899_vm5 = vcmp.eq.f32.partialorder %v883_v19, 8.507059e+37 }
  0xc8   : > { %v898_v62 = vand.u32 2147483647, %v3213_v33  ;;  %v3904_v3 = vpop.eup %2576  ;;  %v3908_v34 = vsel %vm3808_vm13, %v826_v40, %v822_v43  ;;  %v886_v44 = vor.u32 1.1754944e-38, %v885_v20  ;;  %vm894_vm10 = vweird.f32 %v3213_v33  ;;  %vm3924_vm13 = vmor %vm864_vm0, %vm865_vm3  ;;  %v6428_v20 = vld [vmem:[#allocation34_spill] sm:$0xff] }
  0xc9   : > { %v900_v51 = vand.u32 2147483648, %v3213_v33  ;;  %v3914_v63 = vsel %vm3828_vm8, %v841_v42, %v837_v32  ;;  %v852_v10 = vsel %vm3889_vm14, %v3735_v47, %v848_v52  ;;  %v863_v37 = vadd.f32 %v3769_v13, %v862_v8  ;;  %vm3931_vm12 = vmor %vm879_vm9, %vm880_vm2  ;;  %v6433_v52 = vld [vmem:[#allocation35_spill] sm:$0xff] }
  0xca   : > { %6420 = vst [vmem:[#allocation65_spill] sm:$0xff] %v3914_v63  ;;  %v878_v18 = vadd.f32 %v3779_v17, %v877_v31  ;;  %v892_v47 = vmul.f32 %v3825_v60, %v891_v56  ;;  %v906_v42 = vsub.f32 1.0, %v905_v2  ;;  %v921_v25 = vsub.f32 1.0, %v920_v38 }
  0xcb   : > { %2580 = vrcp.f32 %v6425_v49  ;;  %vm3937_vm8 = vcmp.eq.f32.partialorder %v898_v62, 8.507059e+37  ;;  %v913_v15 = vand.u32 2147483647, %v6398_v22  ;;  %v915_v41 = vand.u32 2147483648, %v6398_v22 }
  0xcc   : > { %v935_v57 = vmul.f32 %v3904_v3, %v6412_v35  ;;  %vm895_vm15 = vweird.f32 %v3825_v60  ;;  %v901_v58 = vor.u32 1.1754944e-38, %v900_v51  ;;  %vm909_vm0 = vweird.f32 %v6398_v22 }
  0xcd   : > { %v3945_v59 = vpop.eup %2578  ;;  %vm924_vm4 = vweird.f32 %v6403_v30  ;;  %v3952_v36 = vsel %vm3855_vm11, %v856_v5, %v852_v10  ;;  %v867_v27 = vsel %vm3924_vm13, %v3769_v13, %v863_v37  ;;  %v882_v29 = vsel %vm3931_vm12, %v3779_v17, %v878_v18  ;;  %vm3967_vm1 = vmor %vm894_vm10, %vm895_vm15  ;;  %v6440_v37 = vld [vmem:[#allocation36_spill] sm:$0xff]  ;;  %v6478_v18 = vld [vmem:[#allocation43_spill] sm:$0xff] }
  0xce   : > { %v928_v21 = vand.u32 2147483647, %v6403_v30  ;;  %v893_v48 = vadd.f32 %v3825_v60, %v892_v47  ;;  %v907_v19 = vmul.f32 %v3847_v4, %v906_v42  ;;  %v922_v43 = vmul.f32 %v3862_v9, %v921_v25  ;;  %v6445_v47 = vld [vmem:[#allocation37_spill] sm:$0xff] }
  0xcf   : > { %2582 = vrcp.f32 %v6428_v20  ;;  %vm3971_vm11 = vcmp.eq.f32.partialorder %v913_v15, 8.507059e+37  ;;  %v916_v17 = vor.u32 1.1754944e-38, %v915_v41  ;;  %v936_v5 = vsub.f32 1.0, %v935_v57 }
  0xd0   : > { %v950_v32 = vmul.f32 %v3945_v59, %v6417_v14  ;;  %2584 = vrcp.f32 %v6433_v52  ;;  %v3982_v33 = vsel %vm3882_vm7, %v871_v23, %v867_v27  ;;  %vm910_vm6 = vweird.f32 %v3847_v4 }
  0xd1   : > { %v3978_v8 = vpop.eup %2580  ;;  %6434 = vst [vmem:[#allocation29_spill] sm:$0xff] %v3982_v33  ;;  %v930_v31 = vand.u32 2147483648, %v6403_v30  ;;  %v943_v46 = vand.u32 2147483647, %v6412_v35  ;;  %v3989_v56 = vsel %vm3899_vm5, %v886_v44, %v882_v29  ;;  %vm925_vm9 = vweird.f32 %v3862_v9  ;;  %vm4005_vm7 = vmor %vm909_vm0, %vm910_vm6 }
  0xd2   : > { %6435 = vst [vmem:[#allocation30_spill] sm:$0xff] %v3989_v56  ;;  %vm3992_vm3 = vcmp.eq.f32.partialorder %v928_v21, 8.507059e+37  ;;  %vm939_vm14 = vweird.f32 %v6412_v35  ;;  %v897_v26 = vsel %vm3967_vm1, %v3825_v60, %v893_v48  ;;  %v908_v38 = vadd.f32 %v3847_v4, %v907_v19  ;;  %vm4017_vm2 = vmor %vm924_vm4, %vm925_vm9 }
  0xd3   : > { %v923_v23 = vadd.f32 %v3862_v9, %v922_v43  ;;  %v945_v7 = vand.u32 2147483648, %v6412_v35  ;;  %v937_v44 = vmul.f32 %v3904_v3, %v936_v5  ;;  %v951_v51 = vsub.f32 1.0, %v950_v32  ;;  %v6451_v43 = vld [vmem:[#allocation38_spill] sm:$0xff] }
  0xd4   : > { %v965_v10 = vmul.f32 %v3978_v8, %v6425_v49  ;;  %2586 = vrcp.f32 %v6440_v37  ;;  %v931_v22 = vor.u32 1.1754944e-38, %v930_v31  ;;  %vm4021_vm5 = vcmp.eq.f32.partialorder %v943_v46, 8.507059e+37 }
  0xd5   : > { %v4013_v60 = vpop.eup %2582  ;;  %v958_v1 = vand.u32 2147483647, %v6417_v14  ;;  %2588 = vrcp.f32 %v6445_v47  ;;  %v4031_v25 = vsel %vm3937_vm8, %v901_v58, %v897_v26  ;;  %vm940_vm10 = vweird.f32 %v3904_v3 }
  0xd6   : > { %v4027_v42 = vpop.eup %2584  ;;  %6446 = vst [vmem:[#allocation31_spill] sm:$0xff] %v4031_v25  ;;  %vm954_vm13 = vweird.f32 %v6417_v14  ;;  %v960_v30 = vand.u32 2147483648, %v6417_v14  ;;  %v912_v15 = vsel %vm4005_vm7, %v3847_v4, %v908_v38  ;;  %v946_v41 = vor.u32 1.1754944e-38, %v945_v7  ;;  %vm4048_vm12 = vmor %vm939_vm14, %vm940_vm10 }
  0xd7   : > { %v973_v57 = vand.u32 2147483647, %v6425_v49  ;;  %v975_v27 = vand.u32 2147483648, %v6425_v49  ;;  %v927_v54 = vsel %vm4017_vm2, %v3862_v9, %v923_v23  ;;  %v938_v58 = vadd.f32 %v3904_v3, %v937_v44 }
  0xd8   : > { %v952_v29 = vmul.f32 %v3945_v59, %v951_v51  ;;  %v966_v21 = vsub.f32 1.0, %v965_v10  ;;  %vm4052_vm8 = vcmp.eq.f32.partialorder %v958_v1, 8.507059e+37  ;;  %v980_v19 = vmul.f32 %v4013_v60, %v6428_v20  ;;  %v6458_v51 = vld [vmem:[#allocation39_spill] sm:$0xff] }
  0xd9   : > { %v995_v9 = vmul.f32 %v4027_v42, %v6433_v52  ;;  %2590 = vrcp.f32 %v6451_v43  ;;  %vm955_vm15 = vweird.f32 %v3945_v59  ;;  %v961_v35 = vor.u32 1.1754944e-38, %v960_v30 }
  0xda   : > { %v4061_v45 = vpop.eup %2586  ;;  %vm969_vm0 = vweird.f32 %v6425_v49  ;;  %v990_v5 = vand.u32 2147483648, %v6428_v20  ;;  %v4070_v31 = vsel %vm3971_vm11, %v916_v17, %v912_v15  ;;  %v4074_v46 = vsel %vm3992_vm3, %v931_v22, %v927_v54  ;;  %vm4089_vm11 = vmor %vm954_vm13, %vm955_vm15 }
  0xdb   : > { %v4066_v32 = vpop.eup %2588  ;;  %6452 = vst [vmem:[#allocation32_spill] sm:$0xff] %v4070_v31  ;;  %v976_v26 = vor.u32 1.1754944e-38, %v975_v27  ;;  %vm984_vm4 = vweird.f32 %v6428_v20  ;;  %v942_v38 = vsel %vm4048_vm12, %v3904_v3, %v938_v58  ;;  %v953_v23 = vadd.f32 %v3945_v59, %v952_v29 }
  0xdc   : > { %6453 = vst [vmem:[#allocation33_spill] sm:$0xff] %v4074_v46  ;;  %v967_v7 = vmul.f32 %v3978_v8, %v966_v21  ;;  %vm4082_vm1 = vcmp.eq.f32.partialorder %v973_v57, 8.507059e+37  ;;  %v988_v13 = vand.u32 2147483647, %v6428_v20  ;;  %v981_v2 = vsub.f32 1.0, %v980_v19  ;;  %v6463_v21 = vld [vmem:[#allocation40_spill] sm:$0xff] }
  0xdd   : > { %v996_v44 = vsub.f32 1.0, %v995_v9  ;;  %v1010_v3 = vmul.f32 %v4061_v45, %v6440_v37  ;;  %2592 = vrcp.f32 %v6458_v51  ;;  %vm970_vm6 = vweird.f32 %v3978_v8  ;;  %v6464_v19 = vld [vmem:[#allocation41_spill] sm:$0xff] }
  0xde   : > { %v4097_v10 = vor.u32 1.1754944e-38, %v990_v5  ;;  %vm999_vm9 = vweird.f32 %v6433_v52  ;;  %v1025_v14 = vmul.f32 %v4066_v32, %v6445_v47  ;;  %v4106_v22 = vsel %vm4021_vm5, %v946_v41, %v942_v38  ;;  %vm4119_vm14 = vmor %vm969_vm0, %vm970_vm6 }
  0xdf   : > { %v4102_v40 = vpop.eup %2590  ;;  %v1003_v1 = vand.u32 2147483647, %v6433_v52  ;;  %v1005_v30 = vand.u32 2147483648, %v6433_v52  ;;  %vm1014_vm3 = vweird.f32 %v6440_v37  ;;  %v957_v15 = vsel %vm4089_vm11, %v3945_v59, %v953_v23 }
  0xe0   : > { %v968_v57 = vadd.f32 %v3978_v8, %v967_v7  ;;  %v1018_v27 = vand.u32 2147483647, %v6440_v37  ;;  %v1020_v54 = vand.u32 2147483648, %v6440_v37  ;;  %v982_v41 = vmul.f32 %v4013_v60, %v981_v2 }
  0xe1   : > { %vm4124_vm7 = vcmp.eq.f32.partialorder %v988_v13, 8.507059e+37  ;;  %v997_v59 = vmul.f32 %v4027_v42, %v996_v44  ;;  %v1011_v29 = vsub.f32 1.0, %v1010_v3  ;;  %2594 = vrcp.f32 %v6463_v21 }
  0xe2   : > { %vm985_vm2 = vweird.f32 %v4013_v60  ;;  %v1026_v48 = vsub.f32 1.0, %v1025_v14  ;;  %v1040_v49 = vmul.f32 %v4102_v40, %v6451_v43  ;;  %2596 = vrcp.f32 %v6464_v19 }
  0xe3   : > { %v4134_v9 = vpop.eup %2592  ;;  %v4138_v5 = vsel %vm4052_vm8, %v961_v35, %v957_v15  ;;  %vm4140_vm5 = vcmp.eq.f32.partialorder %v1003_v1, 8.507059e+37  ;;  %v1006_v23 = vor.u32 1.1754944e-38, %v1005_v30  ;;  %v1033_v7 = vand.u32 2147483647, %v6445_v47  ;;  %vm4162_vm8 = vmor %vm984_vm4, %vm985_vm2  ;;  %v6472_v15 = vld [vmem:[#allocation42_spill] sm:$0xff] }
  0xe4   : > { %6465 = vst [vmem:[#allocation34_spill] sm:$0xff] %v4138_v5  ;;  %v972_v13 = vsel %vm4119_vm14, %v3978_v8, %v968_v57  ;;  %vm1000_vm10 = vweird.f32 %v4027_v42  ;;  %v1021_v17 = vor.u32 1.1754944e-38, %v1020_v54  ;;  %v1035_v2 = vand.u32 2147483648, %v6445_v47 }
  0xe5   : > { %v983_v4 = vadd.f32 %v4013_v60, %v982_v41  ;;  %v998_v35 = vadd.f32 %v4027_v42, %v997_v59  ;;  %v1012_v44 = vmul.f32 %v4061_v45, %v1011_v29  ;;  %vm4153_vm13 = vcmp.eq.f32.partialorder %v1018_v27, 8.507059e+37  ;;  %vm4180_vm15 = vmor %vm999_vm9, %vm1000_vm10 }
  0xe6   : > { %vm1029_vm12 = vweird.f32 %v6445_v47  ;;  %v1027_v14 = vmul.f32 %v4066_v32, %v1026_v48  ;;  %v1041_v1 = vsub.f32 1.0, %v1040_v49  ;;  %v1055_v30 = vmul.f32 %v4134_v9, %v6458_v51 }
  0xe7   : > { %2598 = vrcp.f32 %v6472_v15  ;;  %v4170_v57 = vpop.eup %2594  ;;  %v4174_v27 = vsel %vm4082_vm1, %v976_v26, %v972_v13  ;;  %vm1015_vm0 = vweird.f32 %v4061_v45  ;;  %vm4185_vm4 = vcmp.eq.f32.partialorder %v1033_v7, 8.507059e+37 }
  0xe8   : > { %6473 = vst [vmem:[#allocation35_spill] sm:$0xff] %v4174_v27  ;;  %2600 = vrcp.f32 %v6478_v18  ;;  %v4190_v41 = vpop.eup %2596  ;;  %vm1030_vm1 = vweird.f32 %v4066_v32  ;;  %v1036_v26 = vor.u32 1.1754944e-38, %v1035_v2  ;;  %v1048_v62 = vand.u32 2147483647, %v6451_v43  ;;  %vm4206_vm6 = vmor %vm1014_vm3, %vm1015_vm0 }
  0xe9   : > { %v1050_v52 = vand.u32 2147483648, %v6451_v43  ;;  %v987_v59 = vsel %vm4162_vm8, %v4013_v60, %v983_v4  ;;  %v1013_v29 = vadd.f32 %v4061_v45, %v1012_v44  ;;  %vm1044_vm11 = vweird.f32 %v6451_v43  ;;  %vm4214_vm9 = vmor %vm1029_vm12, %vm1030_vm1 }
  0xea   : > { %v1065_v48 = vand.u32 2147483648, %v6458_v51  ;;  %v1002_v49 = vsel %vm4180_vm15, %v4027_v42, %v998_v35  ;;  %v1028_v13 = vadd.f32 %v4066_v32, %v1027_v14  ;;  %v1042_v60 = vmul.f32 %v4102_v40, %v1041_v1  ;;  %v6483_v35 = vld [vmem:[#allocation44_spill] sm:$0xff] }
  0xeb   : > { %v1056_v2 = vsub.f32 1.0, %v1055_v30  ;;  %v1063_v44 = vand.u32 2147483647, %v6458_v51  ;;  %v1070_v37 = vmul.f32 %v4170_v57, %v6463_v21  ;;  %v1085_v42 = vmul.f32 %v4190_v41, %v6464_v19 }
  0xec   : > { %2602 = vrcp.f32 %v6483_v35  ;;  %v4229_v47 = vsel %vm4124_vm7, %v4097_v10, %v987_v59  ;;  %vm1045_vm3 = vweird.f32 %v4102_v40  ;;  %vm4232_vm14 = vcmp.eq.f32.partialorder %v1048_v62, 8.507059e+37 }
  0xed   : > { %v4224_v8 = vpop.eup %2598  ;;  %6484 = vst [vmem:[#allocation36_spill] sm:$0xff] %v4229_v47  ;;  %v1051_v1 = vor.u32 1.1754944e-38, %v1050_v52  ;;  %v4240_v20 = vsel %vm4140_vm5, %v1006_v23, %v1002_v49  ;;  %v1017_v27 = vsel %vm4206_vm6, %v4061_v45, %v1013_v29  ;;  %vm1059_vm7 = vweird.f32 %v6458_v51  ;;  %vm4254_vm5 = vmor %vm1044_vm11, %vm1045_vm3  ;;  %v6492_v29 = vld [vmem:[#allocation14_spill] sm:$0xff] }
  0xee   : > { %v4236_v30 = vpop.eup %2600  ;;  %6487 = vst [vmem:[#allocation37_spill] sm:$0xff] %v4240_v20  ;;  %v1066_v10 = vor.u32 1.1754944e-38, %v1065_v48  ;;  %v1032_v58 = vsel %vm4214_vm9, %v4066_v32, %v1028_v13  ;;  %v1043_v62 = vadd.f32 %v4102_v40, %v1042_v60  ;;  %v1057_v52 = vmul.f32 %v4134_v9, %v1056_v2 }
  0xef   : > { %vm1074_vm2 = vweird.f32 %v6463_v21  ;;  %vm4258_vm10 = vcmp.eq.f32.partialorder %v1063_v44, 8.507059e+37  ;;  %v1071_v23 = vsub.f32 1.0, %v1070_v37  ;;  %v1086_v59 = vsub.f32 1.0, %v1085_v42 }
  0xf0   : > { %v1100_v32 = vmul.f32 %v4224_v8, %v6472_v15  ;;  %2604 = vrcp.f32 %v6492_v29  ;;  %v4267_v48 = vsel %vm4153_vm13, %v1021_v17, %v1017_v27  ;;  %v1078_v43 = vand.u32 2147483647, %v6463_v21 }
  0xf1   : > { %6493 = vst [vmem:[#allocation38_spill] sm:$0xff] %v4267_v48  ;;  %v1080_v49 = vand.u32 2147483648, %v6463_v21  ;;  %v1115_v7 = vmul.f32 %v4236_v30, %v6478_v18  ;;  %v4277_v60 = vsel %vm4185_vm4, %v1036_v26, %v1032_v58  ;;  %vm1060_vm12 = vweird.f32 %v4134_v9 }
  0xf2   : > { %v4273_v13 = vpop.eup %2602  ;;  %6494 = vst [vmem:[#allocation39_spill] sm:$0xff] %v4277_v60  ;;  %vm1089_vm8 = vweird.f32 %v6464_v19  ;;  %v1093_v17 = vand.u32 2147483647, %v6464_v19  ;;  %v1047_v3 = vsel %vm4254_vm5, %v4102_v40, %v1043_v62  ;;  %v1095_v27 = vand.u32 2147483648, %v6464_v19  ;;  %vm4293_vm13 = vmor %vm1059_vm7, %vm1060_vm12  ;;  %v6511_v60 = vld [vmem:[#allocation18_spill] sm:$0xff] }
  0xf3   : > { %v1108_v2 = vand.u32 2147483647, %v6472_v15  ;;  %v1110_v4 = vand.u32 2147483648, %v6472_v15  ;;  %v1058_v54 = vadd.f32 %v4134_v9, %v1057_v52  ;;  %v1072_v26 = vmul.f32 %v4170_v57, %v1071_v23  ;;  %v6499_v52 = vld [vmem:[#allocation15_spill] sm:$0xff] }
  0xf4   : > { %v1087_v44 = vmul.f32 %v4190_v41, %v1086_v59  ;;  %v1101_v37 = vsub.f32 1.0, %v1100_v32  ;;  %vm1075_vm15 = vweird.f32 %v4170_v57  ;;  %vm4298_vm0 = vcmp.eq.f32.partialorder %v1078_v43, 8.507059e+37 }
  0xf5   : > { %v1116_v58 = vsub.f32 1.0, %v1115_v7  ;;  %v1130_v62 = vmul.f32 %v4273_v13, %v6483_v35  ;;  %2606 = vrcp.f32 %v6499_v52  ;;  %v1081_v23 = vor.u32 1.1754944e-38, %v1080_v49  ;;  %vm4326_vm9 = vmor %vm1074_vm2, %vm1075_vm15 }
  0xf6   : > { %v4305_v38 = vpop.eup %2604  ;;  %vm1090_vm4 = vweird.f32 %v4190_v41  ;;  %vm4308_vm1 = vcmp.eq.f32.partialorder %v1093_v17, 8.507059e+37  ;;  %vm1104_vm11 = vweird.f32 %v6472_v15  ;;  %v4315_v59 = vsel %vm4232_vm14, %v1051_v1, %v1047_v3 }
  0xf7   : > { %6502 = vst [vmem:[#allocation40_spill] sm:$0xff] %v4315_v59  ;;  %v1096_v32 = vor.u32 1.1754944e-38, %v1095_v27  ;;  %v1111_v43 = vor.u32 1.1754944e-38, %v1110_v4  ;;  %vm1119_vm6 = vweird.f32 %v6478_v18  ;;  %v1062_v49 = vsel %vm4293_vm13, %v4134_v9, %v1058_v54  ;;  %vm4334_vm3 = vmor %vm1089_vm8, %vm1090_vm4  ;;  %v6509_v54 = vld [vmem:[#allocation16_spill] sm:$0xff] }
  0xf8   : > { %v1073_v7 = vadd.f32 %v4170_v57, %v1072_v26  ;;  %v1088_v14 = vadd.f32 %v4190_v41, %v1087_v44  ;;  %v1102_v1 = vmul.f32 %v4224_v8, %v1101_v37  ;;  %vm4338_vm14 = vcmp.eq.f32.partialorder %v1108_v2, 8.507059e+37 }
  0xf9   : > { %v1117_v21 = vmul.f32 %v4236_v30, %v1116_v58  ;;  %v1131_v27 = vsub.f32 1.0, %v1130_v62  ;;  %v1145_v4 = vmul.f32 %v4305_v38, %v6492_v29  ;;  %2608 = vrcp.f32 %v6509_v54 }
  0xfa   : > { %vm1105_vm7 = vweird.f32 %v4224_v8  ;;  %v1123_v19 = vand.u32 2147483647, %v6478_v18  ;;  %v1125_v26 = vand.u32 2147483648, %v6478_v18  ;;  %vm1134_vm2 = vweird.f32 %v6483_v35 }
  0xfb   : > { %v4350_v2 = vpop.eup %2606  ;;  %v4354_v44 = vsel %vm4258_vm10, %v1066_v10, %v1062_v49  ;;  %vm1120_vm5 = vweird.f32 %v4236_v30  ;;  %v1138_v37 = vand.u32 2147483647, %v6483_v35  ;;  %v1140_v42 = vand.u32 2147483648, %v6483_v35  ;;  %vm4369_vm10 = vmor %vm1104_vm11, %vm1105_vm7 }
  0xfc   : > { %6510 = vst [vmem:[#allocation41_spill] sm:$0xff] %v4354_v44  ;;  %v1077_v58 = vsel %vm4326_vm9, %v4170_v57, %v1073_v7  ;;  %v1092_v62 = vsel %vm4334_vm3, %v4190_v41, %v1088_v14  ;;  %v1103_v59 = vadd.f32 %v4224_v8, %v1102_v1  ;;  %2610 = vrcp.f32 %v6511_v60  ;;  %v6514_v57 = vld [vmem:[#allocation21_spill] sm:$0xff]  ;;  %vm4378_vm12 = vmor %vm1119_vm6, %vm1120_vm5  ;;  %v6519_v1 = vld [vmem:[#allocation24_spill] sm:$0xff] }
  0xfd   : > { %v1118_v45 = vadd.f32 %v4236_v30, %v1117_v21  ;;  %v1132_v49 = vmul.f32 %v4273_v13, %v1131_v27  ;;  %v1146_v17 = vsub.f32 1.0, %v1145_v4  ;;  %2612 = vrcp.f32 %v6514_v57 }
  0xfe   : > { %vm4382_vm8 = vcmp.eq.f32.partialorder %v1123_v19, 8.507059e+37  ;;  %v1126_v15 = vor.u32 1.1754944e-38, %v1125_v26  ;;  %v1160_v14 = vmul.f32 %v4350_v2, %v6499_v52  ;;  %2614 = vrcp.f32 %v6519_v1 }
  0xff   : > { %v4389_v3 = vpop.eup %2608  ;;  %vm1135_vm13 = vweird.f32 %v4273_v13  ;;  %vm4392_vm15 = vcmp.eq.f32.partialorder %v1138_v37, 8.507059e+37  ;;  %v1153_v21 = vand.u32 2147483647, %v6492_v29  ;;  %v1155_v27 = vand.u32 2147483648, %v6492_v29 }
 0x100   : > { %v4400_v4 = vsel %vm4298_vm0, %v1081_v23, %v1077_v58  ;;  %v4404_v19 = vsel %vm4308_vm1, %v1096_v32, %v1092_v62  ;;  %v1141_v26 = vor.u32 1.1754944e-38, %v1140_v42  ;;  %vm1149_vm4 = vweird.f32 %v6492_v29  ;;  %vm4419_vm0 = vmor %vm1134_vm2, %vm1135_vm13  ;;  %v6545_v58 = vld [vmem:[#allocation45_spill] sm:$0xff] }
 0x101   : > { %6522 = vst [vmem:[#allocation42_spill] sm:$0xff] %v4400_v4  ;;  %v1107_v37 = vsel %vm4369_vm10, %v4224_v8, %v1103_v59  ;;  %v1122_v44 = vsel %vm4378_vm12, %v4236_v30, %v1118_v45  ;;  %v1133_v48 = vadd.f32 %v4273_v13, %v1132_v49  ;;  %v1147_v40 = vmul.f32 %v4305_v38, %v1146_v17  ;;  %v6526_v59 = vld [vmem:[#allocation27_spill] sm:$0xff] }
 0x102   : > { %6523 = vst [vmem:[#allocation43_spill] sm:$0xff] %v4404_v19  ;;  %v4415_v23 = vpop.eup %2610  ;;  %v1161_v32 = vsub.f32 1.0, %v1160_v14  ;;  %v1168_v42 = vand.u32 2147483647, %v6499_v52  ;;  %v1175_v8 = vmul.f32 %v4389_v3, %v6509_v54  ;;  %2616 = vrcp.f32 %v6526_v59 }
 0x103   : > { %v4427_v30 = vpop.eup %2612  ;;  %vm4429_vm1 = vcmp.eq.f32.partialorder %v1153_v21, 8.507059e+37  ;;  %v1156_v62 = vor.u32 1.1754944e-38, %v1155_v27  ;;  %vm1164_vm11 = vweird.f32 %v6499_v52  ;;  %v1170_v35 = vand.u32 2147483648, %v6499_v52  ;;  %v6533_v27 = vld [vmem:[#allocation17_spill] sm:$0xff] }
 0x104   : > { %v4435_v10 = vpop.eup %2614  ;;  %v4439_v45 = vsel %vm4338_vm14, %v1111_v43, %v1107_v37  ;;  %v4443_v49 = vsel %vm4382_vm8, %v1126_v15, %v1122_v44  ;;  %vm1150_vm6 = vweird.f32 %v4305_v38  ;;  %v1185_v17 = vand.u32 2147483648, %v6509_v54 }
 0x105   : > { %6529 = vst [vmem:[#allocation44_spill] sm:$0xff] %v4439_v45  ;;  %v1137_v41 = vsel %vm4419_vm0, %v4273_v13, %v1133_v48  ;;  %v1148_v14 = vadd.f32 %v4305_v38, %v1147_v40  ;;  %v1190_v21 = vmul.f32 %v4415_v23, %v6511_v60  ;;  %v1200_v43 = vand.u32 2147483648, %v6511_v60  ;;  %vm4464_vm3 = vmor %vm1149_vm4, %vm1150_vm6 }
 0x106   : > { %6530 = vst [vmem:[#allocation14_spill] sm:$0xff] %v4443_v49  ;;  %v1162_v9 = vmul.f32 %v4350_v2, %v1161_v32  ;;  %vm4455_vm9 = vcmp.eq.f32.partialorder %v1168_v42, 8.507059e+37  ;;  %v1176_v7 = vsub.f32 1.0, %v1175_v8  ;;  %v1205_v15 = vmul.f32 %v4427_v30, %v6514_v57 }
 0x107   : > { %2618 = vrcp.f32 %v6533_v27  ;;  %v1171_v13 = vor.u32 1.1754944e-38, %v1170_v35  ;;  %vm1179_vm14 = vweird.f32 %v6509_v54  ;;  %v1183_v37 = vand.u32 2147483647, %v6509_v54  ;;  %v6577_v54 = vld [vmem:[#allocation19_spill] sm:$0xff] }
 0x108   : > { %v1220_v40 = vmul.f32 %v4435_v10, %v6519_v1  ;;  %v4472_v51 = vpop.eup %2616  ;;  %v4476_v32 = vsel %vm4392_vm15, %v1141_v26, %v1137_v41  ;;  %vm1165_vm7 = vweird.f32 %v4350_v2  ;;  %vm1194_vm2 = vweird.f32 %v6511_v60 }
 0x109   : > { %6536 = vst [vmem:[#allocation15_spill] sm:$0xff] %v4476_v32  ;;  %v1198_v29 = vand.u32 2147483647, %v6511_v60  ;;  %v4481_v42 = vor.u32 1.1754944e-38, %v1185_v17  ;;  %v1191_v8 = vsub.f32 1.0, %v1190_v21  ;;  %v4483_v35 = vor.u32 1.1754944e-38, %v1200_v43  ;;  %vm4493_vm5 = vmor %vm1164_vm11, %vm1165_vm7 }
 0x10a   : > { %v1215_v49 = vand.u32 2147483648, %v6514_v57  ;;  %v1152_v45 = vsel %vm4464_vm3, %v4305_v38, %v1148_v14  ;;  %v1163_v18 = vadd.f32 %v4350_v2, %v1162_v9  ;;  %v1177_v26 = vmul.f32 %v4389_v3, %v1176_v7  ;;  %v6541_v14 = vld [vmem:[#allocation28_spill] sm:$0xff] }
 0x10b   : > { %v1206_v41 = vsub.f32 1.0, %v1205_v15  ;;  %vm4497_vm10 = vcmp.eq.f32.partialorder %v1183_v37, 8.507059e+37  ;;  %v1213_v21 = vand.u32 2147483647, %v6514_v57  ;;  %v1221_v43 = vsub.f32 1.0, %v1220_v40 }
 0x10c   : > { %v1235_v38 = vmul.f32 %v4472_v51, %v6526_v59  ;;  %2620 = vrcp.f32 %v6541_v14  ;;  %vm1180_vm12 = vweird.f32 %v4389_v3  ;;  %vm1209_vm8 = vweird.f32 %v6514_v57 }
 0x10d   : > { %v4505_v9 = vpop.eup %2618  ;;  %vm1224_vm13 = vweird.f32 %v6519_v1  ;;  %v1228_v52 = vand.u32 2147483647, %v6519_v1  ;;  %v4513_v7 = vsel %vm4429_vm1, %v1156_v62, %v1152_v45  ;;  %v1192_v15 = vmul.f32 %v4415_v23, %v1191_v8  ;;  %vm4529_vm0 = vmor %vm1179_vm14, %vm1180_vm12 }
 0x10e   : > { %6542 = vst [vmem:[#allocation16_spill] sm:$0xff] %v4513_v7  ;;  %vm1195_vm15 = vweird.f32 %v4415_v23  ;;  %vm4517_vm4 = vcmp.eq.f32.partialorder %v1198_v29, 8.507059e+37  ;;  %v1216_v37 = vor.u32 1.1754944e-38, %v1215_v49  ;;  %v1167_v40 = vsel %vm4493_vm5, %v4350_v2, %v1163_v18 }
 0x10f   : > { %v1178_v19 = vadd.f32 %v4389_v3, %v1177_v26  ;;  %v1207_v4 = vmul.f32 %v4427_v30, %v1206_v41  ;;  %2622 = vrcp.f32 %v6545_v58  ;;  %vm4533_vm1 = vcmp.eq.f32.partialorder %v1213_v21, 8.507059e+37  ;;  %v6553_v21 = vld [vmem:[#allocation46_spill] sm:$0xff]  ;;  %vm4564_vm7 = vmor %vm1194_vm2, %vm1195_vm15 }
 0x110   : > { %v1222_v49 = vmul.f32 %v4435_v10, %v1221_v43  ;;  %v1230_v2 = vand.u32 2147483648, %v6519_v1  ;;  %v1236_v32 = vsub.f32 1.0, %v1235_v38  ;;  %v1250_v29 = vmul.f32 %v4505_v9, %v6533_v27 }
 0x111   : > { %vm1210_vm11 = vweird.f32 %v4427_v30  ;;  %vm4542_vm6 = vcmp.eq.f32.partialorder %v1228_v52, 8.507059e+37  ;;  %vm1239_vm3 = vweird.f32 %v6526_v59  ;;  %v1243_v8 = vand.u32 2147483647, %v6526_v59  ;;  %v6556_v52 = vld [vmem:[#allocation47_spill] sm:$0xff] }
 0x112   : > { %v4548_v18 = vpop.eup %2620  ;;  %v4552_v26 = vsel %vm4455_vm9, %v1171_v13, %v1167_v40  ;;  %v1193_v41 = vadd.f32 %v4415_v23, %v1192_v15  ;;  %vm1225_vm14 = vweird.f32 %v4435_v10  ;;  %2624 = vrcp.f32 %v6553_v21  ;;  %vm4573_vm9 = vmor %vm1209_vm8, %vm1210_vm11  ;;  %v6559_v40 = vld [vmem:[#allocation48_spill] sm:$0xff] }
 0x113   : > { %6552 = vst [vmem:[#allocation18_spill] sm:$0xff] %v4552_v26  ;;  %v1182_v43 = vsel %vm4529_vm0, %v4389_v3, %v1178_v19  ;;  %v1208_v44 = vadd.f32 %v4427_v30, %v1207_v4  ;;  %v1245_v13 = vand.u32 2147483648, %v6526_v59  ;;  %2626 = vrcp.f32 %v6556_v52  ;;  %vm4584_vm2 = vmor %vm1224_vm13, %vm1225_vm14 }
 0x114   : > { %v1223_v3 = vadd.f32 %v4435_v10, %v1222_v49  ;;  %v1237_v60 = vmul.f32 %v4472_v51, %v1236_v32  ;;  %v1251_v19 = vsub.f32 1.0, %v1250_v29  ;;  %2628 = vrcp.f32 %v6559_v40 }
 0x115   : > { %v4580_v62 = vpop.eup %2622  ;;  %v1231_v57 = vor.u32 1.1754944e-38, %v1230_v2  ;;  %vm4588_vm5 = vcmp.eq.f32.partialorder %v1243_v8, 8.507059e+37  ;;  %vm1254_vm12 = vweird.f32 %v6533_v27  ;;  %v1265_v49 = vmul.f32 %v4548_v18, %v6541_v14 }
 0x116   : > { %v1197_v32 = vsel %vm4564_vm7, %v4415_v23, %v1193_v41  ;;  %vm1240_vm8 = vweird.f32 %v4472_v51  ;;  %v1258_v1 = vand.u32 2147483647, %v6533_v27  ;;  %v1260_v29 = vand.u32 2147483648, %v6533_v27 }
 0x117   : > { %v4604_v2 = vsel %vm4497_vm10, %v4481_v42, %v1182_v43  ;;  %v1212_v8 = vsel %vm4573_vm9, %v4427_v30, %v1208_v44  ;;  %v1246_v7 = vor.u32 1.1754944e-38, %v1245_v13  ;;  %v1275_v20 = vand.u32 2147483648, %v6541_v14  ;;  %vm4628_vm10 = vmor %vm1239_vm3, %vm1240_vm8  ;;  %v6568_v13 = vld [vmem:[#allocation49_spill] sm:$0xff] }
 0x118   : > { %6564 = vst [vmem:[#allocation21_spill] sm:$0xff] %v4604_v2  ;;  %v4610_v38 = vpop.eup %2624  ;;  %v1227_v23 = vsel %vm4584_vm2, %v4435_v10, %v1223_v3  ;;  %v1238_v41 = vadd.f32 %v4472_v51, %v1237_v60  ;;  %v1252_v47 = vmul.f32 %v4505_v9, %v1251_v19  ;;  %v1280_v42 = vmul.f32 %v4580_v62, %v6545_v58 }
 0x119   : > { %v4619_v17 = vpop.eup %2626  ;;  %v4624_v30 = vsel %vm4517_vm4, %v4483_v35, %v1197_v32  ;;  %v1266_v10 = vsub.f32 1.0, %v1265_v49  ;;  %v1273_v44 = vand.u32 2147483647, %v6541_v14  ;;  %2630 = vrcp.f32 %v6568_v13 }
 0x11a   : > { %6565 = vst [vmem:[#allocation24_spill] sm:$0xff] %v4624_v30  ;;  %v4634_v15 = vpop.eup %2628  ;;  %vm1255_vm13 = vweird.f32 %v4505_v9  ;;  %vm4637_vm15 = vcmp.eq.f32.partialorder %v1258_v1, 8.507059e+37  ;;  %v1261_v35 = vor.u32 1.1754944e-38, %v1260_v29  ;;  %vm1269_vm4 = vweird.f32 %v6541_v14 }
 0x11b   : > { %v4644_v59 = vsel %vm4533_vm1, %v1216_v37, %v1212_v8  ;;  %v4648_v48 = vsel %vm4542_vm6, %v1231_v57, %v1227_v23  ;;  %v1276_v60 = vor.u32 1.1754944e-38, %v1275_v20  ;;  %v1288_v19 = vand.u32 2147483647, %v6545_v58  ;;  %vm4659_vm0 = vmor %vm1254_vm12, %vm1255_vm13 }
 0x11c   : > { %6571 = vst [vmem:[#allocation27_spill] sm:$0xff] %v4644_v59  ;;  %v1242_v4 = vsel %vm4628_vm10, %v4472_v51, %v1238_v41  ;;  %v1253_v49 = vadd.f32 %v4505_v9, %v1252_v47  ;;  %v1281_v32 = vsub.f32 1.0, %v1280_v42  ;;  %v1295_v1 = vmul.f32 %v4610_v38, %v6553_v21 }
 0x11d   : > { %6572 = vst [vmem:[#allocation17_spill] sm:$0xff] %v4648_v48  ;;  %v1267_v20 = vmul.f32 %v4548_v18, %v1266_v10  ;;  %vm4664_vm1 = vcmp.eq.f32.partialorder %v1273_v44, 8.507059e+37  ;;  %v1310_v51 = vmul.f32 %v4619_v17, %v6556_v52  ;;  %v1325_v47 = vmul.f32 %v4634_v15, %v6559_v40  ;;  %v6581_v48 = vld [vmem:[#allocation20_spill] sm:$0xff] }
 0x11e   : > { %2632 = vrcp.f32 %v6577_v54  ;;  %vm1270_vm11 = vweird.f32 %v4548_v18  ;;  %vm1284_vm6 = vweird.f32 %v6545_v58  ;;  %v1290_v27 = vand.u32 2147483648, %v6545_v58 }
 0x11f   : > { %vm1299_vm3 = vweird.f32 %v6553_v21  ;;  %v4677_v57 = vpop.eup %2630  ;;  %v4681_v29 = vsel %vm4588_vm5, %v1246_v7, %v1242_v4  ;;  %v1303_v8 = vand.u32 2147483647, %v6553_v21  ;;  %v1305_v23 = vand.u32 2147483648, %v6553_v21  ;;  %vm4701_vm7 = vmor %vm1269_vm4, %vm1270_vm11 }
 0x120   : > { %6578 = vst [vmem:[#allocation28_spill] sm:$0xff] %v4681_v29  ;;  %v1318_v41 = vand.u32 2147483647, %v6556_v52  ;;  %v1257_v42 = vsel %vm4659_vm0, %v4505_v9, %v1253_v49  ;;  %v1282_v43 = vmul.f32 %v4580_v62, %v1281_v32  ;;  %vm4690_vm14 = vcmp.eq.f32.partialorder %v1288_v19, 8.507059e+37 }
 0x121   : > { %v1296_v44 = vsub.f32 1.0, %v1295_v1  ;;  %v1320_v7 = vand.u32 2147483648, %v6556_v52  ;;  %v1268_v26 = vadd.f32 %v4548_v18, %v1267_v20  ;;  %v1311_v4 = vsub.f32 1.0, %v1310_v51 }
 0x122   : > { %v1326_v29 = vsub.f32 1.0, %v1325_v47  ;;  %2634 = vrcp.f32 %v6581_v48  ;;  %vm1285_vm9 = vweird.f32 %v4580_v62  ;;  %v1291_v19 = vor.u32 1.1754944e-38, %v1290_v27 }
 0x123   : > { %vm1314_vm2 = vweird.f32 %v6556_v52  ;;  %v1340_v49 = vmul.f32 %v4677_v57, %v6568_v13  ;;  %v4713_v1 = vsel %vm4637_vm15, %v1261_v35, %v1257_v42  ;;  %vm1300_vm5 = vweird.f32 %v4610_v38  ;;  %vm4731_vm10 = vmor %vm1284_vm6, %vm1285_vm9 }
 0x124   : > { %v4709_v32 = vpop.eup %2632  ;;  %6584 = vst [vmem:[#allocation45_spill] sm:$0xff] %v4713_v1  ;;  %v1306_v14 = vor.u32 1.1754944e-38, %v1305_v23  ;;  %vm1329_vm12 = vweird.f32 %v6559_v40  ;;  %v1283_v37 = vadd.f32 %v4580_v62, %v1282_v43  ;;  %v1297_v20 = vmul.f32 %v4610_v38, %v1296_v44  ;;  %v6591_v43 = vld [vmem:[#allocation50_spill] sm:$0xff]  ;;  %v6592_v44 = vld [vmem:[#allocation51_spill] sm:$0xff]  ;;  %vm4764_vm11 = vmor %vm1299_vm3, %vm1300_vm5 }
 0x125   : > { %vm4719_vm8 = vcmp.eq.f32.partialorder %v1303_v8, 8.507059e+37  ;;  %v1321_v47 = vor.u32 1.1754944e-38, %v1320_v7  ;;  %v1333_v27 = vand.u32 2147483647, %v6559_v40  ;;  %v1272_v3 = vsel %vm4701_vm7, %v4548_v18, %v1268_v26 }
 0x126   : > { %v1312_v8 = vmul.f32 %v4619_v17, %v1311_v4  ;;  %vm4736_vm13 = vcmp.eq.f32.partialorder %v1318_v41, 8.507059e+37  ;;  %v1327_v42 = vmul.f32 %v4634_v15, %v1326_v29  ;;  %2636 = vrcp.f32 %v6591_v43 }
 0x127   : > { %vm1315_vm15 = vweird.f32 %v4619_v17  ;;  %v1341_v18 = vsub.f32 1.0, %v1340_v49  ;;  %v1355_v58 = vmul.f32 %v4709_v32, %v6577_v54  ;;  %2638 = vrcp.f32 %v6592_v44 }
 0x128   : > { %v4746_v7 = vpop.eup %2634  ;;  %vm1330_vm4 = vweird.f32 %v4634_v15  ;;  %v1335_v41 = vand.u32 2147483648, %v6559_v40  ;;  %vm1344_vm0 = vweird.f32 %v6568_v13  ;;  %v1348_v29 = vand.u32 2147483647, %v6568_v13 }
 0x129   : > { %v4754_v26 = vsel %vm4664_vm1, %v1276_v60, %v1272_v3  ;;  %v1287_v4 = vsel %vm4731_vm10, %v4580_v62, %v1283_v37  ;;  %v1298_v9 = vadd.f32 %v4610_v38, %v1297_v20  ;;  %v1350_v1 = vand.u32 2147483648, %v6568_v13  ;;  %vm4774_vm1 = vmor %vm1314_vm2, %vm1315_vm15  ;;  %v6600_v37 = vld [vmem:[#allocation22_spill] sm:$0xff]  ;;  %v6644_v13 = vld [vmem:[#allocation56_spill] sm:$0xff] }
 0x12a   : > { %6593 = vst [vmem:[#allocation46_spill] sm:$0xff] %v4754_v26  ;;  %v1313_v45 = vadd.f32 %v4619_v17, %v1312_v8  ;;  %v1328_v60 = vadd.f32 %v4634_v15, %v1327_v42  ;;  %vm4779_vm6 = vcmp.eq.f32.partialorder %v1333_v27, 8.507059e+37  ;;  %2640 = vrcp.f32 %v6600_v37  ;;  %vm4786_vm3 = vmor %vm1329_vm12, %vm1330_vm4  ;;  %v6603_v8 = vld [vmem:[#allocation23_spill] sm:$0xff] }
 0x12b   : > { %v1342_v52 = vmul.f32 %v4677_v57, %v1341_v18  ;;  %v1356_v3 = vsub.f32 1.0, %v1355_v58  ;;  %v1370_v35 = vmul.f32 %v4746_v7, %v6581_v48  ;;  %2642 = vrcp.f32 %v6603_v8 }
 0x12c   : > { %v4794_v27 = vpop.eup %2636  ;;  %v4798_v42 = vsel %vm4690_vm14, %v1291_v19, %v1287_v4  ;;  %v1336_v26 = vor.u32 1.1754944e-38, %v1335_v41  ;;  %vm4800_vm7 = vcmp.eq.f32.partialorder %v1348_v29, 8.507059e+37  ;;  %vm1359_vm9 = vweird.f32 %v6577_v54 }
 0x12d   : > { %6604 = vst [vmem:[#allocation47_spill] sm:$0xff] %v4798_v42  ;;  %v4805_v18 = vpop.eup %2638  ;;  %v1302_v58 = vsel %vm4764_vm11, %v4610_v38, %v1298_v9  ;;  %vm1345_vm2 = vweird.f32 %v4677_v57  ;;  %v1351_v59 = vor.u32 1.1754944e-38, %v1350_v1  ;;  %v1363_v10 = vand.u32 2147483647, %v6577_v54 }
 0x12e   : > { %v1317_v19 = vsel %vm4774_vm1, %v4619_v17, %v1313_v45  ;;  %v1332_v41 = vsel %vm4786_vm3, %v4634_v15, %v1328_v60  ;;  %v1365_v29 = vand.u32 2147483648, %v6577_v54  ;;  %v1380_v4 = vand.u32 2147483648, %v6581_v48  ;;  %vm4832_vm14 = vmor %vm1344_vm0, %vm1345_vm2  ;;  %v6610_v60 = vld [vmem:[#allocation52_spill] sm:$0xff] }
 0x12f   : > { %v1343_v49 = vadd.f32 %v4677_v57, %v1342_v52  ;;  %v1357_v38 = vmul.f32 %v4709_v32, %v1356_v3  ;;  %v1371_v9 = vsub.f32 1.0, %v1370_v35  ;;  %v1385_v1 = vmul.f32 %v4794_v27, %v6591_v43 }
 0x130   : > { %v4824_v42 = vpop.eup %2640  ;;  %v4828_v17 = vsel %vm4719_vm8, %v1306_v14, %v1302_v58  ;;  %v1378_v45 = vand.u32 2147483647, %v6581_v48  ;;  %v1400_v62 = vmul.f32 %v4805_v18, %v6592_v44  ;;  %2644 = vrcp.f32 %v6610_v60 }
 0x131   : > { %6607 = vst [vmem:[#allocation48_spill] sm:$0xff] %v4828_v17  ;;  %v4840_v20 = vpop.eup %2642  ;;  %v4844_v51 = vsel %vm4736_vm13, %v1321_v47, %v1317_v19  ;;  %vm1360_vm5 = vweird.f32 %v4709_v32  ;;  %vm4847_vm12 = vcmp.eq.f32.partialorder %v1363_v10, 8.507059e+37  ;;  %vm1374_vm8 = vweird.f32 %v6581_v48 }
 0x132   : > { %6611 = vst [vmem:[#allocation49_spill] sm:$0xff] %v4844_v51  ;;  %v4854_v14 = vsel %vm4779_vm6, %v1336_v26, %v1332_v41  ;;  %v1366_v52 = vor.u32 1.1754944e-38, %v1365_v29  ;;  %v1381_v3 = vor.u32 1.1754944e-38, %v1380_v4  ;;  %v1393_v35 = vand.u32 2147483647, %v6591_v43  ;;  %vm4864_vm10 = vmor %vm1359_vm9, %vm1360_vm5  ;;  %v6619_v29 = vld [vmem:[#allocation53_spill] sm:$0xff] }
 0x133   : > { %6614 = vst [vmem:[#allocation19_spill] sm:$0xff] %v4854_v14  ;;  %v1347_v47 = vsel %vm4832_vm14, %v4677_v57, %v1343_v49  ;;  %v1358_v23 = vadd.f32 %v4709_v32, %v1357_v38  ;;  %v1372_v58 = vmul.f32 %v4746_v7, %v1371_v9  ;;  %v1386_v10 = vsub.f32 1.0, %v1385_v1 }
 0x134   : > { %vm4868_vm13 = vcmp.eq.f32.partialorder %v1378_v45, 8.507059e+37  ;;  %v1401_v21 = vsub.f32 1.0, %v1400_v62  ;;  %v1415_v41 = vmul.f32 %v4824_v42, %v6600_v37  ;;  %v1430_v57 = vmul.f32 %v4840_v20, %v6603_v8 }
 0x135   : > { %2646 = vrcp.f32 %v6619_v29  ;;  %vm1375_vm15 = vweird.f32 %v4746_v7  ;;  %vm1389_vm4 = vweird.f32 %v6591_v43  ;;  %v1395_v54 = vand.u32 2147483648, %v6591_v43  ;;  %v6646_v43 = vld [vmem:[#allocation57_spill] sm:$0xff] }
 0x136   : > { %v1408_v4 = vand.u32 2147483647, %v6592_v44  ;;  %v4881_v49 = vpop.eup %2644  ;;  %v4885_v38 = vsel %vm4800_vm7, %v1351_v59, %v1347_v47  ;;  %vm1404_vm0 = vweird.f32 %v6592_v44  ;;  %v1410_v9 = vand.u32 2147483648, %v6592_v44  ;;  %vm4902_vm1 = vmor %vm1374_vm8, %vm1375_vm15 }
 0x137   : > { %6620 = vst [vmem:[#allocation20_spill] sm:$0xff] %v4885_v38  ;;  %v1423_v1 = vand.u32 2147483647, %v6600_v37  ;;  %v1362_v15 = vsel %vm4864_vm10, %v4709_v32, %v1358_v23  ;;  %v1373_v45 = vadd.f32 %v4746_v7, %v1372_v58  ;;  %v1387_v62 = vmul.f32 %v4794_v27, %v1386_v10  ;;  %v6625_v23 = vld [vmem:[#allocation54_spill] sm:$0xff] }
 0x138   : > { %vm4895_vm11 = vcmp.eq.f32.partialorder %v1393_v35, 8.507059e+37  ;;  %v1425_v59 = vand.u32 2147483648, %v6600_v37  ;;  %v1402_v47 = vmul.f32 %v4805_v18, %v1401_v21  ;;  %v1416_v19 = vsub.f32 1.0, %v1415_v41 }
 0x139   : > { %v1431_v32 = vsub.f32 1.0, %v1430_v57  ;;  %2648 = vrcp.f32 %v6625_v23  ;;  %vm1390_vm6 = vweird.f32 %v4794_v27  ;;  %v1396_v35 = vor.u32 1.1754944e-38, %v1395_v54 }
 0x13a   : > { %vm4909_vm3 = vcmp.eq.f32.partialorder %v1408_v4, 8.507059e+37  ;;  %v1445_v48 = vmul.f32 %v4881_v49, %v6610_v60  ;;  %v4919_v38 = vsel %vm4847_vm12, %v1366_v52, %v1362_v15  ;;  %vm1405_vm7 = vweird.f32 %v4805_v18  ;;  %vm4930_vm2 = vmor %vm1389_vm4, %vm1390_vm6 }
 0x13b   : > { %v4915_v10 = vpop.eup %2646  ;;  %6628 = vst [vmem:[#allocation50_spill] sm:$0xff] %v4919_v38  ;;  %v1411_v21 = vor.u32 1.1754944e-38, %v1410_v9  ;;  %vm1419_vm9 = vweird.f32 %v6600_v37  ;;  %v1377_v41 = vsel %vm4902_vm1, %v4746_v7, %v1373_v45  ;;  %v1388_v57 = vadd.f32 %v4794_v27, %v1387_v62  ;;  %v6633_v45 = vld [vmem:[#allocation25_spill] sm:$0xff]  ;;  %vm4944_vm5 = vmor %vm1404_vm0, %vm1405_vm7 }
 0x13c   : > { %v1426_v54 = vor.u32 1.1754944e-38, %v1425_v59  ;;  %v1438_v4 = vand.u32 2147483647, %v6603_v8  ;;  %v1403_v52 = vadd.f32 %v4805_v18, %v1402_v47  ;;  %v1417_v9 = vmul.f32 %v4824_v42, %v1416_v19 }
 0x13d   : > { %vm4936_vm14 = vcmp.eq.f32.partialorder %v1423_v1, 8.507059e+37  ;;  %v1432_v7 = vmul.f32 %v4840_v20, %v1431_v32  ;;  %2650 = vrcp.f32 %v6633_v45  ;;  %vm1420_vm12 = vweird.f32 %v4824_v42  ;;  %v6636_v1 = vld [vmem:[#allocation55_spill] sm:$0xff] }
 0x13e   : > { %v1446_v62 = vsub.f32 1.0, %v1445_v48  ;;  %v1460_v59 = vmul.f32 %v4915_v10, %v6619_v29  ;;  %2652 = vrcp.f32 %v6636_v1  ;;  %vm1434_vm8 = vweird.f32 %v6603_v8 }
 0x13f   : > { %v4952_v40 = vpop.eup %2648  ;;  %vm1435_vm10 = vweird.f32 %v4840_v20  ;;  %v1440_v44 = vand.u32 2147483648, %v6603_v8  ;;  %vm1449_vm15 = vweird.f32 %v6610_v60  ;;  %v4960_v47 = vsel %vm4868_vm13, %v1381_v3, %v1377_v41  ;;  %vm4975_vm13 = vmor %vm1419_vm9, %vm1420_vm12  ;;  %v6654_v3 = vld [vmem:[#allocation26_spill] sm:$0xff] }
 0x140   : > { %6637 = vst [vmem:[#allocation51_spill] sm:$0xff] %v4960_v47  ;;  %v1392_v19 = vsel %vm4930_vm2, %v4794_v27, %v1388_v57  ;;  %v1453_v32 = vand.u32 2147483647, %v6610_v60  ;;  %v1455_v48 = vand.u32 2147483648, %v6610_v60  ;;  %v1407_v38 = vsel %vm4944_vm5, %v4805_v18, %v1403_v52  ;;  %vm4984_vm0 = vmor %vm1434_vm8, %vm1435_vm10 }
 0x141   : > { %v1418_v8 = vadd.f32 %v4824_v42, %v1417_v9  ;;  %v1433_v27 = vadd.f32 %v4840_v20, %v1432_v7  ;;  %vm4980_vm4 = vcmp.eq.f32.partialorder %v1438_v4, 8.507059e+37  ;;  %v1447_v18 = vmul.f32 %v4881_v49, %v1446_v62 }
 0x142   : > { %v1461_v57 = vsub.f32 1.0, %v1460_v59  ;;  %v1475_v37 = vmul.f32 %v4952_v40, %v6625_v23  ;;  %2654 = vrcp.f32 %v6644_v13  ;;  %v4996_v4 = vsel %vm4895_vm11, %v1396_v35, %v1392_v19 }
 0x143   : > { %v4992_v52 = vpop.eup %2650  ;;  %6645 = vst [vmem:[#allocation22_spill] sm:$0xff] %v4996_v4  ;;  %v1441_v9 = vor.u32 1.1754944e-38, %v1440_v44  ;;  %v1468_v7 = vand.u32 2147483647, %v6619_v29  ;;  %2656 = vrcp.f32 %v6646_v43  ;;  %v5004_v62 = vsel %vm4909_vm3, %v1411_v21, %v1407_v38 }
 0x144   : > { %v5000_v47 = vpop.eup %2652  ;;  %6647 = vst [vmem:[#allocation23_spill] sm:$0xff] %v5004_v62  ;;  %vm1450_vm1 = vweird.f32 %v4881_v49  ;;  %vm5007_vm6 = vcmp.eq.f32.partialorder %v1453_v32, 8.507059e+37  ;;  %v1456_v14 = vor.u32 1.1754944e-38, %v1455_v48  ;;  %v1422_v35 = vsel %vm4975_vm13, %v4824_v42, %v1418_v8 }
 0x145   : > { %v1437_v44 = vsel %vm4984_vm0, %v4840_v20, %v1433_v27  ;;  %v1470_v19 = vand.u32 2147483648, %v6619_v29  ;;  %v1483_v38 = vand.u32 2147483647, %v6625_v23  ;;  %v1448_v58 = vadd.f32 %v4881_v49, %v1447_v18  ;;  %vm5025_vm11 = vmor %vm1449_vm15, %vm1450_vm1  ;;  %v6685_v20 = vld [vmem:[#allocation63_spill] sm:$0xff] }
 0x146   : > { %v1462_v21 = vmul.f32 %v4915_v10, %v1461_v57  ;;  %v1476_v32 = vsub.f32 1.0, %v1475_v37  ;;  %v1490_v48 = vmul.f32 %v4992_v52, %v6633_v45  ;;  %vm1464_vm3 = vweird.f32 %v6619_v29 }
 0x147   : > { %vm5030_vm7 = vcmp.eq.f32.partialorder %v1468_v7, 8.507059e+37  ;;  %v1505_v8 = vmul.f32 %v5000_v47, %v6636_v1  ;;  %2658 = vrcp.f32 %v6654_v3  ;;  %v5041_v60 = vsel %vm4936_vm14, %v1426_v54, %v1422_v35 }
 0x148   : > { %v5037_v27 = vpop.eup %2654  ;;  %6655 = vst [vmem:[#allocation52_spill] sm:$0xff] %v5041_v60  ;;  %vm1465_vm9 = vweird.f32 %v4915_v10  ;;  %vm1479_vm2 = vweird.f32 %v6625_v23  ;;  %v1485_v41 = vand.u32 2147483648, %v6625_v23  ;;  %v5050_v57 = vsel %vm4980_vm4, %v1441_v9, %v1437_v44 }
 0x149   : > { %v5046_v18 = vpop.eup %2656  ;;  %6656 = vst [vmem:[#allocation53_spill] sm:$0xff] %v5050_v57  ;;  %v1471_v37 = vor.u32 1.1754944e-38, %v1470_v19  ;;  %v1498_v7 = vand.u32 2147483647, %v6633_v45  ;;  %v1500_v62 = vand.u32 2147483648, %v6633_v45  ;;  %v1452_v54 = vsel %vm5025_vm11, %v4881_v49, %v1448_v58  ;;  %vm5065_vm5 = vmor %vm1464_vm3, %vm1465_vm9  ;;  %v6661_v19 = vld [vmem:[#allocation58_spill] sm:$0xff] }
 0x14a   : > { %v1463_v15 = vadd.f32 %v4915_v10, %v1462_v21  ;;  %v1477_v35 = vmul.f32 %v4952_v40, %v1476_v32  ;;  %vm5059_vm14 = vcmp.eq.f32.partialorder %v1483_v38, 8.507059e+37  ;;  %v1491_v26 = vsub.f32 1.0, %v1490_v48 }
 0x14b   : > { %vm1494_vm12 = vweird.f32 %v6633_v45  ;;  %v1506_v44 = vsub.f32 1.0, %v1505_v8  ;;  %v1520_v49 = vmul.f32 %v5037_v27, %v6644_v13  ;;  %2660 = vrcp.f32 %v6661_v19  ;;  %v5471_v45 = vld [vmem:[%s2964_s26 + $0x28] sm:$0xff] }
 0x14c   : > { %vm1480_vm8 = vweird.f32 %v4952_v40  ;;  %v1486_v38 = vor.u32 1.1754944e-38, %v1485_v41  ;;  %v1513_v58 = vand.u32 2147483647, %v6636_v1  ;;  %v1535_v29 = vmul.f32 %v5046_v18, %v6646_v43 }
 0x14d   : > { %v5077_v21 = vpop.eup %2658  ;;  %v5081_v32 = vsel %vm5007_vm6, %v1456_v14, %v1452_v54  ;;  %vm1509_vm10 = vweird.f32 %v6636_v1  ;;  %v1515_v48 = vand.u32 2147483648, %v6636_v1  ;;  %v1530_v42 = vand.u32 2147483648, %v6644_v13  ;;  %vm5097_vm13 = vmor %vm1479_vm2, %vm1480_vm8  ;;  %v6679_v14 = vld [vmem:[#allocation61_spill] sm:$0xff] }
 0x14e   : > { %6662 = vst [vmem:[#allocation54_spill] sm:$0xff] %v5081_v32  ;;  %v1467_v8 = vsel %vm5065_vm5, %v4915_v10, %v1463_v15  ;;  %v1478_v41 = vadd.f32 %v4952_v40, %v1477_v35  ;;  %v1492_v57 = vmul.f32 %v4992_v52, %v1491_v26  ;;  %vm5091_vm15 = vcmp.eq.f32.partialorder %v1498_v7, 8.507059e+37  ;;  %v6669_v15 = vld [vmem:[#allocation59_spill] sm:$0xff] }
 0x14f   : > { %v1501_v59 = vor.u32 1.1754944e-38, %v1500_v62  ;;  %v1507_v54 = vmul.f32 %v5000_v47, %v1506_v44  ;;  %v1521_v32 = vsub.f32 1.0, %v1520_v49  ;;  %vm1524_vm4 = vweird.f32 %v6644_v13 }
 0x150   : > { %v1528_v10 = vand.u32 2147483647, %v6644_v13  ;;  %vm1495_vm0 = vweird.f32 %v4992_v52  ;;  %vm5105_vm1 = vcmp.eq.f32.partialorder %v1513_v58, 8.507059e+37  ;;  %v1536_v62 = vsub.f32 1.0, %v1535_v29 }
 0x151   : > { %v1550_v23 = vmul.f32 %v5077_v21, %v6654_v3  ;;  %2662 = vrcp.f32 %v6669_v15  ;;  %v5112_v35 = vpop.eup %2660  ;;  %v5116_v26 = vsel %vm5030_vm7, %v1471_v37, %v1467_v8  ;;  %vm1510_vm6 = vweird.f32 %v5000_v47  ;;  %vm5129_vm11 = vmor %vm1494_vm12, %vm1495_vm0  ;;  %v6677_v8 = vld [vmem:[#allocation60_spill] sm:$0xff] }
 0x152   : > { %6670 = vst [vmem:[#allocation25_spill] sm:$0xff] %v5116_v26  ;;  %v1516_v9 = vor.u32 1.1754944e-38, %v1515_v48  ;;  %v5119_v44 = vor.u32 1.1754944e-38, %v1530_v42  ;;  %v1482_v49 = vsel %vm5097_vm13, %v4952_v40, %v1478_v41  ;;  %v1493_v58 = vadd.f32 %v4992_v52, %v1492_v57  ;;  %vm5139_vm9 = vmor %vm1509_vm10, %vm1510_vm6 }
 0x153   : > { %v1543_v29 = vand.u32 2147483647, %v6646_v43  ;;  %v1545_v51 = vand.u32 2147483648, %v6646_v43  ;;  %v1508_v37 = vadd.f32 %v5000_v47, %v1507_v54  ;;  %v1522_v48 = vmul.f32 %v5037_v27, %v1521_v32 }
 0x154   : > { %vm1539_vm3 = vweird.f32 %v6646_v43  ;;  %vm1554_vm7 = vweird.f32 %v6654_v3  ;;  %vm5143_vm2 = vcmp.eq.f32.partialorder %v1528_v10, 8.507059e+37  ;;  %v1537_v57 = vmul.f32 %v5046_v18, %v1536_v62  ;;  %v6691_v43 = vld [vmem:[#allocation64_spill] sm:$0xff] }
 0x155   : > { %v1551_v42 = vsub.f32 1.0, %v1550_v23  ;;  %v1565_v32 = vmul.f32 %v5112_v35, %v6661_v19  ;;  %2664 = vrcp.f32 %v6677_v8  ;;  %v5153_v41 = vsel %vm5059_vm14, %v1486_v38, %v1482_v49 }
 0x156   : > { %6678 = vst [vmem:[#allocation55_spill] sm:$0xff] %v5153_v41  ;;  %vm1525_vm5 = vweird.f32 %v5037_v27  ;;  %v1558_v1 = vand.u32 2147483647, %v6654_v3  ;;  %2666 = vrcp.f32 %v6679_v14  ;;  %v1497_v10 = vsel %vm5129_vm11, %v4992_v52, %v1493_v58  ;;  %v6682_v41 = vld [vmem:[#allocation62_spill] sm:$0xff] }
 0x157   : > { %v5158_v54 = vpop.eup %2662  ;;  %vm1540_vm12 = vweird.f32 %v5046_v18  ;;  %vm5164_vm8 = vcmp.eq.f32.partialorder %v1543_v29, 8.507059e+37  ;;  %v1546_v60 = vor.u32 1.1754944e-38, %v1545_v51  ;;  %v1512_v38 = vsel %vm5139_vm9, %v5000_v47, %v1508_v37  ;;  %vm5176_vm14 = vmor %vm1524_vm4, %vm1525_vm5 }
 0x158   : > { %v1523_v23 = vadd.f32 %v5037_v27, %v1522_v48  ;;  %v1560_v49 = vand.u32 2147483648, %v6654_v3  ;;  %2668 = vrcp.f32 %v6682_v41  ;;  %v1538_v58 = vadd.f32 %v5046_v18, %v1537_v57  ;;  %vm5189_vm10 = vmor %vm1539_vm3, %vm1540_vm12 }
 0x159   : > { %v1552_v51 = vmul.f32 %v5077_v21, %v1551_v42  ;;  %v1566_v29 = vsub.f32 1.0, %v1565_v32  ;;  %2670 = vrcp.f32 %v6685_v20  ;;  %v5185_v47 = vsel %vm5091_vm15, %v1501_v59, %v1497_v10 }
 0x15a   : > { %6686 = vst [vmem:[#allocation56_spill] sm:$0xff] %v5185_v47  ;;  %vm5193_vm13 = vcmp.eq.f32.partialorder %v1558_v1, 8.507059e+37  ;;  %v1573_v48 = vand.u32 2147483647, %v6661_v19  ;;  %v1580_v40 = vmul.f32 %v5158_v54, %v6669_v15  ;;  %vm1555_vm15 = vweird.f32 %v5077_v21 }
 0x15b   : > { %v5200_v57 = vpop.eup %2664  ;;  %vm1569_vm4 = vweird.f32 %v6661_v19  ;;  %v1575_v4 = vand.u32 2147483648, %v6661_v19  ;;  %2672 = vrcp.f32 %v6691_v43  ;;  %v5210_v42 = vsel %vm5105_vm1, %v1516_v9, %v1512_v38  ;;  %vm5226_vm1 = vmor %vm1554_vm7, %vm1555_vm15 }
 0x15c   : > { %v5206_v59 = vpop.eup %2666  ;;  %6692 = vst [vmem:[#allocation57_spill] sm:$0xff] %v5210_v42  ;;  %v1561_v32 = vor.u32 1.1754944e-38, %v1560_v49  ;;  %vm1584_vm0 = vweird.f32 %v6669_v15  ;;  %v1590_v1 = vand.u32 2147483648, %v6669_v15  ;;  %v1527_v10 = vsel %vm5176_vm14, %v5037_v27, %v1523_v23 }
 0x15d   : > { %v1542_v47 = vsel %vm5189_vm10, %v5046_v18, %v1538_v58  ;;  %v1553_v26 = vadd.f32 %v5077_v21, %v1552_v51  ;;  %v1567_v17 = vmul.f32 %v5112_v35, %v1566_v29  ;;  %vm5230_vm6 = vcmp.eq.f32.partialorder %v1573_v48, 8.507059e+37  ;;  %v6697_v58 = vld [vmem:[#allocation66_spill] sm:$0xff] }
 0x15e   : > { %v5222_v7 = vpop.eup %2668  ;;  %v1581_v27 = vsub.f32 1.0, %v1580_v40  ;;  %v1588_v23 = vand.u32 2147483647, %v6669_v15  ;;  %v1595_v18 = vmul.f32 %v5200_v57, %v6677_v8  ;;  %vm1570_vm11 = vweird.f32 %v5112_v35 }
 0x15f   : > { %v5237_v49 = vpop.eup %2670  ;;  %v1576_v52 = vor.u32 1.1754944e-38, %v1575_v4  ;;  %v1610_v3 = vmul.f32 %v5206_v59, %v6679_v14  ;;  %2674 = vrcp.f32 %v6697_v58  ;;  %v5246_v51 = vsel %vm5143_vm2, %v5119_v44, %v1527_v10  ;;  %vm5263_vm7 = vmor %vm1569_vm4, %vm1570_vm11 }
 0x160   : > { %6698 = vst [vmem:[#allocation26_spill] sm:$0xff] %v5246_v51  ;;  %v5250_v29 = vsel %vm5164_vm8, %v1546_v60, %v1542_v47  ;;  %v1591_v37 = vor.u32 1.1754944e-38, %v1590_v1  ;;  %vm1599_vm3 = vweird.f32 %v6677_v8  ;;  %v1557_v40 = vsel %vm5226_vm1, %v5077_v21, %v1553_v26  ;;  %v6704_v1 = vld [vmem:[#allocation67_spill] sm:$0xff] }
 0x161   : > { %6699 = vst [vmem:[#allocation58_spill] sm:$0xff] %v5250_v29  ;;  %v5253_v48 = vpop.eup %2672  ;;  %v1568_v4 = vadd.f32 %v5112_v35, %v1567_v17  ;;  %v1603_v42 = vand.u32 2147483647, %v6677_v8  ;;  %v1605_v44 = vand.u32 2147483648, %v6677_v8  ;;  %v1582_v62 = vmul.f32 %v5158_v54, %v1581_v27 }
 0x162   : > { %vm5268_vm9 = vcmp.eq.f32.partialorder %v1588_v23, 8.507059e+37  ;;  %v1596_v47 = vsub.f32 1.0, %v1595_v18  ;;  %v1625_v17 = vmul.f32 %v5222_v7, %v6682_v41  ;;  %v1640_v21 = vmul.f32 %v5237_v49, %v6685_v20 }
 0x163   : > { %v1611_v26 = vsub.f32 1.0, %v1610_v3  ;;  %vm1614_vm2 = vweird.f32 %v6679_v14  ;;  %v1620_v19 = vand.u32 2147483648, %v6679_v14  ;;  %2676 = vrcp.f32 %v6704_v1 }
 0x164   : > { %v5281_v10 = vsel %vm5193_vm13, %v1561_v32, %v1557_v40  ;;  %vm1585_vm5 = vweird.f32 %v5158_v54  ;;  %v1618_v9 = vand.u32 2147483647, %v6679_v14  ;;  %v1655_v27 = vmul.f32 %v5253_v48, %v6691_v43 }
 0x165   : > { %6705 = vst [vmem:[#allocation59_spill] sm:$0xff] %v5281_v10  ;;  %v5287_v23 = vpop.eup %2674  ;;  %v1572_v18 = vsel %vm5263_vm7, %v5112_v35, %v1568_v4  ;;  %v1606_v3 = vor.u32 1.1754944e-38, %v1605_v44  ;;  %v1633_v29 = vand.u32 2147483647, %v6682_v41  ;;  %v1635_v13 = vand.u32 2147483648, %v6682_v41  ;;  %vm5302_vm8 = vmor %vm1584_vm0, %vm1585_vm5 }
 0x166   : > { %v1583_v32 = vadd.f32 %v5158_v54, %v1582_v62  ;;  %v1597_v40 = vmul.f32 %v5200_v57, %v1596_v47  ;;  %vm5296_vm12 = vcmp.eq.f32.partialorder %v1603_v42, 8.507059e+37  ;;  %v1626_v51 = vsub.f32 1.0, %v1625_v17 }
 0x167   : > { %v1641_v30 = vsub.f32 1.0, %v1640_v21  ;;  %v1612_v35 = vmul.f32 %v5206_v59, %v1611_v26  ;;  %v1621_v4 = vor.u32 1.1754944e-38, %v1620_v19  ;;  %vm1629_vm14 = vweird.f32 %v6682_v41 }
 0x168   : > { %vm1644_vm10 = vweird.f32 %v6685_v20  ;;  %v5311_v42 = vsel %vm5230_vm6, %v1576_v52, %v1572_v18  ;;  %vm1600_vm13 = vweird.f32 %v5200_v57  ;;  %vm5314_vm15 = vcmp.eq.f32.partialorder %v1618_v9, 8.507059e+37  ;;  %v5468_v9 = vld [vmem:[%s2964_s26 + $0x20] sm:$0xff] }
 0x169   : > { %6710 = vst [vmem:[#allocation60_spill] sm:$0xff] %v5311_v42  ;;  %v1656_v15 = vsub.f32 1.0, %v1655_v27  ;;  %v1670_v62 = vmul.f32 %v5287_v23, %v6697_v58  ;;  %v5320_v47 = vpop.eup %2676  ;;  %vm1615_vm4 = vweird.f32 %v5206_v59  ;;  %v1636_v17 = vor.u32 1.1754944e-38, %v1635_v13  ;;  %vm5337_vm1 = vmor %vm1599_vm3, %vm1600_vm13 }
 0x16a   : > { %v1648_v21 = vand.u32 2147483647, %v6685_v20  ;;  %v1650_v38 = vand.u32 2147483648, %v6685_v20  ;;  %v1587_v52 = vsel %vm5302_vm8, %v5158_v54, %v1583_v32  ;;  %v1598_v26 = vadd.f32 %v5200_v57, %v1597_v40  ;;  %vm5347_vm7 = vmor %vm1614_vm2, %vm1615_vm4  ;;  %v6719_v32 = vld [vmem:[#allocation68_spill] sm:$0xff]  ;;  %6741 = vst [vmem:[#allocation67_spill] sm:$0xff] %v5468_v9 }
 0x16b   : > { %v1627_v19 = vmul.f32 %v5222_v7, %v1626_v51  ;;  %vm5330_vm0 = vcmp.eq.f32.partialorder %v1633_v29, 8.507059e+37  ;;  %v1642_v27 = vmul.f32 %v5237_v49, %v1641_v30  ;;  %v1613_v13 = vadd.f32 %v5206_v59, %v1612_v35  ;;  %6742 = vst [vmem:[#allocation68_spill] sm:$0xff] %v5471_v45 }
 0x16c   : > { %vm1630_vm6 = vweird.f32 %v5222_v7  ;;  %vm1645_vm11 = vweird.f32 %v5237_v49  ;;  %v1663_v54 = vand.u32 2147483647, %v6691_v43  ;;  %v1657_v30 = vmul.f32 %v5253_v48, %v1656_v15 }
 0x16d   : > { %v1671_v8 = vsub.f32 1.0, %v1670_v62  ;;  %v1685_v29 = vmul.f32 %v5320_v47, %v6704_v1  ;;  %2678 = vrcp.f32 %v6719_v32  ;;  %v5357_v40 = vsel %vm5268_vm9, %v1591_v37, %v1587_v52  ;;  %vm5371_vm5 = vmor %vm1629_vm14, %vm1630_vm6 }
 0x16e   : > { %6720 = vst [vmem:[#allocation61_spill] sm:$0xff] %v5357_v40  ;;  %vm5359_vm3 = vcmp.eq.f32.partialorder %v1648_v21, 8.507059e+37  ;;  %vm1659_vm2 = vweird.f32 %v6691_v43  ;;  %v1665_v14 = vand.u32 2147483648, %v6691_v43  ;;  %v1602_v35 = vsel %vm5337_vm1, %v5200_v57, %v1598_v26  ;;  %vm5384_vm8 = vmor %vm1644_vm10, %vm1645_vm11 }
 0x16f   : > { %v1628_v15 = vadd.f32 %v5222_v7, %v1627_v19  ;;  %v1643_v37 = vadd.f32 %v5237_v49, %v1642_v27  ;;  %vm1660_vm9 = vweird.f32 %v5253_v48  ;;  %v1617_v62 = vsel %vm5347_vm7, %v5206_v59, %v1613_v13 }
 0x170   : > { %v1651_v41 = vor.u32 1.1754944e-38, %v1650_v38  ;;  %vm5388_vm14 = vcmp.eq.f32.partialorder %v1663_v54, 8.507059e+37  ;;  %v1678_v52 = vand.u32 2147483647, %v6697_v58  ;;  %v1658_v26 = vadd.f32 %v5253_v48, %v1657_v30  ;;  %vm5402_vm10 = vmor %vm1659_vm2, %vm1660_vm9  ;;  %v5494_v38 = vld [vmem:[%s2964_s26 + $0x48] sm:$0xff] }
 0x171   : > { %v1672_v19 = vmul.f32 %v5287_v23, %v1671_v8  ;;  %v1680_v59 = vand.u32 2147483648, %v6697_v58  ;;  %v1686_v27 = vsub.f32 1.0, %v1685_v29  ;;  %v5398_v20 = vsel %vm5296_vm12, %v1606_v3, %v1602_v35  ;;  %v5429_v8 = vld [vmem:[%s2964_s26] sm:$0xff]  ;;  %v5440_v35 = vld [vmem:[%s2964_s26 + $0x10] sm:$0xff]  ;;  %6746 = vst [vmem:[#allocation76_spill] sm:$0xff] %v5494_v38  ;;  %v5576_v30 = vld [vmem:[%s2964_s26 + $0xa8] sm:$0xff] }
 0x172   : > { %v1666_v18 = vor.u32 1.1754944e-38, %v1665_v14  ;;  %vm1674_vm13 = vweird.f32 %v6697_v58  ;;  %v1693_v13 = vand.u32 2147483647, %v6704_v1  ;;  %v1632_v10 = vsel %vm5371_vm5, %v5222_v7, %v1628_v15  ;;  %6733 = vst [vmem:[#allocation62_spill] sm:$0xff] %v5429_v8  ;;  %v5437_v14 = vld [vmem:[%s2964_s26 + $0x8] sm:$0xff]  ;;  %v5443_v15 = vld [vmem:[%s2964_s26 + $0x18] sm:$0xff] }
 0x173   : > { %v5408_v54 = vpop.eup %2678  ;;  %v1647_v43 = vsel %vm5384_vm8, %v5237_v49, %v1643_v37  ;;  %vm1675_vm12 = vweird.f32 %v5287_v23  ;;  %v1695_v3 = vand.u32 2147483648, %v6704_v1  ;;  %v5420_v51 = vsel %vm5314_vm15, %v1621_v4, %v1617_v62  ;;  %6734 = vst [vmem:[#allocation63_spill] sm:$0xff] %v5437_v14  ;;  %v5535_v37 = vld [vmem:[%s2964_s26 + $0x80] sm:$0xff]  ;;  %v5627_v62 = vld [vmem:[%s2964_s26 + $0xe8] sm:$0xff] }
 0x174   : > { %vm5422_vm4 = vcmp.eq.f32.partialorder %v1678_v52, 8.507059e+37  ;;  %vm1689_vm1 = vweird.f32 %v6704_v1  ;;  %v1710_v7 = vand.u32 2147483648, %v6719_v32  ;;  %v1662_v49 = vsel %vm5402_vm10, %v5253_v48, %v1658_v26  ;;  %6735 = vst [vmem:[#allocation64_spill] sm:$0xff] %v5440_v35  ;;  %vm5457_vm15 = vmor %vm1674_vm13, %vm1675_vm12  ;;  %v5479_v52 = vld [vmem:[%s2964_s26 + $0x38] sm:$0xff]  ;;  %v5482_v26 = vld [vmem:[%s2964_s26 + $0x40] sm:$0xff] }
 0x175   : > { %v1673_v44 = vadd.f32 %v5287_v23, %v1672_v19  ;;  %v1681_v4 = vor.u32 1.1754944e-38, %v1680_v59  ;;  %v1687_v29 = vmul.f32 %v5320_v47, %v1686_v27  ;;  %6736 = vst [vmem:[#allocation66_spill] sm:$0xff] %v5443_v15  ;;  %v5447_v60 = vsel %vm5330_vm0, %v1636_v17, %v1632_v10  ;;  %v5500_v10 = vld [vmem:[%s2964_s26 + $0x58] sm:$0xff] }
 0x176   : > { %v5451_v48 = vsel %vm5359_vm3, %v1651_v41, %v1647_v43  ;;  %vm5461_vm6 = vcmp.eq.f32.partialorder %v1693_v13, 8.507059e+37  ;;  %v1700_v17 = vmul.f32 %v5408_v54, %v6719_v32  ;;  %vm1690_vm0 = vweird.f32 %v5320_v47  ;;  %v5476_v41 = vld [vmem:[%s2964_s26 + $0x30] sm:$0xff]  ;;  %6744 = vst [vmem:[#allocation74_spill] sm:$0xff] %v5479_v52 }
 0x177   : > { %v1696_v58 = vor.u32 1.1754944e-38, %v1695_v3  ;;  %v1708_v57 = vand.u32 2147483647, %v6719_v32  ;;  %6743 = vst [vmem:[#allocation73_spill] sm:$0xff] %v5476_v41  ;;  %v1790_v19 = vmul.f32 %v5429_v8, %v3658_v53  ;;  %v5488_v59 = vsel %vm5388_vm14, %v1666_v18, %v1662_v49  ;;  %v5497_v13 = vld [vmem:[%s2964_s26 + $0x50] sm:$0xff]  ;;  %v5514_v49 = vld [vmem:[%s2964_s26 + $0x68] sm:$0xff]  ;;  %vm5527_vm7 = vmor %vm1689_vm1, %vm1690_vm0 }
 0x178   : > { %6745 = vst [vmem:[#allocation75_spill] sm:$0xff] %v5482_v26  ;;  %vm1704_vm11 = vweird.f32 %v6719_v32  ;;  %v5491_v27 = vor.u32 1.1754944e-38, %v1710_v7  ;;  %v1791_v43 = vmul.f32 %v5437_v14, %v3669_v61  ;;  %v1792_v21 = vmul.f32 %v5440_v35, %v3674_v12  ;;  %v5511_v7 = vld [vmem:[%s2964_s26 + $0x60] sm:$0xff]  ;;  %v5517_v8 = vld [vmem:[%s2964_s26 + $0x70] sm:$0xff] }
 0x179   : > { %6747 = vst [vmem:[#allocation77_spill] sm:$0xff] %v5497_v13  ;;  %v1677_v18 = vsel %vm5457_vm15, %v5287_v23, %v1673_v44  ;;  %v1688_v3 = vadd.f32 %v5320_v47, %v1687_v29  ;;  %v1793_v14 = vmul.f32 %v5443_v15, %v3681_v0  ;;  %v1794_v35 = vmul.f32 %v5468_v9, %v3686_v28  ;;  %v5532_v29 = vld [vmem:[%s2964_s26 + $0x78] sm:$0xff]  ;;  %v5544_v28 = vld [vmem:[%s2964_s26 + $0x88] sm:$0xff]  ;;  %v5547_v0 = vld [vmem:[%s2964_s26 + $0x90] sm:$0xff] }
 0x17a   : > { %6748 = vst [vmem:[#allocation78_spill] sm:$0xff] %v5500_v10  ;;  %v1701_v44 = vsub.f32 1.0, %v1700_v17  ;;  %v1795_v15 = vmul.f32 %v5471_v45, %v3740_v39  ;;  %v1796_v9 = vmul.f32 %v5476_v41, %v3745_v24  ;;  %v1797_v1 = vmul.f32 %v5479_v52, %v3760_v50  ;;  %v5550_v17 = vld [vmem:[%s2964_s26 + $0x98] sm:$0xff] }
 0x17b   : > { %6749 = vst [vmem:[#allocation79_spill] sm:$0xff] %v5511_v7  ;;  %v1798_v12 = vmul.f32 %v5482_v26, %v3784_v55  ;;  %v1799_v45 = vmul.f32 %v5494_v38, %v3789_v11  ;;  %v1800_v39 = vmul.f32 %v5497_v13, %v3820_v16  ;;  %v1801_v41 = vmul.f32 %v5500_v10, %v3870_v6  ;;  %v5573_v10 = vld [vmem:[%s2964_s26 + $0xa0] sm:$0xff] }
 0x17c   : > { %6750 = vst [vmem:[#allocation80_spill] sm:$0xff] %v5514_v49  ;;  %v5562_v52 = vsel %vm5422_vm4, %v1681_v4, %v1677_v18  ;;  %vm1705_vm3 = vweird.f32 %v5408_v54  ;;  %v1802_v26 = vmul.f32 %v5511_v7, %v3908_v34  ;;  %v1803_v38 = vmul.f32 %v5514_v49, %v3914_v63  ;;  %v5579_v4 = vld [vmem:[%s2964_s26 + $0xb0] sm:$0xff] }
 0x17d   : > { %6751 = vst [vmem:[#allocation81_spill] sm:$0xff] %v5517_v8  ;;  %v1692_v13 = vsel %vm5527_vm7, %v5320_v47, %v1688_v3  ;;  %v1804_v18 = vmul.f32 %v5517_v8, %v3952_v36  ;;  %v1805_v7 = vmul.f32 %v5532_v29, %v3982_v33  ;;  %v1806_v49 = vmul.f32 %v5535_v37, %v3989_v56  ;;  %v6769_v33 = vld [vmem:[#allocation35_spill] sm:$0xff]  ;;  %vm5643_vm5 = vmor %vm1704_vm11, %vm1705_vm3  ;;  %v5732_v8 = vld [vmem:[%s2964_s26 + $0x178] sm:$0xff] }
 0x17e   : > { %6754 = vst [vmem:[#allocation82_spill] sm:$0xff] %v5532_v29  ;;  %v1702_v63 = vmul.f32 %v5408_v54, %v1701_v44  ;;  %v1807_v47 = vmul.f32 %v5544_v28, %v4031_v25  ;;  %v1808_v3 = vmul.f32 %v5547_v0, %v4070_v31  ;;  %v1809_v23 = vmul.f32 %v5550_v17, %v4074_v46  ;;  %v5599_v29 = vld [vmem:[%s2964_s26 + $0xb8] sm:$0xff]  ;;  %v5605_v44 = vld [vmem:[%s2964_s26 + $0xc8] sm:$0xff] }
 0x17f   : > { %6755 = vst [vmem:[#allocation83_spill] sm:$0xff] %v5535_v37  ;;  %vm5594_vm2 = vcmp.eq.f32.partialorder %v1708_v57, 8.507059e+37  ;;  %v5602_v37 = vld [vmem:[%s2964_s26 + $0xc0] sm:$0xff]  ;;  %v1879_v25 = vadd.f32 %v1795_v15, %v1791_v43  ;;  %v1896_v56 = vadd.f32 %v1796_v9, %v1792_v21  ;;  %v5609_v31 = vsel %vm5461_vm6, %v1696_v58, %v1692_v13  ;;  %v5621_v15 = vld [vmem:[%s2964_s26 + $0xd8] sm:$0xff]  ;;  %v5631_v21 = vld [vmem:[%s2964_s26 + $0xf0] sm:$0xff] }
 0x180   : > { %6756 = vst [vmem:[#allocation84_spill] sm:$0xff] %v5544_v28  ;;  %v1862_v28 = vadd.f32 %v1794_v35, %v1790_v19  ;;  %v1810_v57 = vmul.f32 %v5573_v10, %v4106_v22  ;;  %v1811_v46 = vmul.f32 %v5576_v30, %v4138_v5  ;;  %v1812_v35 = vmul.f32 %v5579_v4, %v6769_v33  ;;  %v6775_v5 = vld [vmem:[#allocation38_spill] sm:$0xff] }
 0x181   : > { %6757 = vst [vmem:[#allocation85_spill] sm:$0xff] %v5547_v0  ;;  %v1913_v0 = vadd.f32 %v1797_v1, %v1793_v14  ;;  %v5624_v14 = vld [vmem:[%s2964_s26 + $0xe0] sm:$0xff]  ;;  %v1880_v58 = vadd.f32 %v1879_v25, %v1799_v45  ;;  %v1897_v19 = vadd.f32 %v1896_v56, %v1800_v39  ;;  %v1703_v43 = vadd.f32 %v5408_v54, %v1702_v63  ;;  %v6773_v1 = vld [vmem:[#allocation36_spill] sm:$0xff] }
 0x182   : > { %6758 = vst [vmem:[#allocation86_spill] sm:$0xff] %v5550_v17  ;;  %v5612_v17 = vld [vmem:[%s2964_s26 + $0xd0] sm:$0xff]  ;;  %v1863_v9 = vadd.f32 %v1862_v28, %v1798_v12  ;;  %v1815_v12 = vmul.f32 %v5605_v44, %v6775_v5  ;;  %v5648_v28 = vld [vmem:[%s2964_s26 + $0xf8] sm:$0xff]  ;;  %v5651_v39 = vld [vmem:[%s2964_s26 + $0x100] sm:$0xff] }
 0x183   : > { %6759 = vst [vmem:[#allocation87_spill] sm:$0xff] %v5562_v52  ;;  %v1914_v13 = vadd.f32 %v1913_v0, %v1801_v41  ;;  %v1881_v56 = vadd.f32 %v1880_v58, %v1803_v38  ;;  %v1898_v25 = vadd.f32 %v1897_v19, %v1804_v18  ;;  %v5654_v41 = vld [vmem:[%s2964_s26 + $0x108] sm:$0xff]  ;;  %v6781_v5 = vld [vmem:[#allocation40_spill] sm:$0xff]  ;;  %v5671_v18 = vld [vmem:[%s2964_s26 + $0x120] sm:$0xff] }
 0x184   : > { %6760 = vst [vmem:[#allocation88_spill] sm:$0xff] %v5576_v30  ;;  %v1813_v30 = vmul.f32 %v5599_v29, %v6773_v1  ;;  %v1864_v63 = vadd.f32 %v1863_v9, %v1802_v26  ;;  %v1817_v32 = vmul.f32 %v5621_v15, %v6781_v5  ;;  %v6783_v1 = vld [vmem:[#allocation42_spill] sm:$0xff]  ;;  %v5665_v38 = vld [vmem:[%s2964_s26 + $0x110] sm:$0xff]  ;;  %v6787_v5 = vld [vmem:[#allocation43_spill] sm:$0xff] }
 0x185   : > { %6761 = vst [vmem:[#allocation89_spill] sm:$0xff] %v5579_v4  ;;  %v6774_v4 = vld [vmem:[#allocation37_spill] sm:$0xff]  ;;  %v1915_v45 = vadd.f32 %v1914_v13, %v1805_v7  ;;  %v1819_v26 = vmul.f32 %v5627_v62, %v6783_v1  ;;  %v1882_v58 = vadd.f32 %v1881_v56, %v1807_v47  ;;  %v1899_v19 = vadd.f32 %v1898_v25, %v1808_v3  ;;  %v5686_v47 = vld [vmem:[%s2964_s26 + $0x130] sm:$0xff]  ;;  %v6794_v56 = vld [vmem:[#allocation15_spill] sm:$0xff] }
 0x186   : > { %6764 = vst [vmem:[#allocation90_spill] sm:$0xff] %v5599_v29  ;;  %v1814_v33 = vmul.f32 %v5602_v37, %v6774_v4  ;;  %v6782_v4 = vld [vmem:[#allocation41_spill] sm:$0xff]  ;;  %v1865_v9 = vadd.f32 %v1864_v63, %v1806_v49  ;;  %v5683_v49 = vld [vmem:[%s2964_s26 + $0x128] sm:$0xff]  ;;  %v5692_v63 = vld [vmem:[%s2964_s26 + $0x140] sm:$0xff]  ;;  %v1823_v25 = vmul.f32 %v5654_v41, %v6794_v56 }
 0x187   : > { %6765 = vst [vmem:[#allocation91_spill] sm:$0xff] %v5602_v37  ;;  %v6780_v37 = vld [vmem:[#allocation39_spill] sm:$0xff]  ;;  %v1818_v29 = vmul.f32 %v5624_v14, %v6782_v4  ;;  %v5668_v7 = vld [vmem:[%s2964_s26 + $0x118] sm:$0xff]  ;;  %v1916_v13 = vadd.f32 %v1915_v45, %v1809_v23  ;;  %v6789_v4 = vld [vmem:[#allocation14_spill] sm:$0xff] }
 0x188   : > { %6766 = vst [vmem:[#allocation92_spill] sm:$0xff] %v5605_v44  ;;  %v1816_v44 = vmul.f32 %v5612_v17, %v6780_v37  ;;  %v5689_v3 = vld [vmem:[%s2964_s26 + $0x138] sm:$0xff]  ;;  %v1866_v23 = vadd.f32 %v1865_v9, %v1810_v57  ;;  %v6795_v45 = vld [vmem:[#allocation16_spill] sm:$0xff]  ;;  %v5703_v57 = vld [vmem:[%s2964_s26 + $0x148] sm:$0xff] }
 0x189   : > { %6767 = vst [vmem:[#allocation93_spill] sm:$0xff] %v5609_v31  ;;  %v1917_v0 = vadd.f32 %v1916_v13, %v1813_v30  ;;  %v5706_v30 = vld [vmem:[%s2964_s26 + $0x150] sm:$0xff] }
 0x18a   : > { %6768 = vst [vmem:[#allocation94_spill] sm:$0xff] %v5612_v17  ;;  %v1822_v17 = vmul.f32 %v5651_v39, %v6789_v4  ;;  %v6796_v4 = vld [vmem:[#allocation18_spill] sm:$0xff]  ;;  %v1867_v9 = vadd.f32 %v1866_v23, %v1814_v33  ;;  %v6803_v33 = vld [vmem:[#allocation17_spill] sm:$0xff] }
 0x18b   : > { %6770 = vst [vmem:[#allocation95_spill] sm:$0xff] %v5621_v15  ;;  %v1707_v15 = vsel %vm5643_vm5, %v5408_v54, %v1703_v43  ;;  %v1883_v54 = vadd.f32 %v1882_v58, %v1811_v46  ;;  %v1900_v43 = vadd.f32 %v1899_v19, %v1812_v35  ;;  %v1826_v46 = vmul.f32 %v5671_v18, %v4604_v2  ;;  %v5709_v35 = vld [vmem:[%s2964_s26 + $0x158] sm:$0xff]  ;;  %v6802_v2 = vld [vmem:[#allocation27_spill] sm:$0xff] }
 0x18c   : > { %6771 = vst [vmem:[#allocation96_spill] sm:$0xff] %v5624_v14  ;;  %v1820_v14 = vmul.f32 %v5631_v21, %v6787_v5  ;;  %v1918_v13 = vadd.f32 %v1917_v0, %v1817_v32  ;;  %v5729_v32 = vld [vmem:[%s2964_s26 + $0x170] sm:$0xff] }
 0x18d   : > { %6772 = vst [vmem:[#allocation97_spill] sm:$0xff] %v5627_v62  ;;  %v6788_v62 = vld [vmem:[#allocation44_spill] sm:$0xff]  ;;  %v1884_v58 = vadd.f32 %v1883_v54, %v1815_v12  ;;  %v1901_v19 = vadd.f32 %v1900_v43, %v1816_v44  ;;  %v1829_v44 = vmul.f32 %v5689_v3, %v6803_v33  ;;  %v5726_v12 = vld [vmem:[%s2964_s26 + $0x168] sm:$0xff]  ;;  %v5735_v43 = vld [vmem:[%s2964_s26 + $0x180] sm:$0xff] }
 0x18e   : > { %6778 = vst [vmem:[#allocation98_spill] sm:$0xff] %v5648_v28  ;;  %v1821_v1 = vmul.f32 %v5648_v28, %v6788_v62  ;;  %v1825_v28 = vmul.f32 %v5668_v7, %v6796_v4  ;;  %v6801_v4 = vld [vmem:[#allocation24_spill] sm:$0xff]  ;;  %v6810_v33 = vld [vmem:[#allocation46_spill] sm:$0xff] }
 0x18f   : > { %6779 = vst [vmem:[#allocation99_spill] sm:$0xff] %v5651_v39  ;;  %v1824_v39 = vmul.f32 %v5665_v38, %v6795_v45  ;;  %v1828_v45 = vmul.f32 %v5686_v47, %v6802_v2  ;;  %v1902_v23 = vadd.f32 %v1901_v19, %v1820_v14  ;;  %v6808_v0 = vld [vmem:[#allocation28_spill] sm:$0xff]  ;;  %v6809_v2 = vld [vmem:[#allocation45_spill] sm:$0xff] }
 0x190   : > { %6784 = vst [vmem:[#allocation39_spill] sm:$0xff] %v5665_v38  ;;  %v5714_v38 = vsel %vm5594_vm2, %v5491_v27, %v1707_v15  ;;  %v1868_v27 = vadd.f32 %v1867_v9, %v1818_v29  ;;  %v1885_v15 = vadd.f32 %v1884_v58, %v1819_v26  ;;  %v1919_v54 = vadd.f32 %v1918_v13, %v1821_v1  ;;  %v5746_v26 = vld [vmem:[%s2964_s26 + $0x188] sm:$0xff]  ;;  %v5749_v14 = vld [vmem:[%s2964_s26 + $0x190] sm:$0xff]  ;;  %v5752_v1 = vld [vmem:[%s2964_s26 + $0x198] sm:$0xff] }
 0x191   : > { %6785 = vst [vmem:[#allocation100_spill] sm:$0xff] %v5668_v7  ;;  %v5717_v7 = vld [vmem:[%s2964_s26 + $0x160] sm:$0xff]  ;;  %v1903_v19 = vadd.f32 %v1902_v23, %v1824_v39  ;;  %v5772_v39 = vld [vmem:[%s2964_s26 + $0x1b8] sm:$0xff] }
 0x192   : > { %6786 = vst [vmem:[#allocation101_spill] sm:$0xff] %v5671_v18  ;;  %v1827_v18 = vmul.f32 %v5683_v49, %v6801_v4  ;;  %v6811_v4 = vld [vmem:[#allocation47_spill] sm:$0xff]  ;;  %v1869_v9 = vadd.f32 %v1868_v27, %v1822_v17  ;;  %v1886_v58 = vadd.f32 %v1885_v15, %v1823_v25  ;;  %v1920_v13 = vadd.f32 %v1919_v54, %v1825_v28  ;;  %v5769_v28 = vld [vmem:[%s2964_s26 + $0x1b0] sm:$0xff] }
 0x193   : > { %6790 = vst [vmem:[#allocation43_spill] sm:$0xff] %v5683_v49  ;;  %v1832_v49 = vmul.f32 %v5706_v30, %v6810_v33  ;;  %v1833_v29 = vmul.f32 %v5709_v35, %v6811_v4  ;;  %v6817_v33 = vld [vmem:[#allocation49_spill] sm:$0xff]  ;;  %v6818_v4 = vld [vmem:[#allocation19_spill] sm:$0xff]  ;;  %v1904_v23 = vadd.f32 %v1903_v19, %v1828_v45  ;;  %v5789_v45 = vld [vmem:[%s2964_s26 + $0x1d0] sm:$0xff] }
 0x194   : > { %6791 = vst [vmem:[#allocation44_spill] sm:$0xff] %v5686_v47  ;;  %v1830_v47 = vmul.f32 %v5692_v63, %v6808_v0  ;;  %v6819_v0 = vld [vmem:[#allocation20_spill] sm:$0xff]  ;;  %v5766_v25 = vld [vmem:[%s2964_s26 + $0x1a8] sm:$0xff]  ;;  %v1870_v27 = vadd.f32 %v1869_v9, %v1826_v46  ;;  %v1887_v15 = vadd.f32 %v1886_v58, %v1827_v18  ;;  %v1921_v54 = vadd.f32 %v1920_v13, %v1829_v44  ;;  %v5792_v44 = vld [vmem:[%s2964_s26 + $0x1d8] sm:$0xff] }
 0x195   : > { %6792 = vst [vmem:[#allocation102_spill] sm:$0xff] %v5689_v3  ;;  %v1831_v3 = vmul.f32 %v5703_v57, %v6809_v2  ;;  %v6816_v2 = vld [vmem:[#allocation48_spill] sm:$0xff]  ;;  %v1837_v17 = vmul.f32 %v5732_v8, %v6819_v0  ;;  %v6826_v0 = vld [vmem:[#allocation22_spill] sm:$0xff]  ;;  %v5786_v18 = vld [vmem:[%s2964_s26 + $0x1c8] sm:$0xff]  ;;  %v1905_v19 = vadd.f32 %v1904_v23, %v1832_v49 }
 0x196   : > { %6793 = vst [vmem:[#allocation103_spill] sm:$0xff] %v5692_v63  ;;  %v1836_v63 = vmul.f32 %v5729_v32, %v6818_v4  ;;  %v6825_v4 = vld [vmem:[#allocation51_spill] sm:$0xff]  ;;  %v1871_v9 = vadd.f32 %v1870_v27, %v1830_v47  ;;  %v1922_v13 = vadd.f32 %v1921_v54, %v1833_v29  ;;  %v5809_v49 = vld [vmem:[%s2964_s26 + $0x1f0] sm:$0xff]  ;;  %v5812_v29 = vld [vmem:[%s2964_s26 + $0x1f8] sm:$0xff] }
 0x197   : > { %6797 = vst [vmem:[#allocation15_spill] sm:$0xff] %v5703_v57  ;;  %v5755_v57 = vld [vmem:[%s2964_s26 + $0x1a0] sm:$0xff]  ;;  %v1888_v58 = vadd.f32 %v1887_v15, %v1831_v3  ;;  %v5806_v3 = vld [vmem:[%s2964_s26 + $0x1e8] sm:$0xff] }
 0x198   : > { %6798 = vst [vmem:[#allocation104_spill] sm:$0xff] %v5706_v30  ;;  %v1834_v30 = vmul.f32 %v5717_v7, %v6816_v2  ;;  %v6827_v2 = vld [vmem:[#allocation23_spill] sm:$0xff]  ;;  %v1906_v23 = vadd.f32 %v1905_v19, %v1836_v63  ;;  %v1923_v54 = vadd.f32 %v1922_v13, %v1837_v17  ;;  %v5829_v63 = vld [vmem:[%s2964_s26 + $0x210] sm:$0xff]  ;;  %v5832_v17 = vld [vmem:[%s2964_s26 + $0x218] sm:$0xff] }
 0x199   : > { %6799 = vst [vmem:[#allocation105_spill] sm:$0xff] %v5709_v35  ;;  %v1835_v35 = vmul.f32 %v5726_v12, %v6817_v33  ;;  %v6824_v33 = vld [vmem:[#allocation50_spill] sm:$0xff]  ;;  %v1841_v46 = vmul.f32 %v5752_v1, %v6827_v2 }
 0x19a   : > { %6800 = vst [vmem:[#allocation106_spill] sm:$0xff] %v5717_v7  ;;  %v1840_v7 = vmul.f32 %v5749_v14, %v6826_v0  ;;  %v6832_v0 = vld [vmem:[#allocation53_spill] sm:$0xff]  ;;  %v6833_v2 = vld [vmem:[#allocation54_spill] sm:$0xff]  ;;  %v1872_v27 = vadd.f32 %v1871_v9, %v1834_v30 }
 0x19b   : > { %6804 = vst [vmem:[#allocation107_spill] sm:$0xff] %v5726_v12  ;;  %v5775_v12 = vld [vmem:[%s2964_s26 + $0x1c0] sm:$0xff]  ;;  %v1889_v15 = vadd.f32 %v1888_v58, %v1835_v35  ;;  %v5826_v35 = vld [vmem:[%s2964_s26 + $0x208] sm:$0xff]  ;;  %v1924_v13 = vadd.f32 %v1923_v54, %v1841_v46 }
 0x19c   : > { %6805 = vst [vmem:[#allocation108_spill] sm:$0xff] %v5729_v32  ;;  %v1838_v32 = vmul.f32 %v5735_v43, %v6824_v33  ;;  %v6834_v33 = vld [vmem:[#allocation25_spill] sm:$0xff]  ;;  %v1907_v19 = vadd.f32 %v1906_v23, %v1840_v7  ;;  %v1855_v54 = vmul.f32 %v5826_v35, %v5420_v51 }
 0x19d   : > { %6806 = vst [vmem:[#allocation109_spill] sm:$0xff] %v5732_v8  ;;  %v1839_v8 = vmul.f32 %v5746_v26, %v6825_v4  ;;  %v6831_v4 = vld [vmem:[#allocation52_spill] sm:$0xff]  ;;  %v1845_v47 = vmul.f32 %v5772_v39, %v6834_v33  ;;  %v6840_v33 = vld [vmem:[#allocation57_spill] sm:$0xff] }
 0x19e   : > { %6807 = vst [vmem:[#allocation110_spill] sm:$0xff] %v5735_v43  ;;  %v1844_v43 = vmul.f32 %v5769_v28, %v6833_v2  ;;  %v6839_v2 = vld [vmem:[#allocation56_spill] sm:$0xff]  ;;  %v1873_v9 = vadd.f32 %v1872_v27, %v1838_v32  ;;  %v5852_v7 = vld [vmem:[%s2964_s26 + $0x238] sm:$0xff] }
 0x19f   : > { %6812 = vst [vmem:[#allocation111_spill] sm:$0xff] %v5746_v26  ;;  %v5795_v26 = vld [vmem:[%s2964_s26 + $0x1e0] sm:$0xff]  ;;  %v1890_v58 = vadd.f32 %v1889_v15, %v1839_v8  ;;  %v5849_v32 = vld [vmem:[%s2964_s26 + $0x230] sm:$0xff]  ;;  %v1925_v15 = vadd.f32 %v1924_v13, %v1845_v47  ;;  %v1861_v47 = vmul.f32 %v5852_v7, %v5714_v38 }
 0x1a0   : > { %6813 = vst [vmem:[#allocation112_spill] sm:$0xff] %v5749_v14  ;;  %v1842_v14 = vmul.f32 %v5755_v57, %v6831_v4  ;;  %v6841_v4 = vld [vmem:[#allocation26_spill] sm:$0xff]  ;;  %v1908_v27 = vadd.f32 %v1907_v19, %v1844_v43 }
 0x1a1   : > { %6814 = vst [vmem:[#allocation113_spill] sm:$0xff] %v5752_v1  ;;  %v1843_v1 = vmul.f32 %v5766_v25, %v6832_v0  ;;  %v6838_v0 = vld [vmem:[#allocation55_spill] sm:$0xff]  ;;  %v1849_v30 = vmul.f32 %v5792_v44, %v6841_v4  ;;  %v1853_v4 = vmul.f32 %v5812_v29, %v5357_v40 }
 0x1a2   : > { %6815 = vst [vmem:[#allocation114_spill] sm:$0xff] %v5755_v57  ;;  %v1848_v57 = vmul.f32 %v5789_v45, %v6840_v33  ;;  %v1874_v8 = vadd.f32 %v1873_v9, %v1842_v14 }
 0x1a3   : > { %6820 = vst [vmem:[#allocation115_spill] sm:$0xff] %v5766_v25  ;;  %v5815_v25 = vld [vmem:[%s2964_s26 + $0x200] sm:$0xff]  ;;  %v1891_v46 = vadd.f32 %v1890_v58, %v1843_v1  ;;  %v1860_v1 = vmul.f32 %v5849_v32, %v5609_v31 }
 0x1a4   : > { %6821 = vst [vmem:[#allocation116_spill] sm:$0xff] %v5769_v28  ;;  %v1846_v28 = vmul.f32 %v5775_v12, %v6838_v0  ;;  %v5846_v0 = vld [vmem:[%s2964_s26 + $0x228] sm:$0xff]  ;;  %v1854_v23 = vmul.f32 %v5815_v25, %v5398_v20 }
 0x1a5   : > { %6822 = vst [vmem:[#allocation117_spill] sm:$0xff] %v5772_v39  ;;  %v1847_v39 = vmul.f32 %v5786_v18, %v6839_v2  ;;  %v1859_v14 = vmul.f32 %v5846_v0, %v5562_v52 }
 0x1a6   : > { %6823 = vst [vmem:[#allocation118_spill] sm:$0xff] %v5775_v12  ;;  %v5835_v12 = vld [vmem:[%s2964_s26 + $0x220] sm:$0xff]  ;;  %v1875_v40 = vadd.f32 %v1874_v8, %v1846_v28  ;;  %v6850_v8 = vld [vmem:[#allocation69_spill] sm:$0xff] }
 0x1a7   : > { %6828 = vst [vmem:[#allocation119_spill] sm:$0xff] %v5786_v18  ;;  %v6843_v18 = vld [vmem:[#allocation58_spill] sm:$0xff]  ;;  %v1858_v43 = vmul.f32 %v5835_v12, %v5488_v59 }
 0x1a8   : > { %6829 = vst [vmem:[#allocation120_spill] sm:$0xff] %v5789_v45  ;;  %v1850_v2 = vmul.f32 %v5795_v26, %v6843_v18  ;;  %v6844_v45 = vld [vmem:[#allocation59_spill] sm:$0xff]  ;;  %v6848_v28 = vld [vmem:[#allocation62_spill] sm:$0xff] }
 0x1a9   : > { %6830 = vst [vmem:[#allocation121_spill] sm:$0xff] %v5792_v44  ;;  %v1851_v33 = vmul.f32 %v5806_v3, %v6844_v45  ;;  %v1852_v44 = vmul.f32 %v5809_v49, %v5311_v42  ;;  %v1892_v42 = vadd.f32 %v1891_v46, %v1847_v39  ;;  %v1926_v45 = vadd.f32 %v1925_v15, %v1849_v30  ;;  %v6849_v39 = vld [vmem:[#allocation63_spill] sm:$0xff]  ;;  %v6851_v46 = vld [vmem:[#allocation64_spill] sm:$0xff]  ;;  %v6852_v15 = vld [vmem:[#allocation70_spill] sm:$0xff] }
 0x1aa   : > { %6835 = vst [vmem:[#allocation122_spill] sm:$0xff] %v5806_v3  ;;  %v1909_v3 = vadd.f32 %v1908_v27, %v1848_v57  ;;  %v1876_v9 = vadd.f32 %v1875_v40, %v1850_v2  ;;  %v1942_v57 = vadd.f32 %v6848_v28, %v3658_v53  ;;  %v1943_v30 = vadd.f32 %v6849_v39, %v3669_v61  ;;  %v1786_v2 = vld [vmem:[#allocation7] sm:$0xff]  ;;  %v1788_v40 = vld [vmem:[#allocation7 + $0x10] sm:$0xff]  ;;  %v6858_v61 = vld [vmem:[#allocation73_spill] sm:$0xff] }
 0x1ab   : > { %6836 = vst [vmem:[#allocation123_spill] sm:$0xff] %v5809_v49  ;;  %v1856_v49 = vmul.f32 %v5829_v63, %v5447_v60  ;;  %v1893_v58 = vadd.f32 %v1892_v42, %v1851_v33  ;;  %v1927_v13 = vadd.f32 %v1926_v45, %v1853_v4  ;;  %v1944_v27 = vadd.f32 %v6851_v46, %v6850_v8  ;;  %v1787_v42 = vld [vmem:[#allocation7 + $0x8] sm:$0xff]  ;;  %v6856_v53 = vld [vmem:[#allocation72_spill] sm:$0xff]  ;;  %v6859_v39 = vld [vmem:[#allocation74_spill] sm:$0xff] }
 0x1ac   : > { %6837 = vst [vmem:[#allocation124_spill] sm:$0xff] %v5812_v29  ;;  %v1857_v29 = vmul.f32 %v5832_v17, %v5451_v48  ;;  %v1910_v19 = vadd.f32 %v1909_v3, %v1852_v44  ;;  %v6854_v4 = vld [vmem:[#allocation71_spill] sm:$0xff]  ;;  %v6857_v44 = vld [vmem:[#allocation68_spill] sm:$0xff]  ;;  %v1948_v28 = vadd.f32 %v6858_v61, %v3745_v24  ;;  %v1949_v8 = vadd.f32 %v6859_v39, %v3760_v50  ;;  %v6862_v46 = vld [vmem:[#allocation77_spill] sm:$0xff] }
 0x1ad   : > { %6842 = vst [vmem:[#allocation125_spill] sm:$0xff] %v5835_v12  ;;  %v1894_v31 = vadd.f32 %v1893_v58, %v1855_v54  ;;  %v6855_v33 = vld [vmem:[#allocation67_spill] sm:$0xff]  ;;  %v1947_v3 = vadd.f32 %v6857_v44, %v6856_v53 }
 0x1ae   : > { %6845 = vst [vmem:[#allocation58_spill] sm:$0xff] %v5846_v0  ;;  %v6853_v0 = vld [vmem:[#allocation66_spill] sm:$0xff]  ;;  %v1911_v12 = vadd.f32 %v1910_v19, %v1856_v49  ;;  %v1946_v45 = vadd.f32 %v6855_v33, %v6854_v4  ;;  %v6861_v19 = vld [vmem:[#allocation76_spill] sm:$0xff]  ;;  %v6872_v44 = vld [vmem:[#allocation83_spill] sm:$0xff] }
 0x1af   : > { %6846 = vst [vmem:[#allocation126_spill] sm:$0xff] %v5849_v32  ;;  %v1945_v52 = vadd.f32 %v6853_v0, %v6852_v15  ;;  %v1877_v32 = vadd.f32 %v1876_v9, %v1854_v23  ;;  %v1789_v0 = vld [vmem:[#allocation7 + $0x18] sm:$0xff]  ;;  %v1895_v54 = vadd.f32 %v1894_v31, %v1859_v14  ;;  %v6860_v9 = vld [vmem:[#allocation75_spill] sm:$0xff]  ;;  %v1952_v15 = vadd.f32 %v6862_v46, %v3820_v16  ;;  %v6863_v4 = vld [vmem:[#allocation78_spill] sm:$0xff] }
 0x1b0   : > { %6847 = vst [vmem:[#allocation127_spill] sm:$0xff] %v5852_v7  ;;  %v1928_v7 = vadd.f32 %v1927_v13, %v1857_v29  ;;  %v1912_v49 = vadd.f32 %v1911_v12, %v1860_v1  ;;  %v1950_v58 = vadd.f32 %v6860_v9, %v3784_v55  ;;  %v1951_v13 = vadd.f32 %v6861_v19, %v3789_v11  ;;  %v6864_v31 = vld [vmem:[#allocation79_spill] sm:$0xff]  ;;  %v6865_v11 = vld [vmem:[#allocation65_spill] sm:$0xff]  ;;  %v6866_v16 = vld [vmem:[#allocation80_spill] sm:$0xff] }
 0x1b1   : > { %v1878_v23 = vadd.f32 %v1877_v32, %v1858_v43  ;;  %v1953_v24 = vadd.f32 %v6863_v4, %v3870_v6  ;;  %v1931_v50 = vadd.f32 %v1895_v54, %v1787_v42  ;;  %v1954_v12 = vadd.f32 %v6864_v31, %v3908_v34  ;;  %v6867_v6 = vld [vmem:[#allocation81_spill] sm:$0xff]  ;;  %v6869_v14 = vld [vmem:[#allocation82_spill] sm:$0xff]  ;;  %v6873_v39 = vld [vmem:[#allocation31_spill] sm:$0xff] }
 0x1b2   : > { %v1929_v29 = vadd.f32 %v1928_v7, %v1861_v47  ;;  %v1932_v53 = vadd.f32 %v1912_v49, %v1788_v40  ;;  %v1955_v32 = vadd.f32 %v6866_v16, %v6865_v11  ;;  %v1956_v7 = vadd.f32 %v6867_v6, %v3952_v36  ;;  %v6868_v43 = vld [vmem:[#allocation29_spill] sm:$0xff]  ;;  %v6871_v40 = vld [vmem:[#allocation30_spill] sm:$0xff]  ;;  %v6880_v9 = vld [vmem:[#allocation88_spill] sm:$0xff] }
 0x1b3   : > { %v1930_v33 = vadd.f32 %v1878_v23, %v1786_v2  ;;  %v1957_v1 = vadd.f32 %v6869_v14, %v6868_v43  ;;  %v2014_v34 = vadd.f32 %v1946_v45, %v1942_v57  ;;  %v2031_v47 = vadd.f32 %v1947_v3, %v1943_v30  ;;  %1935 = vst [vmem:[#allocation7 + $0x8] sm:$0xff] %v1931_v50  ;;  %v6875_v23 = vld [vmem:[#allocation32_spill] sm:$0xff]  ;;  %v6876_v54 = vld [vmem:[#allocation85_spill] sm:$0xff]  ;;  %v6878_v57 = vld [vmem:[#allocation86_spill] sm:$0xff] }
 0x1b4   : > { %v1933_v55 = vadd.f32 %v1929_v29, %v1789_v0  ;;  %v2048_v2 = vadd.f32 %v1948_v28, %v1944_v27  ;;  %v2065_v42 = vadd.f32 %v1949_v8, %v1945_v52  ;;  %v1958_v61 = vadd.f32 %v6872_v44, %v6871_v40  ;;  %v6874_v0 = vld [vmem:[#allocation84_spill] sm:$0xff]  ;;  %v6877_v29 = vld [vmem:[#allocation33_spill] sm:$0xff]  ;;  %1936 = vst [vmem:[#allocation7 + $0x10] sm:$0xff] %v1932_v53  ;;  %v6879_v8 = vld [vmem:[#allocation34_spill] sm:$0xff] }
 0x1b5   : > { %1934 = vst [vmem:[#allocation7] sm:$0xff] %v1930_v33  ;;  %v1959_v36 = vadd.f32 %v6874_v0, %v6873_v39  ;;  %v1960_v49 = vadd.f32 %v6876_v54, %v6875_v23  ;;  %v1961_v30 = vadd.f32 %v6878_v57, %v6877_v29  ;;  %v2015_v52 = vadd.f32 %v2014_v34, %v1950_v58  ;;  %v6881_v46 = vld [vmem:[#allocation35_spill] sm:$0xff]  ;;  %v6882_v4 = vld [vmem:[#allocation89_spill] sm:$0xff]  ;;  %v6883_v50 = vld [vmem:[#allocation36_spill] sm:$0xff] }
 0x1b6   : > { %v2032_v27 = vadd.f32 %v2031_v47, %v1951_v13  ;;  %v2049_v45 = vadd.f32 %v2048_v2, %v1952_v15  ;;  %v2066_v3 = vadd.f32 %v2065_v42, %v1953_v24  ;;  %1937 = vst [vmem:[#allocation7 + $0x18] sm:$0xff] %v1933_v55  ;;  %v1962_v28 = vadd.f32 %v5573_v10, %v4106_v22  ;;  %v6884_v31 = vld [vmem:[#allocation90_spill] sm:$0xff]  ;;  %v6885_v13 = vld [vmem:[#allocation37_spill] sm:$0xff]  ;;  %v6886_v15 = vld [vmem:[#allocation91_spill] sm:$0xff] }
 0x1b7   : > { %v1963_v19 = vadd.f32 %v6880_v9, %v6879_v8  ;;  %v1964_v33 = vadd.f32 %v6882_v4, %v6881_v46  ;;  %v1965_v11 = vadd.f32 %v6884_v31, %v6883_v50  ;;  %v2016_v16 = vadd.f32 %v2015_v52, %v1954_v12  ;;  %2320 = dma.vmem_to_hbm [thread:$0]  (%p5909_p0), %s2100_s22, 512, %s2102_s7, [#allocation4]   ;;  %v6887_v55 = vld [vmem:[#allocation38_spill] sm:$0xff]  ;;  %v6888_v22 = vld [vmem:[#allocation92_spill] sm:$0xff]  ;;  %v6891_v47 = vld [vmem:[#allocation95_spill] sm:$0xff] }
 0x1b8   : > { %v2033_v6 = vadd.f32 %v2032_v27, %v1955_v32  ;;  %v2050_v53 = vadd.f32 %v2049_v45, %v1956_v7  ;;  %v2067_v58 = vadd.f32 %v2066_v3, %v1957_v1  ;;  %v1966_v24 = vadd.f32 %v6886_v15, %v6885_v13  ;;  %v6889_v43 = vld [vmem:[#allocation94_spill] sm:$0xff]  ;;  %v6890_v34 = vld [vmem:[#allocation40_spill] sm:$0xff]  ;;  %v6892_v7 = vld [vmem:[#allocation41_spill] sm:$0xff] }
 0x1b9   : > { %v1967_v10 = vadd.f32 %v6888_v22, %v6887_v55  ;;  %v1968_v14 = vadd.f32 %v6889_v43, %v6780_v37  ;;  %v1969_v2 = vadd.f32 %v6891_v47, %v6890_v34  ;;  %v2017_v42 = vadd.f32 %v2016_v16, %v1958_v61  ;;  %v6893_v1 = vld [vmem:[#allocation96_spill] sm:$0xff]  ;;  %v6894_v39 = vld [vmem:[#allocation42_spill] sm:$0xff]  ;;  %v6895_v0 = vld [vmem:[#allocation97_spill] sm:$0xff] }
 0x1ba   : > { %v2034_v40 = vadd.f32 %v2033_v6, %v1959_v36  ;;  %v2051_v12 = vadd.f32 %v2050_v53, %v1960_v49  ;;  %v2068_v32 = vadd.f32 %v2067_v58, %v1961_v30  ;;  %v1970_v44 = vadd.f32 %v6893_v1, %v6892_v7  ;;  %v6896_v29 = vld [vmem:[#allocation98_spill] sm:$0xff]  ;;  %v6898_v36 = vld [vmem:[#allocation99_spill] sm:$0xff]  ;;  %v6899_v3 = vld [vmem:[#allocation16_spill] sm:$0xff] }
 0x1bb   : > { %v1971_v23 = vadd.f32 %v6895_v0, %v6894_v39  ;;  %v1972_v54 = vadd.f32 %v5631_v21, %v6787_v5  ;;  %v1973_v57 = vadd.f32 %v6896_v29, %v6788_v62  ;;  %v2018_v37 = vadd.f32 %v2017_v42, %v1962_v28  ;;  %v6897_v61 = vld [vmem:[#allocation14_spill] sm:$0xff]  ;;  %v6900_v8 = vld [vmem:[#allocation39_spill] sm:$0xff]  ;;  %v6902_v4 = vld [vmem:[#allocation100_spill] sm:$0xff] }
 0x1bc   : > { %v2035_v52 = vadd.f32 %v2034_v40, %v1963_v19  ;;  %v2052_v27 = vadd.f32 %v2051_v12, %v1964_v33  ;;  %v2069_v45 = vadd.f32 %v2068_v32, %v1965_v11  ;;  %v1974_v49 = vadd.f32 %v6898_v36, %v6897_v61  ;;  %v6901_v46 = vld [vmem:[#allocation18_spill] sm:$0xff]  ;;  %v6903_v28 = vld [vmem:[#allocation21_spill] sm:$0xff]  ;;  %v6905_v11 = vld [vmem:[#allocation24_spill] sm:$0xff] }
 0x1bd   : > { %v1975_v30 = vadd.f32 %v5654_v41, %v6794_v56  ;;  %v1976_v9 = vadd.f32 %v6900_v8, %v6899_v3  ;;  %v1977_v50 = vadd.f32 %v6902_v4, %v6901_v46  ;;  %v2019_v5 = vadd.f32 %v2018_v37, %v1966_v24  ;;  %v6904_v19 = vld [vmem:[#allocation101_spill] sm:$0xff]  ;;  %v6906_v16 = vld [vmem:[#allocation43_spill] sm:$0xff]  ;;  %v6908_v58 = vld [vmem:[#allocation44_spill] sm:$0xff] }
 0x1be   : > { %v2036_v21 = vadd.f32 %v2035_v52, %v1967_v10  ;;  %v2053_v31 = vadd.f32 %v2052_v27, %v1968_v14  ;;  %v2070_v62 = vadd.f32 %v2069_v45, %v1969_v2  ;;  %v1978_v33 = vadd.f32 %v6904_v19, %v6903_v28  ;;  %v6907_v53 = vld [vmem:[#allocation27_spill] sm:$0xff]  ;;  %v6909_v41 = vld [vmem:[#allocation17_spill] sm:$0xff]  ;;  %v6910_v56 = vld [vmem:[#allocation102_spill] sm:$0xff] }
 0x1bf   : > { %v1979_v6 = vadd.f32 %v6906_v16, %v6905_v11  ;;  %v1980_v13 = vadd.f32 %v6908_v58, %v6907_v53  ;;  %v1981_v15 = vadd.f32 %v6910_v56, %v6909_v41  ;;  %v2020_v55 = vadd.f32 %v2019_v5, %v1970_v44  ;;  %v6911_v24 = vld [vmem:[#allocation28_spill] sm:$0xff]  ;;  %v6912_v10 = vld [vmem:[#allocation103_spill] sm:$0xff]  ;;  %v6913_v47 = vld [vmem:[#allocation45_spill] sm:$0xff] }
 0x1c0   : > { %v2037_v22 = vadd.f32 %v2036_v21, %v1971_v23  ;;  %v2054_v43 = vadd.f32 %v2053_v31, %v1972_v54  ;;  %v2071_v34 = vadd.f32 %v2070_v62, %v1973_v57  ;;  %v1982_v14 = vadd.f32 %v6912_v10, %v6911_v24  ;;  %v6914_v2 = vld [vmem:[#allocation15_spill] sm:$0xff]  ;;  %v6915_v40 = vld [vmem:[#allocation46_spill] sm:$0xff]  ;;  %v6916_v12 = vld [vmem:[#allocation104_spill] sm:$0xff] }
 0x1c1   : > { %v1983_v42 = vadd.f32 %v6914_v2, %v6913_v47  ;;  %v1984_v32 = vadd.f32 %v6916_v12, %v6915_v40  ;;  %v6917_v7 = vld [vmem:[#allocation47_spill] sm:$0xff]  ;;  %v6918_v1 = vld [vmem:[#allocation105_spill] sm:$0xff]  ;;  %v2021_v0 = vadd.f32 %v2020_v55, %v1974_v49  ;;  %v6919_v44 = vld [vmem:[#allocation48_spill] sm:$0xff] }
 0x1c2   : > { %v1985_v39 = vadd.f32 %v6918_v1, %v6917_v7  ;;  %v2038_v29 = vadd.f32 %v2037_v22, %v1975_v30  ;;  %v2055_v37 = vadd.f32 %v2054_v43, %v1976_v9  ;;  %v2072_v52 = vadd.f32 %v2071_v34, %v1977_v50  ;;  %v6920_v23 = vld [vmem:[#allocation106_spill] sm:$0xff]  ;;  %v6921_v57 = vld [vmem:[#allocation49_spill] sm:$0xff]  ;;  %v6922_v27 = vld [vmem:[#allocation107_spill] sm:$0xff] }
 0x1c3   : > { %v1986_v54 = vadd.f32 %v6920_v23, %v6919_v44  ;;  %v1987_v45 = vadd.f32 %v6922_v27, %v6921_v57  ;;  %v6923_v61 = vld [vmem:[#allocation19_spill] sm:$0xff]  ;;  %v6924_v36 = vld [vmem:[#allocation108_spill] sm:$0xff]  ;;  %v6926_v46 = vld [vmem:[#allocation109_spill] sm:$0xff]  ;;  %v2022_v5 = vadd.f32 %v2021_v0, %v1978_v33 }
 0x1c4   : > { %v1988_v3 = vadd.f32 %v6924_v36, %v6923_v61  ;;  %v6925_v8 = vld [vmem:[#allocation20_spill] sm:$0xff]  ;;  %v2039_v21 = vadd.f32 %v2038_v29, %v1979_v6  ;;  %v2056_v31 = vadd.f32 %v2055_v37, %v1980_v13  ;;  %v2073_v62 = vadd.f32 %v2072_v52, %v1981_v15  ;;  %v6927_v49 = vld [vmem:[#allocation50_spill] sm:$0xff]  ;;  %v6929_v50 = vld [vmem:[#allocation51_spill] sm:$0xff] }
 0x1c5   : > { %v1989_v4 = vadd.f32 %v6926_v46, %v6925_v8  ;;  %v6928_v30 = vld [vmem:[#allocation110_spill] sm:$0xff]  ;;  %v6930_v28 = vld [vmem:[#allocation111_spill] sm:$0xff]  ;;  %v6932_v16 = vld [vmem:[#allocation112_spill] sm:$0xff]  ;;  %v2023_v55 = vadd.f32 %v2022_v5, %v1982_v14 }
 0x1c6   : > { %v1990_v9 = vadd.f32 %v6928_v30, %v6927_v49  ;;  %v1991_v19 = vadd.f32 %v6930_v28, %v6929_v50  ;;  %v6931_v11 = vld [vmem:[#allocation22_spill] sm:$0xff]  ;;  %v6933_v58 = vld [vmem:[#allocation23_spill] sm:$0xff]  ;;  %v6934_v41 = vld [vmem:[#allocation113_spill] sm:$0xff]  ;;  %v2040_v22 = vadd.f32 %v2039_v21, %v1983_v42  ;;  %v2057_v43 = vadd.f32 %v2056_v31, %v1984_v32 }
 0x1c7   : > { %v1992_v53 = vadd.f32 %v6932_v16, %v6931_v11  ;;  %v1993_v56 = vadd.f32 %v6934_v41, %v6933_v58  ;;  %v2074_v34 = vadd.f32 %v2073_v62, %v1985_v39  ;;  %v6935_v33 = vld [vmem:[#allocation52_spill] sm:$0xff]  ;;  %v6936_v6 = vld [vmem:[#allocation114_spill] sm:$0xff]  ;;  %v6937_v15 = vld [vmem:[#allocation53_spill] sm:$0xff]  ;;  %v2024_v0 = vadd.f32 %v2023_v55, %v1986_v54 }
 0x1c8   : > { %v1994_v13 = vadd.f32 %v6936_v6, %v6935_v33  ;;  %v6938_v24 = vld [vmem:[#allocation115_spill] sm:$0xff]  ;;  %v6939_v47 = vld [vmem:[#allocation54_spill] sm:$0xff]  ;;  %v6940_v2 = vld [vmem:[#allocation116_spill] sm:$0xff]  ;;  %v2041_v29 = vadd.f32 %v2040_v22, %v1987_v45  ;;  %v2058_v37 = vadd.f32 %v2057_v43, %v1988_v3  ;;  %v2002_v54 = vadd.f32 %v5795_v26, %v6843_v18 }
 0x1c9   : > { %v1995_v10 = vadd.f32 %v6938_v24, %v6937_v15  ;;  %v1996_v40 = vadd.f32 %v6940_v2, %v6939_v47  ;;  %v6941_v12 = vld [vmem:[#allocation25_spill] sm:$0xff]  ;;  %v2075_v52 = vadd.f32 %v2074_v34, %v1989_v4  ;;  %v6943_v14 = vld [vmem:[#allocation55_spill] sm:$0xff]  ;;  %v6944_v42 = vld [vmem:[#allocation118_spill] sm:$0xff]  ;;  %v2025_v5 = vadd.f32 %v2024_v0, %v1990_v9 }
 0x1ca   : > { %v6942_v7 = vld [vmem:[#allocation117_spill] sm:$0xff]  ;;  %v1998_v32 = vadd.f32 %v6944_v42, %v6943_v14  ;;  %v6945_v39 = vld [vmem:[#allocation56_spill] sm:$0xff]  ;;  %v6946_v44 = vld [vmem:[#allocation119_spill] sm:$0xff]  ;;  %v2042_v21 = vadd.f32 %v2041_v29, %v1991_v19  ;;  %v2059_v31 = vadd.f32 %v2058_v37, %v1992_v53  ;;  %v2006_v9 = vadd.f32 %v5815_v25, %v5398_v20 }
 0x1cb   : > { %v1997_v1 = vadd.f32 %v6942_v7, %v6941_v12  ;;  %v1999_v23 = vadd.f32 %v6946_v44, %v6945_v39  ;;  %v6947_v57 = vld [vmem:[#allocation57_spill] sm:$0xff]  ;;  %v6948_v27 = vld [vmem:[#allocation120_spill] sm:$0xff]  ;;  %v6949_v36 = vld [vmem:[#allocation26_spill] sm:$0xff]  ;;  %v2076_v62 = vadd.f32 %v2075_v52, %v1993_v56  ;;  %v2026_v58 = vadd.f32 %v2025_v5, %v1994_v13 }
 0x1cc   : > { %v2000_v61 = vadd.f32 %v6948_v27, %v6947_v57  ;;  %v6950_v8 = vld [vmem:[#allocation121_spill] sm:$0xff]  ;;  %v6951_v45 = vld [vmem:[#allocation59_spill] sm:$0xff]  ;;  %v6952_v3 = vld [vmem:[#allocation122_spill] sm:$0xff]  ;;  %v2043_v41 = vadd.f32 %v2042_v21, %v1995_v10  ;;  %v2060_v55 = vadd.f32 %v2059_v31, %v1996_v40  ;;  %v2007_v19 = vadd.f32 %v5826_v35, %v5420_v51 }
 0x1cd   : > { %v2001_v46 = vadd.f32 %v6950_v8, %v6949_v36  ;;  %v2003_v4 = vadd.f32 %v6952_v3, %v6951_v45  ;;  %v6953_v49 = vld [vmem:[#allocation60_spill] sm:$0xff]  ;;  %v6954_v30 = vld [vmem:[#allocation123_spill] sm:$0xff]  ;;  %v6955_v28 = vld [vmem:[#allocation61_spill] sm:$0xff]  ;;  %v2077_v22 = vadd.f32 %v2076_v62, %v1997_v1  ;;  %v2008_v26 = vadd.f32 %v5829_v63, %v5447_v60 }
 0x1ce   : > { %v2004_v50 = vadd.f32 %v6954_v30, %v6953_v49  ;;  %v6956_v11 = vld [vmem:[#allocation124_spill] sm:$0xff]  ;;  %v2009_v18 = vadd.f32 %v5832_v17, %v5451_v48  ;;  %v2027_v53 = vadd.f32 %v2026_v58, %v1998_v32  ;;  %v2044_v56 = vadd.f32 %v2043_v41, %v1999_v23  ;;  %v6957_v33 = vld [vmem:[#allocation125_spill] sm:$0xff]  ;;  %v6958_v13 = vld [vmem:[#allocation87_spill] sm:$0xff] }
 0x1cf   : > { %v2005_v16 = vadd.f32 %v6956_v11, %v6955_v28  ;;  %v2061_v43 = vadd.f32 %v2060_v55, %v2000_v61  ;;  %v2078_v34 = vadd.f32 %v2077_v22, %v2001_v46  ;;  %v2010_v6 = vadd.f32 %v6957_v33, %v5488_v59  ;;  %v6959_v15 = vld [vmem:[#allocation58_spill] sm:$0xff]  ;;  %v6960_v20 = vld [vmem:[#allocation93_spill] sm:$0xff]  ;;  %v6962_v51 = vld [vmem:[#allocation127_spill] sm:$0xff] }
 0x1d0   : > { %v2011_v24 = vadd.f32 %v6959_v15, %v6958_v13  ;;  %v6961_v25 = vld [vmem:[#allocation126_spill] sm:$0xff]  ;;  %v2013_v35 = vadd.f32 %v6962_v51, %v5714_v38  ;;  %v2028_v60 = vadd.f32 %v2027_v53, %v2002_v54  ;;  %v2045_v63 = vadd.f32 %v2044_v56, %v2003_v4  ;;  %v1939_v1 = vld [vmem:[#allocation8 + $0x8] sm:$0xff]  ;;  %v1940_v59 = vld [vmem:[#allocation8 + $0x10] sm:$0xff] }
 0x1d1   : > { %v2012_v10 = vadd.f32 %v6961_v25, %v6960_v20  ;;  %v2062_v47 = vadd.f32 %v2061_v43, %v2004_v50  ;;  %v2079_v48 = vadd.f32 %v2078_v34, %v2005_v16  ;;  %v1938_v7 = vld [vmem:[#allocation8] sm:$0xff]  ;;  %v1941_v0 = vld [vmem:[#allocation8 + $0x18] sm:$0xff] }
 0x1d2   : > { %v2029_v17 = vadd.f32 %v2028_v60, %v2006_v9  ;;  %v2046_v2 = vadd.f32 %v2045_v63, %v2007_v19 }
 0x1d3   : > { %v2063_v40 = vadd.f32 %v2062_v47, %v2008_v26  ;;  %v2080_v12 = vadd.f32 %v2079_v48, %v2009_v18 }
 0x1d4   : > { %v2030_v29 = vadd.f32 %v2029_v17, %v2010_v6  ;;  %v2047_v37 = vadd.f32 %v2046_v2, %v2011_v24 }
 0x1d5   : > { %v2064_v52 = vadd.f32 %v2063_v40, %v2012_v10  ;;  %v2081_v14 = vadd.f32 %v2080_v12, %v2013_v35 }
 0x1d6   : > { %v2082_v42 = vadd.f32 %v2030_v29, %v1938_v7  ;;  %v2083_v38 = vadd.f32 %v2047_v37, %v1939_v1 }
 0x1d7   : > { %v2084_v32 = vadd.f32 %v2064_v52, %v1940_v59  ;;  %v2085_v39 = vadd.f32 %v2081_v14, %v1941_v0 }
 0x1d8   : > { %2086 = vst [vmem:[#allocation8] sm:$0xff] %v2082_v42 }
 0x1d9   : > { %2087 = vst [vmem:[#allocation8 + $0x8] sm:$0xff] %v2083_v38 }
 0x1da   : > { %2088 = vst [vmem:[#allocation8 + $0x10] sm:$0xff] %v2084_v32 }
 0x1db   : > { %2089 = vst [vmem:[#allocation8 + $0x18] sm:$0xff] %v2085_v39 }
 0x1dc   : > { %2322 = dma.vmem_to_hbm [thread:$0]  (%p5909_p0), %s2115_s9, 512, %s2117_s12, [#allocation9]  }
 0x1dd   : > { %2829 = dma.done.wait (%p5909_p0), [#allocation4], 512  }
 0x1de   : > { %2831 = vsyncadd (%p5909_p0), [#allocation4], 4294966784 }
 0x1df   : > { %2833 = dma.done.wait (%p5909_p0), [#allocation9], 512  }
 0x1e0   : > { %2835 = vsyncadd (%p5909_p0), [#allocation9], 4294966784 }
 0x1e1 PF: > { %s22_s17 = sadd.s32 1, %s2858_s17   ;;  %s6963_s12 = smov %s2842_s13 }
 0x1e2   : > { %p19_p1 = scmp.ge.s32.totalorder %s22_s17, 6   ;;  %s6964_s13 = smov %s2846_s14 }
 0x1e3   : > { %s6965_s14 = smov %s2932_s23  ;;  %s6966_s15 = smov %s2854_s16 }
 0x1e4   : > { %s6967_s16 = smov %s6969_s19  ;;  %21 = sbr.rel (!%p19_p1) target bundleno = 8 (0x8), region = 92 }
 0x1e9   :  { %2135 = vsyncpa [#allocation3], 1 }
 0x1ea   :  { %2137 = vsyncpa [#allocation3 + $0x1], 1 }
 0x1eb   :  { %2138 = vsyncpa [#allocation6], 1 }
 0x1ec   :  { %2140 = vsyncpa [#allocation6 + $0x1], 1 }
 0x1ed   :  { %2141 = vsyncpa [#allocation4], 1 }
 0x1ee   :  { %2143 = vsyncpa [#allocation4 + $0x1], 1 }
 0x1ef   :  { %2144 = vsyncpa [#allocation9], 1 }

</bundles_post_ra>
